<compile_context>
chip_gen: v7x
topology: tpu7x:2x2x1
jax: 0.10.0
libtpu: 0.0.40
codegen_flags: <defaults>
</compile_context>

<pallas_src>
import numpy as np
import jax
import jax.numpy as jnp
from jax.experimental import pallas as pl
from jax.experimental.pallas import tpu as pltpu


# ---------------------------------------------------------------------------
# Constant linear operators (host-side; exact PyTorch semantics)
# ---------------------------------------------------------------------------
def _adaptive_pool_matrix(out_size, in_size):
    """M (out, in) with pooled = M @ x  (PyTorch AdaptiveAvgPool2d rule)."""
    m = np.zeros((out_size, in_size), np.float32)
    for i in range(out_size):
        start = (i * in_size) // out_size
        end = -((-(i + 1) * in_size) // out_size)        # ceil((i+1)*in/out)
        m[i, start:end] = 1.0 / (end - start)
    return m


def _bilinear_matrix(out_size, in_size):
    """U (out, in) with up = U @ x, bilinear, align_corners=True."""
    m = np.zeros((out_size, in_size), np.float32)
    if in_size == 1:
        m[:, 0] = 1.0
        return m
    scale = (in_size - 1) / (out_size - 1) if out_size > 1 else 0.0
    for y in range(out_size):
        sy = y * scale
        i0 = min(int(np.floor(sy)), in_size - 1)
        i1 = min(i0 + 1, in_size - 1)
        w1 = sy - i0
        m[y, i0] += 1.0 - w1
        m[y, i1] += w1
    return m


def _fold_bn(gamma, beta, mean, var, eps=1e-5):
    scale = gamma / jnp.sqrt(var + eps)
    return scale, beta - mean * scale


# ---------------------------------------------------------------------------
# Kernel 1: ALL pyramid stages fused + channel concat
#   stacked adaptive-avg-pool -> merged 1x1 convs (BN scale pre-folded)
#   -> bias + ReLU -> per-bin bilinear upsample -> concat([x, up_0..])
# ---------------------------------------------------------------------------
def _make_stages_kernel(cout, b2s, hw):
    nb = len(b2s)

    def kernel(x_ref, mpool_ref, w1_ref, b1_ref, *rest):
        mup_refs = rest[:nb]
        o_ref = rest[nb]
        x = x_ref[0]                                                    # (HW, Cin) bf16
        # one stacked pooling matmul for every bin (M = sum b^2)
        pooled = jnp.dot(mpool_ref[...], x,
                         preferred_element_type=jnp.float32)            # (Mtot, Cin)
        # merged 1x1 convs (BN scale folded) + bias + ReLU
        s = jnp.dot(pooled.astype(jnp.bfloat16), w1_ref[...],
                    preferred_element_type=jnp.float32)                 # (Mtot, nb*Cout)
        s = jnp.maximum(s + b1_ref[...], 0.0).astype(jnp.bfloat16)
        parts = [x]
        off = 0
        for i, b2 in enumerate(b2s):
            s_i = s[off:off + b2, i * cout:(i + 1) * cout]              # (b^2, Cout)
            if b2 == 1:
                up = jnp.broadcast_to(s_i, (hw, cout))                  # bin=1: broadcast
            else:
                up = jnp.dot(mup_refs[i][...], s_i,
                             preferred_element_type=jnp.float32
                             ).astype(jnp.bfloat16)                     # (HW, Cout)
            parts.append(up)
            off += b2
        # single lane-dense store of the concatenated pyramid
        o_ref[0] = jnp.concatenate(parts, axis=-1)

    return kernel


def _run_stages(xf, mpool, w1cat, b1cat, mups, cout, bin_sizes):
    n, hw, cin = xf.shape
    nb = len(bin_sizes)
    ct = cin + nb * cout
    mtot = mpool.shape[0]
    kernel = _make_stages_kernel(cout, [b * b for b in bin_sizes], hw)

    in_specs = [
        pl.BlockSpec((1, hw, cin), lambda i: (i, 0, 0)),
        pl.BlockSpec((mtot, hw), lambda i: (0, 0)),
        pl.BlockSpec((cin, nb * cout), lambda i: (0, 0)),
        pl.BlockSpec((1, nb * cout), lambda i: (0, 0)),
    ] + [pl.BlockSpec(m.shape, lambda i: (0, 0)) for m in mups]

    flops = n * (2 * mtot * hw * cin + 2 * mtot * cin * nb * cout
                 + sum(2 * hw * b * b * cout for b in bin_sizes if b > 1))
    bytes_accessed = int((xf.size + n * hw * ct + mpool.size + w1cat.size
                          + sum(int(m.size) for m in mups)) * 2)

    return pl.pallas_call(
        kernel,
        out_shape=jax.ShapeDtypeStruct((n, hw, ct), jnp.bfloat16),
        grid=(n,),
        in_specs=in_specs,
        out_specs=pl.BlockSpec((1, hw, ct), lambda i: (i, 0, 0)),
        compiler_params=pltpu.CompilerParams(
            dimension_semantics=("parallel",),
            vmem_limit_bytes=64 * 1024 * 1024),
        cost_estimate=pl.CostEstimate(flops=int(flops), transcendentals=0,
                                      bytes_accessed=bytes_accessed),
    )(xf, mpool, w1cat, b1cat, *mups)


# ---------------------------------------------------------------------------
# Kernel 2: bottleneck 3x3 conv (pad=1, no bias) + BN + ReLU
#   row-block tiled, 2-row halo via a second BlockSpec, kx taps merged.
# ---------------------------------------------------------------------------
def _make_bottleneck_kernel(th, wd, co):
    def kernel(xm_ref, xh_ref, w_ref, b_ref, o_ref, acc_ref):
        # xm_ref: (1, TH,  W+2, Ct)  padded rows [r*TH, r*TH+TH)
        # xh_ref: (1, 2,   W+2, Ct)  halo rows   [r*TH+TH, r*TH+TH+2)
        # w_ref : (3, Ct, 3*Co)      w_ref[ky][:, kx*Co:(kx+1)*Co] = W[ky,kx] (BN folded)
        # acc_ref: (TH, W, Co) f32 VMEM accumulator
        first = True
        for ky in range(3):
            nm = th - ky
            ym = jnp.einsum("hwc,co->hwo", xm_ref[0, ky:th], w_ref[ky],
                            preferred_element_type=jnp.float32)         # (nm, W+2, 3*Co)
            for kx in range(3):
                contrib = ym[:, kx:kx + wd, kx * co:(kx + 1) * co]       # (nm, W, Co)
                if first:
                    acc_ref[...] = contrib                               # nm == TH here
                    first = False
                else:
                    acc_ref[0:nm] += contrib
            if ky:
                yh = jnp.einsum("hwc,co->hwo", xh_ref[0, 0:ky], w_ref[ky],
                                preferred_element_type=jnp.float32)      # (ky, W+2, 3*Co)
                for kx in range(3):
                    acc_ref[nm:th] += yh[:, kx:kx + wd, kx * co:(kx + 1) * co]
        o_ref[0] = jnp.maximum(acc_ref[...] + b_ref[...], 0.0).astype(o_ref.dtype)

    return kernel


def _run_bottleneck(xp, w2, bias2, row_tile):
    n, hp, wp, ct = xp.shape
    h, wd = hp - 2, wp - 2
    co = bias2.shape[-1]
    th = row_tile
    assert h % th == 0 and th % 2 == 0, (h, th)
    nr = h // th
    kernel = _make_bottleneck_kernel(th, wd, co)

    flops = int(2 * n * h * wd * 9 * ct * co)
    bytes_accessed = int(xp.size * 2 + w2.size * 2 + n * h * wd * co * 4)

    return pl.pallas_call(
        kernel,
        out_shape=jax.ShapeDtypeStruct((n, h, wd, co), jnp.float32),
        grid=(n, nr),
        in_specs=[
            pl.BlockSpec((1, th, wp, ct), lambda b, r: (b, r, 0, 0)),
            # 2-row halo: element start (r+1)*TH == block index (r+1)*TH/2 of size-2 blocks
            pl.BlockSpec((1, 2, wp, ct), lambda b, r: (b, (r + 1) * (th // 2), 0, 0)),
            pl.BlockSpec((3, ct, 3 * co), lambda b, r: (0, 0, 0)),
            pl.BlockSpec((1, co), lambda b, r: (0, 0)),
        ],
        out_specs=pl.BlockSpec((1, th, wd, co), lambda b, r: (b, r, 0, 0)),
        scratch_shapes=[pltpu.VMEM((th, wd, co), jnp.float32)],
        compiler_params=pltpu.CompilerParams(
            dimension_semantics=("parallel", "parallel"),
            vmem_limit_bytes=64 * 1024 * 1024),
        cost_estimate=pl.CostEstimate(flops=flops, transcendentals=0,
                                      bytes_accessed=bytes_accessed),
    )(xp, xp, w2, bias2)


# ---------------------------------------------------------------------------
# Full _PSPModule forward
# ---------------------------------------------------------------------------
def psp_forward(x_nchw, params, bin_sizes):
    n, cin, h, w = x_nchw.shape
    nb = len(bin_sizes)
    cout = params["stages"][0]["w"].shape[0]
    ct = cin + nb * cout
    hw = h * w

    # --- fold BN into conv weights, cast matmul operands to bf16 -----------
    w1_list, b1_list = [], []
    for st in params["stages"]:
        scale, bias = _fold_bn(st["gamma"], st["beta"], st["mean"], st["var"])
        w1_list.append(st["w"].T * scale[None, :])                      # (Cin, Cout)
        b1_list.append(bias)
    w1cat = jnp.concatenate(w1_list, axis=1).astype(jnp.bfloat16)       # (Cin, nb*Cout)
    b1cat = jnp.concatenate(b1_list)[None, :].astype(jnp.float32)       # (1, nb*Cout)

    bt = params["bottleneck"]
    scale2, bias2 = _fold_bn(bt["gamma"], bt["beta"], bt["mean"], bt["var"])
    w2 = jnp.transpose(bt["w"], (2, 3, 1, 0)) * scale2                  # (3,3,Ct,Co)
    w2 = jnp.transpose(w2, (0, 2, 1, 3)).reshape(3, ct, 3 * cout)       # (3, Ct, 3*Co)
    w2 = w2.astype(jnp.bfloat16)
    bias2 = bias2[None, :].astype(jnp.float32)                          # (1, Co)

    # --- pooling / upsample operators (stacked pool; per-bin upsample) -----
    mpool = jnp.asarray(
        np.concatenate([np.kron(_adaptive_pool_matrix(b, h),
                                _adaptive_pool_matrix(b, w))
                        for b in bin_sizes], axis=0), jnp.bfloat16)     # (sum b^2, HW)
    mups = [jnp.asarray(np.kron(_bilinear_matrix(h, b), _bilinear_matrix(w, b)),
                        jnp.bfloat16) for b in bin_sizes]               # (HW, b^2)

    # --- kernel 1: fused pyramid stages + channel concat --------------------
    x_nhwc = jnp.transpose(x_nchw, (0, 2, 3, 1)).astype(jnp.bfloat16)   # NCHW -> NHWC
    xf = x_nhwc.reshape(n, hw, cin)
    xcat = _run_stages(xf, mpool, w1cat, b1cat, mups, cout, bin_sizes)  # (n, HW, Ct)
    xcat = xcat.reshape(n, h, w, ct)                                    # row-major: free

    # --- kernel 2: 3x3 conv + BN + ReLU on the pre-padded concat ------------
    xp = jnp.pad(xcat, ((0, 0), (1, 1), (1, 1), (0, 0)))
    row_tile = next((t for t in (8, 16, 4, 2) if h % t == 0), None)
    assert row_tile is not None, "H needs an even divisor for row-block tiling"
    # TODO(synk): odd H would need a remainder row-block (or extra bottom padding).
    y = _run_bottleneck(xp, w2, bias2, row_tile)                        # (n, h, w, Co) f32
    # nn.Dropout2d(0.1) is identity at inference time.
    return jnp.transpose(y, (0, 3, 1, 2))                               # NHWC -> NCHW


# ---------------------------------------------------------------------------
# Deterministic parameter construction (PyTorch-layout weights)
# ---------------------------------------------------------------------------
def make_params(key, in_channels, bin_sizes):
    out_channels = in_channels // len(bin_sizes)
    ct = in_channels + out_channels * len(bin_sizes)

    stages = []
    for _ in bin_sizes:
        key, k1, k2, k3, k4, k5 = jax.random.split(key, 6)
        stages.append(dict(
            # Conv2d(Cin, Cout, 1, bias=False).weight squeezed -> (Cout, Cin)
            w=0.1 * jax.random.normal(k1, (out_channels, in_channels), jnp.float32),
            gamma=jax.random.uniform(k2, (out_channels,), jnp.float32, 0.8, 1.2),
            beta=0.1 * jax.random.normal(k3, (out_channels,), jnp.float32),
            mean=0.1 * jax.random.normal(k4, (out_channels,), jnp.float32),
            var=jax.random.uniform(k5, (out_channels,), jnp.float32, 0.5, 1.5),
        ))

    key, k1, k2, k3, k4, k5 = jax.random.split(key, 6)
    bottleneck = dict(
        # Conv2d(Ct, Cout, 3, padding=1, bias=False).weight -> (Cout, Ct, 3, 3)
        w=0.1 * jax.random.normal(k1, (out_channels, ct, 3, 3), jnp.float32),
        gamma=jax.random.uniform(k2, (out_channels,), jnp.float32, 0.8, 1.2),
        beta=0.1 * jax.random.normal(k3, (out_channels,), jnp.float32),
        mean=0.1 * jax.random.normal(k4, (out_channels,), jnp.float32),
        var=jax.random.uniform(k5, (out_channels,), jnp.float32, 0.5, 1.5),
    )
    return dict(stages=stages, bottleneck=bottleneck)


if __name__ == "__main__":
    key = jax.random.PRNGKey(0)
    key, kx, kp = jax.random.split(key, 3)

    n, c, h, w = 2, 8, 16, 16
    bin_sizes = (1, 2, 4, 8)          # out_channels = 8 // 4 = 2, concat channels = 16

    x = jax.random.normal(kx, (n, c, h, w), jnp.float32)   # NCHW, like the PyTorch module
    params = make_params(kp, c, bin_sizes)

    fwd = jax.jit(lambda xx, pp: psp_forward(xx, pp, bin_sizes))
    out = jax.block_until_ready(fwd(x, params))

    assert out.shape == (n, c // len(bin_sizes), h, w), out.shape
    assert bool(jnp.all(jnp.isfinite(out)))
    print("KERNEL_OK")
</pallas_src>

<mosaic_0001>
module attributes {stable_mosaic.version = 11 : i64} {
  func.func @kernel(%arg0: i32, %arg1: memref<1x256x8xbf16, #tpu.memory_space<vmem>>, %arg2: memref<85x256xbf16, #tpu.memory_space<vmem>>, %arg3: memref<8x8xbf16, #tpu.memory_space<vmem>>, %arg4: memref<1x8xf32, #tpu.memory_space<vmem>>, %arg5: memref<256x1xbf16, #tpu.memory_space<vmem>>, %arg6: memref<256x4xbf16, #tpu.memory_space<vmem>>, %arg7: memref<256x16xbf16, #tpu.memory_space<vmem>>, %arg8: memref<256x64xbf16, #tpu.memory_space<vmem>>, %arg9: memref<1x256x16xbf16, #tpu.memory_space<vmem>>) attributes {dimension_semantics = [#tpu.dimension_semantics<parallel>], iteration_bounds = array<i64: 2>, scalar_prefetch = 0 : i64, scratch_operands = 0 : i64, tpu.core_type = #tpu.core_type<tc>, window_params = [{transform_indices = @transform_0, window_bounds = array<i64: 1, 256, 8>}, {pipeline_mode = #tpu.pipeline_mode<synchronous>, transform_indices = @transform_1, window_bounds = array<i64: 85, 256>}, {pipeline_mode = #tpu.pipeline_mode<synchronous>, transform_indices = @transform_2, window_bounds = array<i64: 8, 8>}, {pipeline_mode = #tpu.pipeline_mode<synchronous>, transform_indices = @transform_3, window_bounds = array<i64: 1, 8>}, {pipeline_mode = #tpu.pipeline_mode<synchronous>, transform_indices = @transform_4, window_bounds = array<i64: 256, 1>}, {pipeline_mode = #tpu.pipeline_mode<synchronous>, transform_indices = @transform_5, window_bounds = array<i64: 256, 4>}, {pipeline_mode = #tpu.pipeline_mode<synchronous>, transform_indices = @transform_6, window_bounds = array<i64: 256, 16>}, {pipeline_mode = #tpu.pipeline_mode<synchronous>, transform_indices = @transform_7, window_bounds = array<i64: 256, 64>}, {transform_indices = @transform_8, window_bounds = array<i64: 1, 256, 16>}]} {
    %c0 = arith.constant 0 : index
    %c0_0 = arith.constant 0 : index
    %c0_1 = arith.constant 0 : index
    %0 = vector.load %arg1[%c0, %c0_0, %c0_1] : memref<1x256x8xbf16, #tpu.memory_space<vmem>>, vector<1x256x8xbf16>
    %1 = vector.shape_cast %0 : vector<1x256x8xbf16> to vector<256x8xbf16>
    %c0_2 = arith.constant 0 : index
    %c0_3 = arith.constant 0 : index
    %2 = vector.load %arg2[%c0_2, %c0_3] : memref<85x256xbf16, #tpu.memory_space<vmem>>, vector<85x256xbf16>
    %cst = arith.constant dense<0.000000e+00> : vector<85x8xf32>
    %3 = tpu.matmul %2, %1, %cst {dimension_numbers = #tpu.dot_dimension_numbers<[1], [0], [0], [1], [0, 0, 1, 1], [], []>} : vector<85x256xbf16>, vector<256x8xbf16>, vector<85x8xf32> -> vector<85x8xf32>
    %4 = arith.truncf %3 : vector<85x8xf32> to vector<85x8xbf16>
    %c0_4 = arith.constant 0 : index
    %c0_5 = arith.constant 0 : index
    %5 = vector.load %arg3[%c0_4, %c0_5] : memref<8x8xbf16, #tpu.memory_space<vmem>>, vector<8x8xbf16>
    %cst_6 = arith.constant dense<0.000000e+00> : vector<85x8xf32>
    %6 = tpu.matmul %4, %5, %cst_6 {dimension_numbers = #tpu.dot_dimension_numbers<[1], [0], [0], [1], [0, 0, 1, 1], [], []>} : vector<85x8xbf16>, vector<8x8xbf16>, vector<85x8xf32> -> vector<85x8xf32>
    %c0_7 = arith.constant 0 : index
    %c0_8 = arith.constant 0 : index
    %7 = vector.load %arg4[%c0_7, %c0_8] : memref<1x8xf32, #tpu.memory_space<vmem>>, vector<1x8xf32>
    %8 = vector.broadcast %7 : vector<1x8xf32> to vector<85x8xf32>
    %9 = arith.addf %6, %8 : vector<85x8xf32>
    %cst_9 = arith.constant 0.000000e+00 : f32
    %10 = vector.broadcast %cst_9 : f32 to vector<85x8xf32>
    %11 = arith.maximumf %9, %10 : vector<85x8xf32>
    %12 = arith.truncf %11 : vector<85x8xf32> to vector<85x8xbf16>
    %13 = vector.extract_strided_slice %12 {offsets = [0, 0], sizes = [1, 2], strides = [1, 1]} : vector<85x8xbf16> to vector<1x2xbf16>
    %14 = vector.shape_cast %13 : vector<1x2xbf16> to vector<1x2xbf16>
    %15 = vector.broadcast %14 : vector<1x2xbf16> to vector<256x2xbf16>
    %16 = vector.extract_strided_slice %12 {offsets = [1, 2], sizes = [4, 2], strides = [1, 1]} : vector<85x8xbf16> to vector<4x2xbf16>
    %c0_10 = arith.constant 0 : index
    %c0_11 = arith.constant 0 : index
    %17 = vector.load %arg6[%c0_10, %c0_11] : memref<256x4xbf16, #tpu.memory_space<vmem>>, vector<256x4xbf16>
    %cst_12 = arith.constant dense<0.000000e+00> : vector<256x2xf32>
    %18 = tpu.matmul %17, %16, %cst_12 {dimension_numbers = #tpu.dot_dimension_numbers<[1], [0], [0], [1], [0, 0, 1, 1], [], []>} : vector<256x4xbf16>, vector<4x2xbf16>, vector<256x2xf32> -> vector<256x2xf32>
    %19 = arith.truncf %18 : vector<256x2xf32> to vector<256x2xbf16>
    %20 = vector.extract_strided_slice %12 {offsets = [5, 4], sizes = [16, 2], strides = [1, 1]} : vector<85x8xbf16> to vector<16x2xbf16>
    %c0_13 = arith.constant 0 : index
    %c0_14 = arith.constant 0 : index
    %21 = vector.load %arg7[%c0_13, %c0_14] : memref<256x16xbf16, #tpu.memory_space<vmem>>, vector<256x16xbf16>
    %cst_15 = arith.constant dense<0.000000e+00> : vector<256x2xf32>
    %22 = tpu.matmul %21, %20, %cst_15 {dimension_numbers = #tpu.dot_dimension_numbers<[1], [0], [0], [1], [0, 0, 1, 1], [], []>} : vector<256x16xbf16>, vector<16x2xbf16>, vector<256x2xf32> -> vector<256x2xf32>
    %23 = arith.truncf %22 : vector<256x2xf32> to vector<256x2xbf16>
    %24 = vector.extract_strided_slice %12 {offsets = [21, 6], sizes = [64, 2], strides = [1, 1]} : vector<85x8xbf16> to vector<64x2xbf16>
    %c0_16 = arith.constant 0 : index
    %c0_17 = arith.constant 0 : index
    %25 = vector.load %arg8[%c0_16, %c0_17] : memref<256x64xbf16, #tpu.memory_space<vmem>>, vector<256x64xbf16>
    %cst_18 = arith.constant dense<0.000000e+00> : vector<256x2xf32>
    %26 = tpu.matmul %25, %24, %cst_18 {dimension_numbers = #tpu.dot_dimension_numbers<[1], [0], [0], [1], [0, 0, 1, 1], [], []>} : vector<256x64xbf16>, vector<64x2xbf16>, vector<256x2xf32> -> vector<256x2xf32>
    %27 = arith.truncf %26 : vector<256x2xf32> to vector<256x2xbf16>
    %28 = tpu.concatenate %1, %15, %19, %23, %27 in 1 : vector<256x8xbf16>, vector<256x2xbf16>, vector<256x2xbf16>, vector<256x2xbf16>, vector<256x2xbf16> -> vector<256x16xbf16>
    %c0_19 = arith.constant 0 : index
    %c0_20 = arith.constant 0 : index
    %c0_21 = arith.constant 0 : index
    %29 = vector.load %arg9[%c0_19, %c0_20, %c0_21] : memref<1x256x16xbf16, #tpu.memory_space<vmem>>, vector<1x256x16xbf16>
    %30 = vector.shape_cast %29 : vector<1x256x16xbf16> to vector<256x16xbf16>
    %31 = vector.shape_cast %28 : vector<256x16xbf16> to vector<1x256x16xbf16>
    tpu.vector_store %arg9[%c0_19, %c0_20, %c0_21], %31 {strides = array<i32>} : memref<1x256x16xbf16, #tpu.memory_space<vmem>>, vector<1x256x16xbf16>,
    return
  }
  func.func @transform_0(%arg0: i32) -> (i32, i32, i32) {
    %c0_i32 = arith.constant 0 : i32
    %c0_i32_0 = arith.constant 0 : i32
    %c0_i32_1 = arith.constant 0 : i32
    return %arg0, %c0_i32, %c0_i32_0 : i32, i32, i32
  }
  func.func @transform_1(%arg0: i32) -> (i32, i32) {
    %c0_i32 = arith.constant 0 : i32
    %c0_i32_0 = arith.constant 0 : i32
    %c0_i32_1 = arith.constant 0 : i32
    return %c0_i32, %c0_i32_0 : i32, i32
  }
  func.func @transform_2(%arg0: i32) -> (i32, i32) {
    %c0_i32 = arith.constant 0 : i32
    %c0_i32_0 = arith.constant 0 : i32
    %c0_i32_1 = arith.constant 0 : i32
    return %c0_i32, %c0_i32_0 : i32, i32
  }
  func.func @transform_3(%arg0: i32) -> (i32, i32) {
    %c0_i32 = arith.constant 0 : i32
    %c0_i32_0 = arith.constant 0 : i32
    %c0_i32_1 = arith.constant 0 : i32
    return %c0_i32, %c0_i32_0 : i32, i32
  }
  func.func @transform_4(%arg0: i32) -> (i32, i32) {
    %c0_i32 = arith.constant 0 : i32
    %c0_i32_0 = arith.constant 0 : i32
    %c0_i32_1 = arith.constant 0 : i32
    return %c0_i32, %c0_i32_0 : i32, i32
  }
  func.func @transform_5(%arg0: i32) -> (i32, i32) {
    %c0_i32 = arith.constant 0 : i32
    %c0_i32_0 = arith.constant 0 : i32
    %c0_i32_1 = arith.constant 0 : i32
    return %c0_i32, %c0_i32_0 : i32, i32
  }
  func.func @transform_6(%arg0: i32) -> (i32, i32) {
    %c0_i32 = arith.constant 0 : i32
    %c0_i32_0 = arith.constant 0 : i32
    %c0_i32_1 = arith.constant 0 : i32
    return %c0_i32, %c0_i32_0 : i32, i32
  }
  func.func @transform_7(%arg0: i32) -> (i32, i32) {
    %c0_i32 = arith.constant 0 : i32
    %c0_i32_0 = arith.constant 0 : i32
    %c0_i32_1 = arith.constant 0 : i32
    return %c0_i32, %c0_i32_0 : i32, i32
  }
  func.func @transform_8(%arg0: i32) -> (i32, i32, i32) {
    %c0_i32 = arith.constant 0 : i32
    %c0_i32_0 = arith.constant 0 : i32
    %c0_i32_1 = arith.constant 0 : i32
    return %arg0, %c0_i32, %c0_i32_0 : i32, i32, i32
  }
}

module attributes {stable_mosaic.version = 11 : i64} {
  func.func @kernel(%arg0: i32, %arg1: i32, %arg2: memref<1x8x18x16xbf16, #tpu.memory_space<vmem>>, %arg3: memref<1x2x18x16xbf16, #tpu.memory_space<vmem>>, %arg4: memref<3x16x6xbf16, #tpu.memory_space<vmem>>, %arg5: memref<1x2xf32, #tpu.memory_space<vmem>>, %arg6: memref<1x8x16x2xf32, #tpu.memory_space<vmem>>, %arg7: memref<8x16x2xf32, #tpu.memory_space<vmem>>) attributes {dimension_semantics = [#tpu.dimension_semantics<parallel>, #tpu.dimension_semantics<parallel>], iteration_bounds = array<i64: 2, 2>, scalar_prefetch = 0 : i64, scratch_operands = 1 : i64, tpu.core_type = #tpu.core_type<tc>, window_params = [{transform_indices = @transform_0, window_bounds = array<i64: 1, 8, 18, 16>}, {transform_indices = @transform_1, window_bounds = array<i64: 1, 2, 18, 16>}, {pipeline_mode = #tpu.pipeline_mode<synchronous>, transform_indices = @transform_2, window_bounds = array<i64: 3, 16, 6>}, {pipeline_mode = #tpu.pipeline_mode<synchronous>, transform_indices = @transform_3, window_bounds = array<i64: 1, 2>}, {transform_indices = @transform_4, window_bounds = array<i64: 1, 8, 16, 2>}]} {
    %c0 = arith.constant 0 : index
    %c0_0 = arith.constant 0 : index
    %c0_1 = arith.constant 0 : index
    %c0_2 = arith.constant 0 : index
    %0 = vector.load %arg2[%c0, %c0_0, %c0_1, %c0_2] : memref<1x8x18x16xbf16, #tpu.memory_space<vmem>>, vector<1x8x18x16xbf16>
    %1 = vector.shape_cast %0 : vector<1x8x18x16xbf16> to vector<8x18x16xbf16>
    %c0_3 = arith.constant 0 : index
    %c0_4 = arith.constant 0 : index
    %c0_5 = arith.constant 0 : index
    %2 = vector.load %arg4[%c0_3, %c0_4, %c0_5] : memref<3x16x6xbf16, #tpu.memory_space<vmem>>, vector<1x16x6xbf16>
    %3 = vector.shape_cast %2 : vector<1x16x6xbf16> to vector<16x6xbf16>
    "tpu.trace_start"() <{level = 10 : i32, message = "hwc,co->hwo"}> : () -> ()
    %cst = arith.constant dense<0.000000e+00> : vector<8x18x6xf32>
    %4 = tpu.matmul %1, %3, %cst {dimension_numbers = #tpu.dot_dimension_numbers<[2], [0], [0, 1], [1], [0, 0, 0, 1, 1, 1], [], []>} : vector<8x18x16xbf16>, vector<16x6xbf16>, vector<8x18x6xf32> -> vector<8x18x6xf32>
    "tpu.trace_stop"() : () -> ()
    %5 = vector.extract_strided_slice %4 {offsets = [0, 0, 0], sizes = [8, 16, 2], strides = [1, 1, 1]} : vector<8x18x6xf32> to vector<8x16x2xf32>
    %c0_6 = arith.constant 0 : index
    %c0_7 = arith.constant 0 : index
    %c0_8 = arith.constant 0 : index
    %6 = vector.load %arg7[%c0_6, %c0_7, %c0_8] : memref<8x16x2xf32, #tpu.memory_space<vmem>>, vector<8x16x2xf32>
    tpu.vector_store %arg7[%c0_6, %c0_7, %c0_8], %5 {strides = array<i32>} : memref<8x16x2xf32, #tpu.memory_space<vmem>>, vector<8x16x2xf32>,
    %7 = vector.extract_strided_slice %4 {offsets = [0, 1, 2], sizes = [8, 16, 2], strides = [1, 1, 1]} : vector<8x18x6xf32> to vector<8x16x2xf32>
    %c0_9 = arith.constant 0 : index
    %c0_10 = arith.constant 0 : index
    %c0_11 = arith.constant 0 : index
    %8 = vector.load %arg7[%c0_9, %c0_10, %c0_11] : memref<8x16x2xf32, #tpu.memory_space<vmem>>, vector<8x16x2xf32>
    %9 = arith.addf %8, %7 : vector<8x16x2xf32>
    %c0_12 = arith.constant 0 : index
    %c0_13 = arith.constant 0 : index
    %c0_14 = arith.constant 0 : index
    %10 = vector.load %arg7[%c0_12, %c0_13, %c0_14] : memref<8x16x2xf32, #tpu.memory_space<vmem>>, vector<8x16x2xf32>
    tpu.vector_store %arg7[%c0_12, %c0_13, %c0_14], %9 {strides = array<i32>} : memref<8x16x2xf32, #tpu.memory_space<vmem>>, vector<8x16x2xf32>,
    %11 = vector.extract_strided_slice %4 {offsets = [0, 2, 4], sizes = [8, 16, 2], strides = [1, 1, 1]} : vector<8x18x6xf32> to vector<8x16x2xf32>
    %c0_15 = arith.constant 0 : index
    %c0_16 = arith.constant 0 : index
    %c0_17 = arith.constant 0 : index
    %12 = vector.load %arg7[%c0_15, %c0_16, %c0_17] : memref<8x16x2xf32, #tpu.memory_space<vmem>>, vector<8x16x2xf32>
    %13 = arith.addf %12, %11 : vector<8x16x2xf32>
    %c0_18 = arith.constant 0 : index
    %c0_19 = arith.constant 0 : index
    %c0_20 = arith.constant 0 : index
    %14 = vector.load %arg7[%c0_18, %c0_19, %c0_20] : memref<8x16x2xf32, #tpu.memory_space<vmem>>, vector<8x16x2xf32>
    tpu.vector_store %arg7[%c0_18, %c0_19, %c0_20], %13 {strides = array<i32>} : memref<8x16x2xf32, #tpu.memory_space<vmem>>, vector<8x16x2xf32>,
    %c0_21 = arith.constant 0 : index
    %c1 = arith.constant 1 : index
    %c0_22 = arith.constant 0 : index
    %c0_23 = arith.constant 0 : index
    %15 = vector.load %arg2[%c0_21, %c1, %c0_22, %c0_23] : memref<1x8x18x16xbf16, #tpu.memory_space<vmem>>, vector<1x7x18x16xbf16>
    %16 = vector.shape_cast %15 : vector<1x7x18x16xbf16> to vector<7x18x16xbf16>
    %c1_24 = arith.constant 1 : index
    %c0_25 = arith.constant 0 : index
    %c0_26 = arith.constant 0 : index
    %17 = vector.load %arg4[%c1_24, %c0_25, %c0_26] : memref<3x16x6xbf16, #tpu.memory_space<vmem>>, vector<1x16x6xbf16>
    %18 = vector.shape_cast %17 : vector<1x16x6xbf16> to vector<16x6xbf16>
    "tpu.trace_start"() <{level = 10 : i32, message = "hwc,co->hwo"}> : () -> ()
    %cst_27 = arith.constant dense<0.000000e+00> : vector<7x18x6xf32>
    %19 = tpu.matmul %16, %18, %cst_27 {dimension_numbers = #tpu.dot_dimension_numbers<[2], [0], [0, 1], [1], [0, 0, 0, 1, 1, 1], [], []>} : vector<7x18x16xbf16>, vector<16x6xbf16>, vector<7x18x6xf32> -> vector<7x18x6xf32>
    "tpu.trace_stop"() : () -> ()
    %20 = vector.extract_strided_slice %19 {offsets = [0, 0, 0], sizes = [7, 16, 2], strides = [1, 1, 1]} : vector<7x18x6xf32> to vector<7x16x2xf32>
    %c0_28 = arith.constant 0 : index
    %c0_29 = arith.constant 0 : index
    %c0_30 = arith.constant 0 : index
    %21 = vector.load %arg7[%c0_28, %c0_29, %c0_30] : memref<8x16x2xf32, #tpu.memory_space<vmem>>, vector<7x16x2xf32>
    %22 = arith.addf %21, %20 : vector<7x16x2xf32>
    %c0_31 = arith.constant 0 : index
    %c0_32 = arith.constant 0 : index
    %c0_33 = arith.constant 0 : index
    %23 = vector.load %arg7[%c0_31, %c0_32, %c0_33] : memref<8x16x2xf32, #tpu.memory_space<vmem>>, vector<7x16x2xf32>
    tpu.vector_store %arg7[%c0_31, %c0_32, %c0_33], %22 {strides = array<i32>} : memref<8x16x2xf32, #tpu.memory_space<vmem>>, vector<7x16x2xf32>,
    %24 = vector.extract_strided_slice %19 {offsets = [0, 1, 2], sizes = [7, 16, 2], strides = [1, 1, 1]} : vector<7x18x6xf32> to vector<7x16x2xf32>
    %c0_34 = arith.constant 0 : index
    %c0_35 = arith.constant 0 : index
    %c0_36 = arith.constant 0 : index
    %25 = vector.load %arg7[%c0_34, %c0_35, %c0_36] : memref<8x16x2xf32, #tpu.memory_space<vmem>>, vector<7x16x2xf32>
    %26 = arith.addf %25, %24 : vector<7x16x2xf32>
    %c0_37 = arith.constant 0 : index
    %c0_38 = arith.constant 0 : index
    %c0_39 = arith.constant 0 : index
    %27 = vector.load %arg7[%c0_37, %c0_38, %c0_39] : memref<8x16x2xf32, #tpu.memory_space<vmem>>, vector<7x16x2xf32>
    tpu.vector_store %arg7[%c0_37, %c0_38, %c0_39], %26 {strides = array<i32>} : memref<8x16x2xf32, #tpu.memory_space<vmem>>, vector<7x16x2xf32>,
    %28 = vector.extract_strided_slice %19 {offsets = [0, 2, 4], sizes = [7, 16, 2], strides = [1, 1, 1]} : vector<7x18x6xf32> to vector<7x16x2xf32>
    %c0_40 = arith.constant 0 : index
    %c0_41 = arith.constant 0 : index
    %c0_42 = arith.constant 0 : index
    %29 = vector.load %arg7[%c0_40, %c0_41, %c0_42] : memref<8x16x2xf32, #tpu.memory_space<vmem>>, vector<7x16x2xf32>
    %30 = arith.addf %29, %28 : vector<7x16x2xf32>
    %c0_43 = arith.constant 0 : index
    %c0_44 = arith.constant 0 : index
    %c0_45 = arith.constant 0 : index
    %31 = vector.load %arg7[%c0_43, %c0_44, %c0_45] : memref<8x16x2xf32, #tpu.memory_space<vmem>>, vector<7x16x2xf32>
    tpu.vector_store %arg7[%c0_43, %c0_44, %c0_45], %30 {strides = array<i32>} : memref<8x16x2xf32, #tpu.memory_space<vmem>>, vector<7x16x2xf32>,
    %c0_46 = arith.constant 0 : index
    %c0_47 = arith.constant 0 : index
    %c0_48 = arith.constant 0 : index
    %c0_49 = arith.constant 0 : index
    %32 = vector.load %arg3[%c0_46, %c0_47, %c0_48, %c0_49] : memref<1x2x18x16xbf16, #tpu.memory_space<vmem>>, vector<1x1x18x16xbf16>
    %33 = vector.shape_cast %32 : vector<1x1x18x16xbf16> to vector<1x18x16xbf16>
    %c1_50 = arith.constant 1 : index
    %c0_51 = arith.constant 0 : index
    %c0_52 = arith.constant 0 : index
    %34 = vector.load %arg4[%c1_50, %c0_51, %c0_52] : memref<3x16x6xbf16, #tpu.memory_space<vmem>>, vector<1x16x6xbf16>
    %35 = vector.shape_cast %34 : vector<1x16x6xbf16> to vector<16x6xbf16>
    "tpu.trace_start"() <{level = 10 : i32, message = "hwc,co->hwo"}> : () -> ()
    %cst_53 = arith.constant dense<0.000000e+00> : vector<1x18x6xf32>
    %36 = tpu.matmul %33, %35, %cst_53 {dimension_numbers = #tpu.dot_dimension_numbers<[2], [0], [0, 1], [1], [0, 0, 0, 1, 1, 1], [], []>} : vector<1x18x16xbf16>, vector<16x6xbf16>, vector<1x18x6xf32> -> vector<1x18x6xf32>
    "tpu.trace_stop"() : () -> ()
    %c7 = arith.constant 7 : index
    %c0_54 = arith.constant 0 : index
    %c0_55 = arith.constant 0 : index
    %37 = vector.load %arg7[%c7, %c0_54, %c0_55] : memref<8x16x2xf32, #tpu.memory_space<vmem>>, vector<1x16x2xf32>
    %38 = vector.extract_strided_slice %36 {offsets = [0, 0, 0], sizes = [1, 16, 2], strides = [1, 1, 1]} : vector<1x18x6xf32> to vector<1x16x2xf32>
    %39 = arith.addf %37, %38 : vector<1x16x2xf32>
    %c7_56 = arith.constant 7 : index
    %c0_57 = arith.constant 0 : index
    %c0_58 = arith.constant 0 : index
    %40 = vector.load %arg7[%c7_56, %c0_57, %c0_58] : memref<8x16x2xf32, #tpu.memory_space<vmem>>, vector<1x16x2xf32>
    tpu.vector_store %arg7[%c7_56, %c0_57, %c0_58], %39 {strides = array<i32>} : memref<8x16x2xf32, #tpu.memory_space<vmem>>, vector<1x16x2xf32>,
    %c7_59 = arith.constant 7 : index
    %c0_60 = arith.constant 0 : index
    %c0_61 = arith.constant 0 : index
    %41 = vector.load %arg7[%c7_59, %c0_60, %c0_61] : memref<8x16x2xf32, #tpu.memory_space<vmem>>, vector<1x16x2xf32>
    %42 = vector.extract_strided_slice %36 {offsets = [0, 1, 2], sizes = [1, 16, 2], strides = [1, 1, 1]} : vector<1x18x6xf32> to vector<1x16x2xf32>
    %43 = arith.addf %41, %42 : vector<1x16x2xf32>
    %c7_62 = arith.constant 7 : index
    %c0_63 = arith.constant 0 : index
    %c0_64 = arith.constant 0 : index
    %44 = vector.load %arg7[%c7_62, %c0_63, %c0_64] : memref<8x16x2xf32, #tpu.memory_space<vmem>>, vector<1x16x2xf32>
    tpu.vector_store %arg7[%c7_62, %c0_63, %c0_64], %43 {strides = array<i32>} : memref<8x16x2xf32, #tpu.memory_space<vmem>>, vector<1x16x2xf32>,
    %c7_65 = arith.constant 7 : index
    %c0_66 = arith.constant 0 : index
    %c0_67 = arith.constant 0 : index
    %45 = vector.load %arg7[%c7_65, %c0_66, %c0_67] : memref<8x16x2xf32, #tpu.memory_space<vmem>>, vector<1x16x2xf32>
    %46 = vector.extract_strided_slice %36 {offsets = [0, 2, 4], sizes = [1, 16, 2], strides = [1, 1, 1]} : vector<1x18x6xf32> to vector<1x16x2xf32>
    %47 = arith.addf %45, %46 : vector<1x16x2xf32>
    %c7_68 = arith.constant 7 : index
    %c0_69 = arith.constant 0 : index
    %c0_70 = arith.constant 0 : index
    %48 = vector.load %arg7[%c7_68, %c0_69, %c0_70] : memref<8x16x2xf32, #tpu.memory_space<vmem>>, vector<1x16x2xf32>
    tpu.vector_store %arg7[%c7_68, %c0_69, %c0_70], %47 {strides = array<i32>} : memref<8x16x2xf32, #tpu.memory_space<vmem>>, vector<1x16x2xf32>,
    %c0_71 = arith.constant 0 : index
    %c2 = arith.constant 2 : index
    %c0_72 = arith.constant 0 : index
    %c0_73 = arith.constant 0 : index
    %49 = vector.load %arg2[%c0_71, %c2, %c0_72, %c0_73] : memref<1x8x18x16xbf16, #tpu.memory_space<vmem>>, vector<1x6x18x16xbf16>
    %50 = vector.shape_cast %49 : vector<1x6x18x16xbf16> to vector<6x18x16xbf16>
    %c2_74 = arith.constant 2 : index
    %c0_75 = arith.constant 0 : index
    %c0_76 = arith.constant 0 : index
    %51 = vector.load %arg4[%c2_74, %c0_75, %c0_76] : memref<3x16x6xbf16, #tpu.memory_space<vmem>>, vector<1x16x6xbf16>
    %52 = vector.shape_cast %51 : vector<1x16x6xbf16> to vector<16x6xbf16>
    "tpu.trace_start"() <{level = 10 : i32, message = "hwc,co->hwo"}> : () -> ()
    %cst_77 = arith.constant dense<0.000000e+00> : vector<6x18x6xf32>
    %53 = tpu.matmul %50, %52, %cst_77 {dimension_numbers = #tpu.dot_dimension_numbers<[2], [0], [0, 1], [1], [0, 0, 0, 1, 1, 1], [], []>} : vector<6x18x16xbf16>, vector<16x6xbf16>, vector<6x18x6xf32> -> vector<6x18x6xf32>
    "tpu.trace_stop"() : () -> ()
    %54 = vector.extract_strided_slice %53 {offsets = [0, 0, 0], sizes = [6, 16, 2], strides = [1, 1, 1]} : vector<6x18x6xf32> to vector<6x16x2xf32>
    %c0_78 = arith.constant 0 : index
    %c0_79 = arith.constant 0 : index
    %c0_80 = arith.constant 0 : index
    %55 = vector.load %arg7[%c0_78, %c0_79, %c0_80] : memref<8x16x2xf32, #tpu.memory_space<vmem>>, vector<6x16x2xf32>
    %56 = arith.addf %55, %54 : vector<6x16x2xf32>
    %c0_81 = arith.constant 0 : index
    %c0_82 = arith.constant 0 : index
    %c0_83 = arith.constant 0 : index
    %57 = vector.load %arg7[%c0_81, %c0_82, %c0_83] : memref<8x16x2xf32, #tpu.memory_space<vmem>>, vector<6x16x2xf32>
    tpu.vector_store %arg7[%c0_81, %c0_82, %c0_83], %56 {strides = array<i32>} : memref<8x16x2xf32, #tpu.memory_space<vmem>>, vector<6x16x2xf32>,
    %58 = vector.extract_strided_slice %53 {offsets = [0, 1, 2], sizes = [6, 16, 2], strides = [1, 1, 1]} : vector<6x18x6xf32> to vector<6x16x2xf32>
    %c0_84 = arith.constant 0 : index
    %c0_85 = arith.constant 0 : index
    %c0_86 = arith.constant 0 : index
    %59 = vector.load %arg7[%c0_84, %c0_85, %c0_86] : memref<8x16x2xf32, #tpu.memory_space<vmem>>, vector<6x16x2xf32>
    %60 = arith.addf %59, %58 : vector<6x16x2xf32>
    %c0_87 = arith.constant 0 : index
    %c0_88 = arith.constant 0 : index
    %c0_89 = arith.constant 0 : index
    %61 = vector.load %arg7[%c0_87, %c0_88, %c0_89] : memref<8x16x2xf32, #tpu.memory_space<vmem>>, vector<6x16x2xf32>
    tpu.vector_store %arg7[%c0_87, %c0_88, %c0_89], %60 {strides = array<i32>} : memref<8x16x2xf32, #tpu.memory_space<vmem>>, vector<6x16x2xf32>,
    %62 = vector.extract_strided_slice %53 {offsets = [0, 2, 4], sizes = [6, 16, 2], strides = [1, 1, 1]} : vector<6x18x6xf32> to vector<6x16x2xf32>
    %c0_90 = arith.constant 0 : index
    %c0_91 = arith.constant 0 : index
    %c0_92 = arith.constant 0 : index
    %63 = vector.load %arg7[%c0_90, %c0_91, %c0_92] : memref<8x16x2xf32, #tpu.memory_space<vmem>>, vector<6x16x2xf32>
    %64 = arith.addf %63, %62 : vector<6x16x2xf32>
    %c0_93 = arith.constant 0 : index
    %c0_94 = arith.constant 0 : index
    %c0_95 = arith.constant 0 : index
    %65 = vector.load %arg7[%c0_93, %c0_94, %c0_95] : memref<8x16x2xf32, #tpu.memory_space<vmem>>, vector<6x16x2xf32>
    tpu.vector_store %arg7[%c0_93, %c0_94, %c0_95], %64 {strides = array<i32>} : memref<8x16x2xf32, #tpu.memory_space<vmem>>, vector<6x16x2xf32>,
    %c0_96 = arith.constant 0 : index
    %c0_97 = arith.constant 0 : index
    %c0_98 = arith.constant 0 : index
    %c0_99 = arith.constant 0 : index
    %66 = vector.load %arg3[%c0_96, %c0_97, %c0_98, %c0_99] : memref<1x2x18x16xbf16, #tpu.memory_space<vmem>>, vector<1x2x18x16xbf16>
    %67 = vector.shape_cast %66 : vector<1x2x18x16xbf16> to vector<2x18x16xbf16>
    %c2_100 = arith.constant 2 : index
    %c0_101 = arith.constant 0 : index
    %c0_102 = arith.constant 0 : index
    %68 = vector.load %arg4[%c2_100, %c0_101, %c0_102] : memref<3x16x6xbf16, #tpu.memory_space<vmem>>, vector<1x16x6xbf16>
    %69 = vector.shape_cast %68 : vector<1x16x6xbf16> to vector<16x6xbf16>
    "tpu.trace_start"() <{level = 10 : i32, message = "hwc,co->hwo"}> : () -> ()
    %cst_103 = arith.constant dense<0.000000e+00> : vector<2x18x6xf32>
    %70 = tpu.matmul %67, %69, %cst_103 {dimension_numbers = #tpu.dot_dimension_numbers<[2], [0], [0, 1], [1], [0, 0, 0, 1, 1, 1], [], []>} : vector<2x18x16xbf16>, vector<16x6xbf16>, vector<2x18x6xf32> -> vector<2x18x6xf32>
    "tpu.trace_stop"() : () -> ()
    %c6 = arith.constant 6 : index
    %c0_104 = arith.constant 0 : index
    %c0_105 = arith.constant 0 : index
    %71 = vector.load %arg7[%c6, %c0_104, %c0_105] : memref<8x16x2xf32, #tpu.memory_space<vmem>>, vector<2x16x2xf32>
    %72 = vector.extract_strided_slice %70 {offsets = [0, 0, 0], sizes = [2, 16, 2], strides = [1, 1, 1]} : vector<2x18x6xf32> to vector<2x16x2xf32>
    %73 = arith.addf %71, %72 : vector<2x16x2xf32>
    %c6_106 = arith.constant 6 : index
    %c0_107 = arith.constant 0 : index
    %c0_108 = arith.constant 0 : index
    %74 = vector.load %arg7[%c6_106, %c0_107, %c0_108] : memref<8x16x2xf32, #tpu.memory_space<vmem>>, vector<2x16x2xf32>
    tpu.vector_store %arg7[%c6_106, %c0_107, %c0_108], %73 {strides = array<i32>} : memref<8x16x2xf32, #tpu.memory_space<vmem>>, vector<2x16x2xf32>,
    %c6_109 = arith.constant 6 : index
    %c0_110 = arith.constant 0 : index
    %c0_111 = arith.constant 0 : index
    %75 = vector.load %arg7[%c6_109, %c0_110, %c0_111] : memref<8x16x2xf32, #tpu.memory_space<vmem>>, vector<2x16x2xf32>
    %76 = vector.extract_strided_slice %70 {offsets = [0, 1, 2], sizes = [2, 16, 2], strides = [1, 1, 1]} : vector<2x18x6xf32> to vector<2x16x2xf32>
    %77 = arith.addf %75, %76 : vector<2x16x2xf32>
    %c6_112 = arith.constant 6 : index
    %c0_113 = arith.constant 0 : index
    %c0_114 = arith.constant 0 : index
    %78 = vector.load %arg7[%c6_112, %c0_113, %c0_114] : memref<8x16x2xf32, #tpu.memory_space<vmem>>, vector<2x16x2xf32>
    tpu.vector_store %arg7[%c6_112, %c0_113, %c0_114], %77 {strides = array<i32>} : memref<8x16x2xf32, #tpu.memory_space<vmem>>, vector<2x16x2xf32>,
    %c6_115 = arith.constant 6 : index
    %c0_116 = arith.constant 0 : index
    %c0_117 = arith.constant 0 : index
    %79 = vector.load %arg7[%c6_115, %c0_116, %c0_117] : memref<8x16x2xf32, #tpu.memory_space<vmem>>, vector<2x16x2xf32>
    %80 = vector.extract_strided_slice %70 {offsets = [0, 2, 4], sizes = [2, 16, 2], strides = [1, 1, 1]} : vector<2x18x6xf32> to vector<2x16x2xf32>
    %81 = arith.addf %79, %80 : vector<2x16x2xf32>
    %c6_118 = arith.constant 6 : index
    %c0_119 = arith.constant 0 : index
    %c0_120 = arith.constant 0 : index
    %82 = vector.load %arg7[%c6_118, %c0_119, %c0_120] : memref<8x16x2xf32, #tpu.memory_space<vmem>>, vector<2x16x2xf32>
    tpu.vector_store %arg7[%c6_118, %c0_119, %c0_120], %81 {strides = array<i32>} : memref<8x16x2xf32, #tpu.memory_space<vmem>>, vector<2x16x2xf32>,
    %c0_121 = arith.constant 0 : index
    %c0_122 = arith.constant 0 : index
    %c0_123 = arith.constant 0 : index
    %83 = vector.load %arg7[%c0_121, %c0_122, %c0_123] : memref<8x16x2xf32, #tpu.memory_space<vmem>>, vector<8x16x2xf32>
    %c0_124 = arith.constant 0 : index
    %c0_125 = arith.constant 0 : index
    %84 = vector.load %arg5[%c0_124, %c0_125] : memref<1x2xf32, #tpu.memory_space<vmem>>, vector<1x2xf32>
    %85 = vector.shape_cast %84 : vector<1x2xf32> to vector<1x1x2xf32>
    %86 = vector.broadcast %85 : vector<1x1x2xf32> to vector<8x16x2xf32>
    %87 = arith.addf %83, %86 : vector<8x16x2xf32>
    %cst_126 = arith.constant 0.000000e+00 : f32
    %88 = vector.broadcast %cst_126 : f32 to vector<8x16x2xf32>
    %89 = arith.maximumf %87, %88 : vector<8x16x2xf32>
    %c0_127 = arith.constant 0 : index
    %c0_128 = arith.constant 0 : index
    %c0_129 = arith.constant 0 : index
    %c0_130 = arith.constant 0 : index
    %90 = vector.load %arg6[%c0_127, %c0_128, %c0_129, %c0_130] : memref<1x8x16x2xf32, #tpu.memory_space<vmem>>, vector<1x8x16x2xf32>
    %91 = vector.shape_cast %90 : vector<1x8x16x2xf32> to vector<8x16x2xf32>
    %92 = vector.shape_cast %89 : vector<8x16x2xf32> to vector<1x8x16x2xf32>
    tpu.vector_store %arg6[%c0_127, %c0_128, %c0_129, %c0_130], %92 {strides = array<i32>} : memref<1x8x16x2xf32, #tpu.memory_space<vmem>>, vector<1x8x16x2xf32>,
    return
  }
  func.func @transform_0(%arg0: i32, %arg1: i32) -> (i32, i32, i32, i32) {
    %c0_i32 = arith.constant 0 : i32
    %c0_i32_0 = arith.constant 0 : i32
    %c0_i32_1 = arith.constant 0 : i32
    return %arg0, %arg1, %c0_i32, %c0_i32_0 : i32, i32, i32, i32
  }
  func.func @transform_1(%arg0: i32, %arg1: i32) -> (i32, i32, i32, i32) {
    %c1_i32 = arith.constant 1 : i32
    %0 = arith.addi %arg1, %c1_i32 : i32
    %c4_i32 = arith.constant 4 : i32
    %1 = arith.muli %0, %c4_i32 : i32
    %c0_i32 = arith.constant 0 : i32
    %c0_i32_0 = arith.constant 0 : i32
    %c0_i32_1 = arith.constant 0 : i32
    return %arg0, %1, %c0_i32, %c0_i32_0 : i32, i32, i32, i32
  }
  func.func @transform_2(%arg0: i32, %arg1: i32) -> (i32, i32, i32) {
    %c0_i32 = arith.constant 0 : i32
    %c0_i32_0 = arith.constant 0 : i32
    %c0_i32_1 = arith.constant 0 : i32
    %c0_i32_2 = arith.constant 0 : i32
    return %c0_i32, %c0_i32_0, %c0_i32_1 : i32, i32, i32
  }
  func.func @transform_3(%arg0: i32, %arg1: i32) -> (i32, i32) {
    %c0_i32 = arith.constant 0 : i32
    %c0_i32_0 = arith.constant 0 : i32
    %c0_i32_1 = arith.constant 0 : i32
    return %c0_i32, %c0_i32_0 : i32, i32
  }
  func.func @transform_4(%arg0: i32, %arg1: i32) -> (i32, i32, i32, i32) {
    %c0_i32 = arith.constant 0 : i32
    %c0_i32_0 = arith.constant 0 : i32
    %c0_i32_1 = arith.constant 0 : i32
    return %arg0, %arg1, %c0_i32, %c0_i32_0 : i32, i32, i32, i32
  }
}

</mosaic_0001>

<bundles_post_ra>
// kernel: _lambda_.2
= control target key start
LH: loop header
LB: loop body
LE: loop exit
PB: predicated region body
PF: predicated region fallthrough
CT: control target
= control target key end

     0   :  { %s4280_s0 = inlined_call_operand.hbm [shape: bf16[2,256,8], index: 0, kind: input, shape index: {}]   ;;  %s4281_s1 = inlined_call_operand.hbm [shape: bf16[85,256], index: 1, kind: input, shape index: {}]   ;;  %s4282_s2 = inlined_call_operand.hbm [shape: bf16[8,8], index: 2, kind: input, shape index: {}]   ;;  %s4283_s3 = inlined_call_operand.hbm [shape: f32[1,8], index: 3, kind: input, shape index: {}]   ;;  %s4284_s4 = inlined_call_operand.hbm [shape: bf16[256,1], index: 4, kind: input, shape index: {}]   ;;  %s4285_s5 = inlined_call_operand.hbm [shape: bf16[256,4], index: 5, kind: input, shape index: {}]   ;;  %s4286_s6 = inlined_call_operand.hbm [shape: bf16[256,16], index: 6, kind: input, shape index: {}]   ;;  %s4287_s7 = inlined_call_operand.hbm [shape: bf16[256,64], index: 7, kind: input, shape index: {}]   ;;  %s4288_s8 = inlined_call_operand.hbm [shape: bf16[2,256,16], index: 8, kind: output, shape index: {}]  }
   0x1   :  { %4292 = sst [smem:[#allocation23_spill]] %s4281_s1 }
   0x2   :  { %4293 = sst [smem:[#allocation24_spill]] %s4283_s3 }
   0x3   :  { %13 = vsyncpa [#allocation3], 0 }
   0x4   :  { %15 = vsyncpa [#allocation3 + $0x1], 0 }
   0x5   :  { %16 = vsyncpa [#allocation6], 0 }
   0x6   :  { %17 = vsyncpa [#allocation9], 0 }
   0x7   :  { %18 = vsyncpa [#allocation12], 0 }
   0x8   :  { %19 = vsyncpa [#allocation15], 0 }
   0x9   :  { %20 = vsyncpa [#allocation4], 0 }
   0xa   :  { %22 = vsyncpa [#allocation4 + $0x1], 0  ;;  %s3542_s27 = smov 0   ;;  %s3544_s28 = smov 0  }
   0xb   :  { %s3546_s29 = smov 0   ;;  %s3548_s30 = smov 0  }
   0xc LB: > { %s3475_s9 = smov [#allocation5]   ;;  %s3563_s11 = sadd.s32 4294967295, %s3473_s30   ;;  %s3473_s30 = sphi %s3548_s30, %s4319_s30   ;;  %s3469_s29 = sphi %s3546_s29, %s4318_s29   ;;  %s3465_s28 = sphi %s3544_s28, %s4317_s28   ;;  %s3461_s27 = sphi %s3542_s27, %s4316_s27  }
   0xd   : > { %s244_s10 = sshll.u32 %s3475_s9, 4  ;;  %p2509_p0 = scmp.ge.s32.totalorder %s3473_s30, 1  ;;  %s3568_s10 = int_to_ptr.vmem [resolvable:$true] %s244_s10 }
   0xe   : > { %p4289_p1 = scmp.eq.s32.totalorder %s3563_s11, 0  ;;  %p232_p2 = scmp.lt.s32.totalorder %s3473_s30, 3 }
   0xf   : > { %s3476_s13 = smov [#allocation8]   ;;  %s3477_s16 = smov [#allocation11]  }
  0x10   : > { %p3570_p3 = pnand %p2509_p0, %p232_p2  ;;  %s269_s14 = sshll.u32 %s3476_s13, 4  ;;  %s3583_s14 = int_to_ptr.vmem [resolvable:$true] %s269_s14 }
  0x11   : > { %s3585_s17 = sshll.u32 %s3477_s16, 4  ;;  %s4296_s1 = sld [smem:[#allocation23_spill]]  ;;  %s293_s17 = int_to_ptr.vmem [resolvable:$true] %s3585_s17 }
  0x12   : > { %s4294_s12 = scalar_select %p3570_p3, 1, 0 }
  0x13   : > { %p2970_p5 = pneg %p3570_p3 }
  0x15   : > { %p3579_p6 = pnand %p2970_p5, %p4289_p1 }
  0x17   : > { %s3165_s20 = scalar_lea.hbm %s4296_s1, 1408  ;;  %p3595_p8 = pneg %p3579_p6 }
  0x18   : > { %p3166_p7 = scmp.ne.s32.totalorder %s4296_s1, %s3165_s20  ;;  %p3172_p11 = scmp.lt.u32.totalorder %s3165_s20, %s4296_s1 }
  0x1a   : > { %p3168_p9 = pnand %p3595_p8, %p3166_p7 }
  0x1c   : > { %p3169_p10 = pneg %p3168_p9 }
  0x1e   : > { %p3174_p12 = pnand %p3172_p11, %p3169_p10 }
  0x20   : > { %3177 = shalt.err (!%p3174_p12)
}
  0x21   : > { %s3178_s26 = scalar_lea.vmem %s3568_s10, 1408  ;;  %p3186_p5 = scmp.lt.s32.totalorder %s3568_s10, %s3568_s10 }
  0x22   : > { %p3179_p13 = scmp.ne.s32.totalorder %s3568_s10, %s3178_s26  ;;  %p3187_p4 = scmp.lt.s32.totalorder %s3178_s26, %s3178_s26 }
  0x24   : > { %p3181_p0 = pnand %p3179_p13, %p3595_p8  ;;  %p3188_p7 = por %p3187_p4, %p3186_p5 }
  0x26   : > { %p3182_p2 = pneg %p3181_p0 }
  0x28   : > { %p3189_p9 = pnand %p3188_p7, %p3182_p2 }
  0x2a   : > { %3192 = shalt.err (!%p3189_p9)
}
  0x2b   : > { %s3478_s9 = smov 128   ;;  %s3479_s13 = smov 8  }
  0x2c   : > { %2973 = dma.hbm_to_vmem [thread:$0]  (!%p3579_p6), %s4296_s1, 1408, %s3568_s10, [#allocation6], %s3478_s9, %s3478_s9, %s3479_s13  }
  0x2d   : > { %s4298_s3 = sld [smem:[#allocation24_spill]] }
  0x33   : > { %s3193_s21 = scalar_lea.hbm %s4298_s3, 16 }
  0x34   : > { %p3194_p4 = scmp.ne.s32.totalorder %s4298_s3, %s3193_s21  ;;  %p3200_p12 = scmp.lt.u32.totalorder %s3193_s21, %s4298_s3 }
  0x36   : > { %p3196_p10 = pnand %p3194_p4, %p3595_p8 }
  0x38   : > { %p3197_p11 = pneg %p3196_p10 }
  0x3a   : > { %p3202_p13 = pnand %p3200_p12, %p3197_p11 }
  0x3c   : > { %3205 = shalt.err (!%p3202_p13)
}
  0x3d   : > { %s3206_s10 = scalar_lea.vmem %s3583_s14, 16  ;;  %s3213_s9 = scalar_lea.vmem %s3583_s14, 32 }
  0x3e   : > { %p3207_p0 = scmp.ne.s32.totalorder %s3583_s14, %s3206_s10  ;;  %p3214_p7 = scmp.lt.s32.totalorder %s3583_s14, %s3583_s14 }
  0x3f   : > { %p3215_p9 = scmp.lt.s32.totalorder %s3213_s9, %s3206_s10 }
  0x40   : > { %p3209_p2 = pnand %p3207_p0, %p3595_p8 }
  0x41   : > { %p3216_p4 = por %p3215_p9, %p3214_p7 }
  0x42   : > { %p3210_p5 = pneg %p3209_p2 }
  0x44   : > { %p3217_p10 = pnand %p3216_p4, %p3210_p5 }
  0x46   : > { %3220 = shalt.err (!%p3217_p10)
}
  0x47   : > { %2979 = dma.hbm_to_vmem [thread:$0]  (!%p3579_p6), %s4298_s3, 16, %s3583_s14, [#allocation9]  }
  0x48   : > { %s3221_s20 = scalar_lea.hbm %s4285_s5, 2048 }
  0x49   : > { %p3222_p11 = scmp.ne.s32.totalorder %s4285_s5, %s3221_s20  ;;  %p3228_p0 = scmp.lt.u32.totalorder %s3221_s20, %s4285_s5 }
  0x4b   : > { %p3224_p12 = pnand %p3222_p11, %p3595_p8 }
  0x4d   : > { %p3225_p13 = pneg %p3224_p12 }
  0x4f   : > { %p3230_p2 = pnand %p3228_p0, %p3225_p13 }
  0x51   : > { %3233 = shalt.err (!%p3230_p2)
}
  0x52   : > { %s3234_s26 = scalar_lea.vmem %s293_s17, 2048  ;;  %p3242_p4 = scmp.lt.s32.totalorder %s293_s17, %s293_s17 }
  0x53   : > { %p3235_p5 = scmp.ne.s32.totalorder %s293_s17, %s3234_s26  ;;  %p3243_p10 = scmp.lt.s32.totalorder %s3234_s26, %s3234_s26 }
  0x55   : > { %p3237_p7 = pnand %p3235_p5, %p3595_p8  ;;  %p3244_p1 = por %p3243_p10, %p3242_p4 }
  0x57   : > { %p3238_p9 = pneg %p3237_p7 }
  0x59   : > { %p3245_p3 = pnand %p3244_p1, %p3238_p9 }
  0x5b   : > { %3248 = shalt.err (!%p3245_p3)
}
  0x5c   : > { %s3480_s14 = smov 64   ;;  %s3481_s10 = smov 4  }
  0x5d   : > { %2985 = dma.hbm_to_vmem [thread:$0]  (!%p3579_p6), %s4285_s5, 2048, %s293_s17, [#allocation12], %s3480_s14, %s3480_s14, %s3481_s10  }
  0x5e   : > { %s3482_s16 = smov [#allocation7]   ;;  %s3483_s19 = smov [#allocation10]  }
  0x5f   : > { %s258_s18 = sshll.u32 %s3482_s16, 4  ;;  %s279_s20 = sshll.u32 %s3483_s19, 4  ;;  %s259_s18 = int_to_ptr.vmem [resolvable:$true] %s258_s18  ;;  %s280_s20 = int_to_ptr.vmem [resolvable:$true] %s279_s20 }
  0x60   : > { %s3249_s24 = scalar_lea.hbm %s4282_s2, 64 }
  0x61   : > { %p3250_p1 = scmp.ne.s32.totalorder %s4282_s2, %s3249_s24  ;;  %p3256_p12 = scmp.lt.u32.totalorder %s3249_s24, %s4282_s2 }
  0x63   : > { %p3252_p3 = pnand %p3250_p1, %p3595_p8 }
  0x65   : > { %p3253_p11 = pneg %p3252_p3 }
  0x67   : > { %p3258_p13 = pnand %p3256_p12, %p3253_p11 }
  0x69   : > { %3261 = shalt.err (!%p3258_p13)
}
  0x6a   : > { %s3262_s17 = scalar_lea.vmem %s259_s18, 64  ;;  %p3270_p7 = scmp.lt.s32.totalorder %s259_s18, %s259_s18 }
  0x6b   : > { %p3263_p0 = scmp.ne.s32.totalorder %s259_s18, %s3262_s17  ;;  %p3271_p9 = scmp.lt.s32.totalorder %s3262_s17, %s3262_s17 }
  0x6d   : > { %p3265_p2 = pnand %p3263_p0, %p3595_p8  ;;  %p3272_p4 = por %p3271_p9, %p3270_p7 }
  0x6f   : > { %p3266_p5 = pneg %p3265_p2 }
  0x71   : > { %p3273_p10 = pnand %p3272_p4, %p3266_p5 }
  0x73   : > { %3276 = shalt.err (!%p3273_p10)
}
  0x74   : > { %2976 = dma.hbm_to_vmem [thread:$0]  (!%p3579_p6), %s4282_s2, 64, %s259_s18, [#allocation6]  }
  0x75   : > { %s3277_s16 = scalar_lea.hbm %s4284_s4, 2048 }
  0x76   : > { %p3278_p1 = scmp.ne.s32.totalorder %s4284_s4, %s3277_s16  ;;  %p3284_p12 = scmp.lt.u32.totalorder %s3277_s16, %s4284_s4 }
  0x78   : > { %p3280_p3 = pnand %p3278_p1, %p3595_p8 }
  0x7a   : > { %p3281_p11 = pneg %p3280_p3 }
  0x7c   : > { %p3286_p13 = pnand %p3284_p12, %p3281_p11 }
  0x7e   : > { %3289 = shalt.err (!%p3286_p13)
}
  0x7f   : > { %s3290_s25 = scalar_lea.vmem %s280_s20, 2048  ;;  %p3298_p7 = scmp.lt.s32.totalorder %s280_s20, %s280_s20 }
  0x80   : > { %p3291_p0 = scmp.ne.s32.totalorder %s280_s20, %s3290_s25  ;;  %p3299_p9 = scmp.lt.s32.totalorder %s3290_s25, %s3290_s25 }
  0x82   : > { %p3293_p2 = pnand %p3291_p0, %p3595_p8  ;;  %p3300_p4 = por %p3299_p9, %p3298_p7 }
  0x84   : > { %p3294_p5 = pneg %p3293_p2 }
  0x86   : > { %p3301_p10 = pnand %p3300_p4, %p3294_p5 }
  0x88   : > { %3304 = shalt.err (!%p3301_p10)
}
  0x89   : > { %2982 = dma.hbm_to_vmem [thread:$0]  (!%p3579_p6), %s4284_s4, 2048, %s280_s20, [#allocation9], %s3480_s14, %s3480_s14, %s3481_s10  }
  0x8a   : > { %s3484_s17 = smov [#allocation13]   ;;  %s3485_s13 = smov [#allocation14]  }
  0x8b   : > { %s305_s9 = sshll.u32 %s3484_s17, 4  ;;  %s318_s1 = sshll.u32 %s3485_s13, 4  ;;  %s306_s9 = int_to_ptr.vmem [resolvable:$true] %s305_s9  ;;  %s319_s1 = int_to_ptr.vmem [resolvable:$true] %s318_s1 }
  0x8c   : > { %s3305_s19 = scalar_lea.hbm %s4286_s6, 2048 }
  0x8d   : > { %p3306_p1 = scmp.ne.s32.totalorder %s4286_s6, %s3305_s19  ;;  %p3312_p12 = scmp.lt.u32.totalorder %s3305_s19, %s4286_s6 }
  0x8f   : > { %p3308_p3 = pnand %p3306_p1, %p3595_p8 }
  0x91   : > { %p3309_p11 = pneg %p3308_p3 }
  0x93   : > { %p3314_p13 = pnand %p3312_p12, %p3309_p11 }
  0x95   : > { %3317 = shalt.err (!%p3314_p13)
}
  0x96   : > { %s3318_s20 = scalar_lea.vmem %s306_s9, 2048  ;;  %p3326_p7 = scmp.lt.s32.totalorder %s306_s9, %s306_s9 }
  0x97   : > { %p3319_p0 = scmp.ne.s32.totalorder %s306_s9, %s3318_s20  ;;  %p3327_p9 = scmp.lt.s32.totalorder %s3318_s20, %s3318_s20 }
  0x99   : > { %p3321_p2 = pnand %p3319_p0, %p3595_p8  ;;  %p3328_p4 = por %p3327_p9, %p3326_p7 }
  0x9b   : > { %p3322_p5 = pneg %p3321_p2 }
  0x9d   : > { %p3329_p10 = pnand %p3328_p4, %p3322_p5 }
  0x9f   : > { %3332 = shalt.err (!%p3329_p10)
}
  0xa0   : > { %2988 = dma.hbm_to_vmem [thread:$0]  (!%p3579_p6), %s4286_s6, 2048, %s306_s9, [#allocation12], %s3480_s14, %s3480_s14, %s3481_s10  }
  0xa1   : > { %s3333_s3 = scalar_lea.hbm %s4287_s7, 2048 }
  0xa2   : > { %p3334_p1 = scmp.ne.s32.totalorder %s4287_s7, %s3333_s3  ;;  %p3340_p12 = scmp.lt.u32.totalorder %s3333_s3, %s4287_s7 }
  0xa4   : > { %p3336_p3 = pnand %p3334_p1, %p3595_p8 }
  0xa6   : > { %p3337_p11 = pneg %p3336_p3 }
  0xa8   : > { %p3342_p13 = pnand %p3340_p12, %p3337_p11 }
  0xaa   : > { %3345 = shalt.err (!%p3342_p13)
}
  0xab   : > { %s3346_s24 = scalar_lea.vmem %s319_s1, 2048  ;;  %p3354_p7 = scmp.lt.s32.totalorder %s319_s1, %s319_s1 }
  0xac   : > { %p3347_p0 = scmp.ne.s32.totalorder %s319_s1, %s3346_s24  ;;  %p3355_p9 = scmp.lt.s32.totalorder %s3346_s24, %s3346_s24 }
  0xae   : > { %p3349_p2 = pnand %p3347_p0, %p3595_p8  ;;  %p3356_p4 = por %p3355_p9, %p3354_p7 }
  0xb0   : > { %p3350_p5 = pneg %p3349_p2 }
  0xb2   : > { %p3357_p10 = pnand %p3356_p4, %p3350_p5 }
  0xb4   : > { %3360 = shalt.err (!%p3357_p10)
}
  0xb5   : > { %2991 = dma.hbm_to_vmem [thread:$0]  (!%p3579_p6), %s4287_s7, 2048, %s319_s1, [#allocation15], %s3480_s14, %s3480_s14, %s3481_s10  }
  0xb6   : > { %s2508_s15 = sadd.s32 4294967294, %s3473_s30   ;;  %s3745_s23 = sadd.s32 1, %s3473_s30  }
  0xb7   : > { %s35_s20 = sadd.s32 1, %s3469_s29  ;;  %s32_s18 = ssub.s32 %s3473_s30, %s3745_s23 }
  0xb8   : > { %p42_p8 = scmp.ne.s32.totalorder %s3469_s29, %s3465_s28  ;;  %p33_p1 = scmp.eq.s32.totalorder %s32_s18, 0 }
  0xb9   : > { %p43_p3 = scmp.eq.s32.totalorder %s3473_s30, 0  ;;  %p48_p11 = scmp.ne.s32.totalorder %s3465_s28, %s3461_s27 }
  0xba   : > { %p219_p12 = scmp.eq.s32.totalorder %s3563_s11, 1  ;;  %p4299_p0 = scmp.eq.s32.totalorder %s3563_s11, 0 }
  0xbb   : > { %s3757_s26 = scalar_select %p33_p1, %s3469_s29, %s35_s20  }
  0xbc   : > { %p44_p13 = por %p43_p3, %p42_p8  ;;  %p3761_p2 = por %p4299_p0, %p48_p11 }
  0xbd   : > { %p3765_p6 = por %p219_p12, %p42_p8  ;;  %p225_p5 = scmp.eq.s32.totalorder %s2508_s15, 1 }
  0xbe   : > { %p3007_p7 = scmp.lt.s32.totalorder %s3473_s30, 2  ;;  %s332_s13 = sand.u32 1, %s3469_s29  }
  0xbf   : > { %s4301_s1 = scalar_select %p3765_p6, 1, 0 }
  0xc0   : > { %p3771_p9 = por %p225_p5, %p48_p11  ;;  %s2518_s16 = sshll.u32 %s332_s13, 7 }
  0xc1   : > { %s2699_s19 = sshll.u32 %s3473_s30, 11  ;;  %s336_s9 = scalar_lea.vmem [#allocation2], %s2518_s16 }
  0xc2   : > { %s4302_s3 = scalar_select %p3771_p9, 1, 0 }
  0xc3   : > { %s3779_s24 = scalar_lea.hbm %s4280_s0, %s2699_s19  ;;  %s343_s25 = sshll.u32 %s336_s9, 4  ;;  %s3785_s25 = int_to_ptr.vmem [resolvable:$true] %s343_s25 }
  0xc4   : > { %p3781_p4 = pnand %p3007_p7, %p44_p13  ;;  %s3787_s20 = scalar_lea.sflag [#allocation3], %s332_s13 }
  0xc5   : > { %s3361_s18 = scalar_lea.hbm %s3779_s24, 2048  ;;  %s3366_s21 = scalar_lea.hbm %s4280_s0, 4096 }
  0xc6   : > { %p3362_p10 = scmp.ne.s32.totalorder %s3779_s24, %s3361_s18  ;;  %p3363_p8 = pneg %p3781_p4 }
  0xc7   : > { %p3367_p11 = scmp.lt.u32.totalorder %s3779_s24, %s4280_s0  ;;  %p3368_p12 = scmp.lt.u32.totalorder %s3366_s21, %s3361_s18 }
  0xc8   : > { %p3364_p1 = pnand %p3363_p8, %p3362_p10  ;;  %p3370_p0 = scmp.lt.u32.totalorder %s3361_s18, %s3779_s24 }
  0xc9   : > { %p3369_p13 = por %p3368_p12, %p3367_p11 }
  0xca   : > { %p3365_p3 = pneg %p3364_p1 }
  0xcb   : > { %p3371_p5 = por %p3370_p0, %p3369_p13 }
  0xcd   : > { %p3372_p7 = pnand %p3371_p5, %p3365_p3 }
  0xcf   : > { %3375 = shalt.err (!%p3372_p7)
}
  0xd0   : > { %s3376_s13 = scalar_lea.vmem %s3785_s25, 2048  ;;  %s3486_s16 = smov [#allocation2]  }
  0xd1   : > { %p3377_p10 = scmp.ne.s32.totalorder %s3785_s25, %s3376_s13  ;;  %s3381_s19 = sshll.u32 %s3486_s16, 4  ;;  %s3382_s19 = int_to_ptr.vmem [resolvable:$false] %s3381_s19 }
  0xd2   : > { %s3383_s22 = scalar_lea.vmem %s3382_s19, 4096  ;;  %p3384_p6 = scmp.lt.s32.totalorder %s3785_s25, %s3382_s19 }
  0xd3   : > { %p3379_p1 = pnand %p3377_p10, %p3363_p8  ;;  %p3385_p11 = scmp.lt.s32.totalorder %s3383_s22, %s3376_s13 }
  0xd5   : > { %p3380_p9 = pneg %p3379_p1  ;;  %p3386_p12 = por %p3385_p11, %p3384_p6 }
  0xd7   : > { %p3387_p13 = pnand %p3386_p12, %p3380_p9 }
  0xd9   : > { %3390 = shalt.err (!%p3387_p13)
}
  0xda   : > { %2995 = dma.hbm_to_vmem [thread:$0]  (!%p3781_p4), %s3779_s24, 2048, %s3785_s25, %s3787_s20, %s3480_s14, %s3480_s14, %s3481_s10  }
  0xdb   : > { %p4304_p8 = scmp.ne.s32.totalorder %s4294_s12, 0 }
  0xdc   : > { %s3821_s18 = sand.u32 (!%p4304_p8), 1, %s3465_s28  }
  0xdd   : > { %355 = sbr.rel (%p4304_p8) target bundleno = 1318 (0x526), region = 52  ;;  %s2522_s21 = sshll.u32 (!%p4304_p8), %s3821_s18, 7 }
  0xde   : > { %s358_s9 = scalar_lea.sflag (!%p4304_p8), [#allocation3], %s3821_s18  ;;  %s3827_s15 = scalar_lea.vmem (!%p4304_p8), [#allocation2], %s2522_s21 }
  0xe4   : > { %3436 = dma.done.wait (%p3761_p2), %s358_s9, 2048  }
  0xe5   : > { %3438 = vsyncadd (%p3761_p2), %s358_s9, 4294965248  ;;  %p4305_p6 = scmp.eq.s32.totalorder %s3563_s11, 0 }
  0xe7   : > { %3440 = dma.done.wait (%p4305_p6), [#allocation6], 1472   ;;  %p4306_p9 = pmov %p4305_p6 }
  0xe8   : > { %p4307_p4 = pmov %p4305_p6 }
  0xe9   : > { %3442 = vsyncadd (%p4306_p9), [#allocation6], 4294965824 }
  0xea   : > { %3444 = dma.done.wait (%p4307_p4), [#allocation9], 2064   ;;  %p4308_p3 = pmov %p4307_p4 }
  0xec   : > { %3446 = vsyncadd (%p4308_p3), [#allocation9], 4294965232  ;;  %p4309_p0 = pmov %p4308_p3 }
  0xee   : > { %3448 = dma.done.wait (%p4309_p0), [#allocation12], 4096   ;;  %p4310_p5 = pmov %p4309_p0 }
  0xef   : > { %p4311_p2 = pmov %p4309_p0 }
  0xf0   : > { %3450 = vsyncadd (%p4310_p5), [#allocation12], 4294963200 }
  0xf1   : > { %3452 = dma.done.wait (%p4311_p2), [#allocation15], 2048   ;;  %p4312_p7 = pmov %p4309_p0 }
  0xf2   : > { %v3068_v0 = vld [vmem:[%s3827_s15 + $0x40] sm:$0xff]   ;;  %v3070_v2 = vld [vmem:[%s3827_s15 + $0x48] sm:$0xff]   ;;  %v3072_v4 = vld [vmem:[%s3827_s15 + $0x50] sm:$0xff]   ;;  %vm732_vm0 = vcmask 1043456   ;;  %vm713_vm1 = vcmask 64512   ;;  %vm960_vm2 = vcmask 31744  }
  0xf3   : > { %3454 = vsyncadd (%p4312_p7), [#allocation15], 4294965248  ;;  %v3069_v1 = vld [vmem:[%s3827_s15] sm:$0xff]   ;;  %2701 = vmatprep.subr.bf16.mxu0 %v3068_v0  ;;  %v3071_v3 = vld [vmem:[%s3827_s15 + $0x8] sm:$0xff]   ;;  %vm1302_vm3 = vsmask.f32 5376 }
  0xf4   : > { %2702 = vmatpush3.bf16.msra.mxu0 %v3069_v1  ;;  %v3073_v5 = vld [vmem:[%s3827_s15 + $0x10] sm:$0xff]   ;;  %v3074_v6 = vld [vmem:[%s3827_s15 + $0x58] sm:$0xff]   ;;  %v3076_v8 = vld [vmem:[%s3827_s15 + $0x60] sm:$0xff]   ;;  %s3487_s12 = smov 126   ;;  %vm1318_vm4 = vcmask 130048   ;;  %s3488_s14 = smov 122  }
  0xf5   : > { %2703 = vmatprep.subr.bf16.mxu0 %v3070_v2  ;;  %v3075_v7 = vld [vmem:[%s3827_s15 + $0x18] sm:$0xff]   ;;  %v3077_v9 = vld [vmem:[%s3827_s15 + $0x20] sm:$0xff]   ;;  %v3078_v10 = vld [vmem:[%s3827_s15 + $0x68] sm:$0xff]   ;;  %s3489_s10 = smov 124   ;;  %s3490_s17 = smov 8   ;;  %vm1009_vm5 = vcmask 1041408  }
  0xf6   : > { %v3086_v11 = vld [vmem:[#allocation5 + $0x4] ss:$8 sps:$4 sm:$0xff]   ;;  %v3080_v13 = vld [vmem:[%s3827_s15 + $0x70] sm:$0xff]   ;;  %v3082_v15 = vld [vmem:[%s3827_s15 + $0x78] sm:$0xff]   ;;  %vm1704_vm6 = vcmask 523264   ;;  %s3491_s24 = smov 10  }
  0xf7   : > { %v3079_v12 = vld [vmem:[%s3827_s15 + $0x28] sm:$0xff]   ;;  %651 = vmatprep.mubr.bf16.mxu0 %v3086_v11  ;;  %v3081_v14 = vld [vmem:[%s3827_s15 + $0x30] sm:$0xff]   ;;  %v3083_v16 = vld [vmem:[%s3827_s15 + $0x38] sm:$0xff]   ;;  %s3492_s25 = smov 12   ;;  %s3493_s20 = smov 14   ;;  %vm2110_vm7 = vcmask 80896  }
  0xf8   : > { %2704 = vmatpush3.bf16.msra.mxu0 %v3071_v3  ;;  %v3084_v17 = vld [vmem:[#allocation5] ss:$8 sps:$4 sm:$0xff]   ;;  %v3087_v18 = vld [vmem:[#allocation5 + $0x14] ss:$8 sps:$4 sm:$0xff]   ;;  %v3089_v19 = vld [vmem:[#allocation5 + $0x10] ss:$8 sps:$4 sm:$0xff]  }
  0xf9   : > { %2705 = vmatprep.subr.bf16.mxu0 %v3072_v4  ;;  %v3090_v20 = vld [vmem:[#allocation5 + $0x24] ss:$8 sps:$4 sm:$0xff]   ;;  %v3092_v21 = vld [vmem:[#allocation5 + $0x20] ss:$8 sps:$4 sm:$0xff]   ;;  %v3093_v22 = vld [vmem:[#allocation5 + $0x34] ss:$8 sps:$4 sm:$0xff]  }
  0xfa   : > { %v3095_v23 = vld [vmem:[#allocation5 + $0x30] ss:$8 sps:$4 sm:$0xff]   ;;  %v3096_v24 = vld [vmem:[#allocation5 + $0x44] ss:$8 sps:$4 sm:$0xff]   ;;  %v3098_v26 = vld [vmem:[#allocation5 + $0x40] ss:$8 sps:$4 sm:$0xff]  }
  0xfb   : > { %v465_v25 = vld [vmem:[#allocation5 + $0x50] sm:$0x77]  ;;  %v705_v29 = vld [vmem:[#allocation7] sm:$0xf]  ;;  %vm2143_vm8 = vcmask 97280   ;;  %vm2176_vm9 = vcmask 113664  }
  0xfc   : > { %2706 = vmatpush3.bf16.msra.mxu0 %v3073_v5  ;;  %v2542_v27 = vcombine.high %v465_v25, %v465_v25  ;;  %v2541_v28 = vcombine.low %v465_v25, %v465_v25  ;;  %2936 = vmatprep.subr.msk.bf16.mxu1 %vm732_vm0, %v705_v29  ;;  %v734_v30 = vsel %vm732_vm0, %v705_v29, 0  ;;  %vm2321_vm10 = vcmask 125952   ;;  %s4064_s13 = scalar_lea.vmem [#allocation16], %s2522_s21  ;;  %s2700_s16 = sshll.u32 %s3563_s11, 11 }
  0xfd   : > { %2707 = vmatprep.subr.bf16.mxu0 %v3074_v6  ;;  %2815 = vmatpush3.bf16.msra.mxu1 %v734_v30  ;;  %s2368_s19 = sshll.u32 %s4064_s13, 4  ;;  %s4226_s21 = scalar_lea.hbm %s4288_s8, %s2700_s16  ;;  %s4228_s19 = int_to_ptr.vmem [resolvable:$true] %s2368_s19 }
  0xfe   : > { %s2355_s9 = scalar_lea.sflag [#allocation4], %s3821_s18  ;;  %p4313_p1 = scmp.ne.s32.totalorder %s4301_s1, 0 }
 0x100   : > { %2708 = vmatpush3.bf16.msra.mxu0 %v3075_v7 }
 0x101   : > { %2709 = vmatprep.subr.bf16.mxu0 %v3076_v8  ;;  %v3871_v8 = vld [vmem:[#allocation8] ss:$0 sm:$0xff] }
 0x104   : > { %2710 = vmatpush3.bf16.msra.mxu0 %v3077_v9 }
 0x105   : > { %2711 = vmatprep.subr.bf16.mxu0 %v3078_v10 }
 0x108   : > { %2712 = vmatpush3.bf16.msra.mxu0 %v3079_v12 }
 0x109   : > { %2713 = vmatprep.subr.bf16.mxu0 %v3080_v13 }
 0x10c   : > { %2714 = vmatpush3.bf16.msra.mxu0 %v3081_v14 }
 0x10d   : > { %2715 = vmatprep.subr.bf16.mxu0 %v3082_v15 }
 0x110   : > { %2716 = vmatpush3.bf16.msra.mxu0 %v3083_v16 }
 0x113   : > { %652 = vmatmul.mubr.bf16.vlgmr.msra.gmra.mrb[0].mxu0 %v3084_v17  ;;  %v3101_v17 = vld [vmem:[#allocation11] sm:$0xff]  }
 0x114   : > { %659 = vmatprep.mubr.bf16.mxu0 %v3087_v18 }
 0x11b   : > { %660 = vmatmul.mubr.bf16.gmra.mrb[4].mxu0 %v3089_v19 }
 0x11c   : > { %667 = vmatprep.mubr.bf16.mxu0 %v3090_v20 }
 0x123   : > { %668 = vmatmul.mubr.bf16.gmra.mrb[8].mxu0 %v3092_v21 }
 0x124   : > { %675 = vmatprep.mubr.bf16.mxu0 %v3093_v22 }
 0x12b   : > { %676 = vmatmul.mubr.bf16.gmra.mrb[12].mxu0 %v3095_v23 }
 0x12c   : > { %683 = vmatprep.mubr.bf16.mxu0 %v3096_v24 }
 0x133   : > { %684 = vmatmul.mubr.bf16.gmra.mrb[16].mxu0 %v3098_v26 }
 0x134   : > { %691 = vmatprep.mubr.bf16.mxu0 %v2542_v27 }
 0x13b   : > { %692 = vmatmul.mubr.bf16.gmra.mrb[20].mxu0 %v2541_v28 }
 0x1e6   : > { %v2717_v31 = vpop.f32.mrb[0].mxu0 }
 0x1e7   : > { %v2718_v32 = vpop.f32.mrb[1].mxu0 }
 0x1e8   : > { %v2719_v33 = vadd.f32 %v2718_v32, %v2717_v31  ;;  %v2720_v34 = vpop.f32.mrb[2].mxu0 }
 0x1e9   : > { %v2721_v35 = vpop.f32.mrb[3].mxu0 }
 0x1ea   : > { %v2722_v36 = vadd.f32 %v2721_v35, %v2720_v34 }
 0x1ec   : > { %v699_v37 = vpack.c.bf16 %v2722_v36, %v2719_v33 }
 0x1ee   : > { %v2723_v38 = vpop.f32.mrb[4].mxu0  ;;  %2816 = vmatprep.mubr.msk.bf16.mxu1 %vm713_vm1, %v699_v37 }
 0x1ef   : > { %v2724_v39 = vpop.f32.mrb[5].mxu0 }
 0x1f0   : > { %v2725_v40 = vadd.f32 %v2724_v39, %v2723_v38  ;;  %v2726_v41 = vpop.f32.mrb[6].mxu0 }
 0x1f1   : > { %v2727_v42 = vpop.f32.mrb[7].mxu0 }
 0x1f2   : > { %v2728_v43 = vadd.f32 %v2727_v42, %v2726_v41 }
 0x1f4   : > { %v700_v44 = vpack.c.bf16 %v2728_v43, %v2725_v40 }
 0x1f6   : > { %v2729_v45 = vpop.f32.mrb[8].mxu0  ;;  %2817 = vmatmul.mubr.msk.bf16.vlgmr.msra.gmra.mrb[0].mxu1 %vm713_vm1, %v700_v44 }
 0x1f7   : > { %v2730_v46 = vpop.f32.mrb[9].mxu0 }
 0x1f8   : > { %v2731_v47 = vadd.f32 %v2730_v46, %v2729_v45  ;;  %v2732_v48 = vpop.f32.mrb[10].mxu0 }
 0x1f9   : > { %v2733_v49 = vpop.f32.mrb[11].mxu0 }
 0x1fa   : > { %v2734_v50 = vadd.f32 %v2733_v49, %v2732_v48 }
 0x1fc   : > { %v701_v51 = vpack.c.bf16 %v2734_v50, %v2731_v47 }
 0x1fe   : > { %v2735_v52 = vpop.f32.mrb[12].mxu0  ;;  %2820 = vmatprep.mubr.msk.bf16.mxu1 %vm713_vm1, %v701_v51 }
 0x1ff   : > { %v2736_v53 = vpop.f32.mrb[13].mxu0 }
 0x200   : > { %v2737_v54 = vadd.f32 %v2736_v53, %v2735_v52  ;;  %v2738_v55 = vpop.f32.mrb[14].mxu0  ;;  %v3107_v53 = vld [vmem:[#allocation13] sm:$0xff]  }
 0x201   : > { %v2739_v56 = vpop.f32.mrb[15].mxu0  ;;  %2864 = vmatprep.mubr.msk.bf16.mxu0 %vm1318_vm4, %v3107_v53  ;;  %v3121_v53 = vld [vmem:[#allocation11 + $0x60] sm:$0xff]  }
 0x202   : > { %v2740_v57 = vadd.f32 %v2739_v56, %v2738_v55 }
 0x204   : > { %v702_v58 = vpack.c.bf16 %v2740_v57, %v2737_v54 }
 0x206   : > { %2821 = vmatmul.mubr.msk.bf16.gmra.mrb[4].mxu1 %vm713_vm1, %v702_v58  ;;  %v2741_v59 = vpop.f32.mrb[16].mxu0  ;;  %v836_v58 = vlaneseq }
 0x207   : > { %v2742_v60 = vpop.f32.mrb[17].mxu0 }
 0x208   : > { %v2743_v61 = vadd.f32 %v2742_v60, %v2741_v59  ;;  %v2744_v62 = vpop.f32.mrb[18].mxu0 }
 0x209   : > { %v2745_v63 = vpop.f32.mrb[19].mxu0 }
 0x20a   : > { %v2746_v0 = vadd.f32 %v2745_v63, %v2744_v62 }
 0x20c   : > { %v703_v1 = vpack.c.bf16 %v2746_v0, %v2743_v61 }
 0x20e   : > { %v2747_v2 = vpop.f32.mrb[20].mxu0  ;;  %2824 = vmatprep.mubr.msk.bf16.mxu1 %vm713_vm1, %v703_v1 }
 0x20f   : > { %v2748_v3 = vpop.f32.mrb[21].mxu0 }
 0x210   : > { %v2749_v4 = vadd.f32 %v2748_v3, %v2747_v2  ;;  %v2750_v5 = vpop.f32.mrb[22].mxu0  ;;  %v837_v2 = vshrl.u32 %v836_v58, 7  ;;  %v3124_v58 = vld [vmem:[#allocation13 + $0x48] sm:$0xff]  }
 0x211   : > { %v2751_v6 = vpop.f32.mrb[23].mxu0 }
 0x212   : > { %v704_v7 = vpack.c.bf16 %v2749_v4, %v2749_v4 }
 0x214   : > { %2825 = vmatmul.mubr.msk.bf16.gmra.mrb[8].mxu1 %vm713_vm1, %v704_v7 }
 0x215   : > { %2830 = vmatprep.mubr.msk.bf16.mxu1 %vm960_vm2, %v3101_v17 }
 0x2c9   : > { %v2818_v9 = vpop.f32.mrb[0].mxu1 }
 0x2ca   : > { %v779_v10 = vadd.f32 %v2818_v9, %v3871_v8  ;;  %v770_v11 = vpop.f32.mrb[1].mxu1 }
 0x2cb   : > { %v771_v12 = vadd.f32 %v3871_v8, %v770_v11  ;;  %v2819_v13 = vpop.f32.mrb[2].mxu1 }
 0x2cc   : > { %v782_v14 = vadd.f32 %v2819_v13, %v3871_v8  ;;  %v773_v15 = vpop.f32.mrb[3].mxu1  ;;  %v818_v18 = vmax.f32 %v779_v10, 0.0 }
 0x2cd   : > { %v774_v16 = vadd.f32 %v3871_v8, %v773_v15  ;;  %v816_v20 = vmax.f32 %v771_v12, 0.0 }
 0x2ce   : > { %v819_v19 = vmax.f32 %v782_v14, 0.0  ;;  %v838_v14 = vsub.s32 0, %v837_v2  ;;  %v3132_v2 = vld [vmem:[#allocation13 + $0x68] sm:$0xff]  }
 0x2cf   : > { %v817_v21 = vmax.f32 %v774_v16, 0.0 }
 0x2d0   : > { %v828_v22 = vpack.c.bf16 %v819_v19, %v818_v18 }
 0x2d1   : > { %v3878_v23 = vpack.c.bf16 %v817_v21, %v816_v20 }
 0x2d2   : > { %v1307_v24 = vshrl.u32 %v828_v22, 16  ;;  %v1310_v25 = vshll.u32 %v828_v22, 16 }
 0x2d3   : > { %v952_v26 = vshrl.u32 %v3878_v23, 16  ;;  %v954_v27 = vshll.u32 %v3878_v23, 16  ;;  %v834_v13 = vpack.i.b16 %v3878_v23, %v3878_v23 }
 0x2d4   : > { %v1309_v28 = vrot.slane %v1307_v24, 2  ;;  %v1312_v29 = vrot.slane %v1310_v25, 3 }
 0x2d5   : > { %v956_v30 = vrot.slane %v954_v27, 1  ;;  %v1303_v31 = vrot.slane %v952_v26, 2  ;;  %v1304_v32 = vrot.slane %v954_v27, 3  ;;  %v839_v21 = vrot.slane %v834_v13, %v838_v14  ;;  %v3143_v13 = vld [vmem:[#allocation14 + $0x50] sm:$0xff]   ;;  %v3144_v14 = vld [vmem:[#allocation14 + $0x58] sm:$0xff]  }
 0x2d6   : > { %v1313_v33 = vor.u32 %v1312_v29, %v1309_v28 }
 0x2d7   : > { %v957_v34 = vor.u32 %v956_v30, %v952_v26  ;;  %v1305_v35 = vor.u32 %v1304_v32, %v1303_v31  ;;  %v3102_v31 = vld [vmem:[#allocation11 + $0x8] sm:$0xff]   ;;  %v3103_v32 = vld [vmem:[#allocation11 + $0x10] sm:$0xff]  }
 0x2d9   : > { %v2822_v36 = vpop.f32.mrb[4].mxu1  ;;  %958 = vrot.lane.b32.xlu0 %v957_v34, %s3487_s12  ;;  %v1314_v37 = vsel %vm1302_vm3, %v1305_v35, %v1313_v33  ;;  %v3105_v34 = vld [vmem:[#allocation11 + $0x20] sm:$0xff]   ;;  %s3494_s12 = smov [#allocation16]  }
 0x2da   : > { %v795_v38 = vadd.f32 %v2822_v36, %v3871_v8  ;;  %v786_v39 = vpop.f32.mrb[5].mxu1 }
 0x2db   : > { %v787_v40 = vadd.f32 %v3871_v8, %v786_v39  ;;  %v2823_v41 = vpop.f32.mrb[6].mxu1 }
 0x2dc   : > { %v822_v42 = vmax.f32 %v795_v38, 0.0  ;;  %v798_v43 = vadd.f32 %v2823_v41, %v3871_v8  ;;  %v789_v44 = vpop.f32.mrb[7].mxu1  ;;  %v3109_v38 = vld [vmem:[#allocation11 + $0x30] sm:$0xff]  }
 0x2dd   : > { %v820_v45 = vmax.f32 %v787_v40, 0.0  ;;  %v790_v46 = vadd.f32 %v3871_v8, %v789_v44  ;;  %v3108_v40 = vld [vmem:[#allocation13 + $0x8] sm:$0xff]   ;;  %v3111_v41 = vld [vmem:[#allocation13 + $0x10] sm:$0xff]   ;;  %v3112_v44 = vld [vmem:[#allocation13 + $0x18] sm:$0xff]  }
 0x2de   : > { %v823_v47 = vmax.f32 %v798_v43, 0.0  ;;  %v3113_v43 = vld [vmem:[#allocation11 + $0x40] sm:$0xff]  }
 0x2df   : > { %v821_v48 = vmax.f32 %v790_v46, 0.0  ;;  %v3115_v46 = vld [vmem:[#allocation13 + $0x20] sm:$0xff]  }
 0x2e0   : > { %v830_v49 = vpack.c.bf16 %v823_v47, %v822_v42  ;;  %v3110_v42 = vld [vmem:[#allocation11 + $0x38] sm:$0xff]   ;;  %v3114_v47 = vld [vmem:[#allocation11 + $0x48] sm:$0xff]  }
 0x2e1   : > { %v829_v50 = vpack.c.bf16 %v821_v48, %v820_v45  ;;  %v3117_v48 = vld [vmem:[#allocation11 + $0x50] sm:$0xff]  }
 0x2e2   : > { %v1666_v51 = vshrl.u32 %v830_v49, 16  ;;  %v1669_v52 = vshll.u32 %v830_v49, 16 }
 0x2e3   : > { %v1657_v54 = vshrl.u32 %v829_v50, 16  ;;  %v1660_v55 = vshll.u32 %v829_v50, 16  ;;  %v3116_v50 = vld [vmem:[#allocation13 + $0x28] sm:$0xff]  }
 0x2e4   : > { %v1668_v56 = vrot.slane %v1666_v51, 2  ;;  %v1671_v57 = vrot.slane %v1669_v52, 3  ;;  %v3119_v51 = vld [vmem:[#allocation13 + $0x30] sm:$0xff]   ;;  %v3118_v52 = vld [vmem:[#allocation11 + $0x58] sm:$0xff]  }
 0x2e5   : > { %v1659_v59 = vrot.slane %v1657_v54, 2  ;;  %v1662_v60 = vrot.slane %v1660_v55, 3  ;;  %v3120_v54 = vld [vmem:[#allocation13 + $0x38] sm:$0xff]   ;;  %v3123_v55 = vld [vmem:[#allocation13 + $0x40] sm:$0xff]  }
 0x2e6   : > { %v1672_v61 = vor.u32 %v1671_v57, %v1668_v56  ;;  %v3122_v56 = vld [vmem:[#allocation11 + $0x68] sm:$0xff]   ;;  %v3125_v57 = vld [vmem:[#allocation11 + $0x70] sm:$0xff]  }
 0x2e7   : > { %v2826_v62 = vpop.f32.mrb[8].mxu1  ;;  %v1663_v63 = vor.u32 %v1662_v60, %v1659_v59  ;;  %v3127_v59 = vld [vmem:[#allocation13 + $0x50] sm:$0xff]   ;;  %v3126_v60 = vld [vmem:[#allocation11 + $0x78] sm:$0xff]  }
 0x2e8   : > { %v811_v0 = vadd.f32 %v2826_v62, %v3871_v8  ;;  %v802_v1 = vpop.f32.mrb[9].mxu1  ;;  %v3128_v62 = vld [vmem:[#allocation13 + $0x58] sm:$0xff]  }
 0x2e9   : > { %v803_v3 = vadd.f32 %v3871_v8, %v802_v1  ;;  %v2827_v4 = vpop.f32.mrb[10].mxu1  ;;  %v1673_v5 = vsel %vm1302_vm3, %v1663_v63, %v1672_v61  ;;  %v1664_v6 = vsel %vm1302_vm3, %v1313_v33, %v1663_v63  ;;  %v3104_v33 = vld [vmem:[#allocation11 + $0x18] sm:$0xff]   ;;  %v3131_v63 = vld [vmem:[#allocation13 + $0x60] sm:$0xff]   ;;  %v3133_v1 = vld [vmem:[#allocation14 + $0x10] sm:$0xff]  }
 0x2ea   : > { %v826_v7 = vmax.f32 %v811_v0, 0.0  ;;  %v805_v9 = vpop.f32.mrb[11].mxu1  ;;  %1694 = vrot.lane.b32.xlu1 %v1673_v5, %s3488_s14  ;;  %1692 = vrot.lane.b32.xlu0 %v1664_v6, %s3488_s14  ;;  %v3130_v0 = vld [vmem:[#allocation14 + $0x8] sm:$0xff]   ;;  %v3134_v4 = vld [vmem:[#allocation14 + $0x18] sm:$0xff]   ;;  %v3137_v5 = vld [vmem:[#allocation14 + $0x20] sm:$0xff]  }
 0x2eb   : > { %v824_v10 = vmax.f32 %v803_v3, 0.0  ;;  %v806_v11 = vadd.f32 %v3871_v8, %v805_v9  ;;  %v3135_v3 = vld [vmem:[#allocation13 + $0x70] sm:$0xff]   ;;  %v3136_v6 = vld [vmem:[#allocation13 + $0x78] sm:$0xff]  }
 0x2ec   : > { %v832_v12 = vpack.c.bf16 %v826_v7, %v826_v7  ;;  %v3138_v7 = vld [vmem:[#allocation14 + $0x28] sm:$0xff]   ;;  %v3139_v9 = vld [vmem:[#allocation14 + $0x30] sm:$0xff]  }
 0x2ed   : > { %v825_v15 = vmax.f32 %v806_v11, 0.0  ;;  %v3141_v11 = vld [vmem:[#allocation14 + $0x40] sm:$0xff]  }
 0x2ee   : > { %v1684_v16 = vshrl.u32 %v832_v12, 16  ;;  %v1687_v17 = vshll.u32 %v832_v12, 16  ;;  %1315 = vrot.lane.b32.xlu0 %v1314_v37, %s3489_s10  ;;  %v3106_v37 = vld [vmem:[#allocation11 + $0x28] sm:$0xff]  }
 0x2ef   : > { %v831_v18 = vpack.c.bf16 %v825_v15, %v824_v10  ;;  %v3140_v10 = vld [vmem:[#allocation14 + $0x38] sm:$0xff]   ;;  %v3142_v12 = vld [vmem:[#allocation14 + $0x48] sm:$0xff]   ;;  %v3145_v15 = vld [vmem:[#allocation14 + $0x60] sm:$0xff]  }
 0x2f0   : > { %v1686_v19 = vrot.slane %v1684_v16, 2  ;;  %v1689_v20 = vrot.slane %v1687_v17, 3  ;;  %v3146_v16 = vld [vmem:[#allocation14 + $0x68] sm:$0xff]   ;;  %v3147_v17 = vld [vmem:[#allocation14 + $0x70] sm:$0xff]  }
 0x2f1   : > { %v1675_v22 = vshrl.u32 %v831_v18, 16  ;;  %v1678_v24 = vshll.u32 %v831_v18, 16  ;;  %v3148_v18 = vld [vmem:[#allocation14 + $0x78] sm:$0xff]  }
 0x2f2   : > { %1931 = vrot.lane.b32.xlu0 %v839_v21, %s3490_s17  ;;  %v1690_v25 = vor.u32 %v1689_v20, %v1686_v19 }
 0x2f3   : > { %v1677_v8 = vrot.slane %v1675_v22, 2  ;;  %v1680_v26 = vrot.slane %v1678_v24, 3 }
 0x2f5   : > { %v1681_v27 = vor.u32 %v1680_v26, %v1677_v8 }
 0x2f7   : > { %v1682_v23 = vsel %vm1302_vm3, %v1672_v61, %v1681_v27  ;;  %v1691_v28 = vsel %vm1302_vm3, %v1681_v27, %v1690_v25  ;;  %v3129_v61 = vld [vmem:[#allocation14] sm:$0xff]  }
 0x2f8   : > { %1696 = vrot.lane.b32.xlu1 %v1682_v23, %s3488_s14 }
 0x2fc   : > { %1698 = vrot.lane.b32.xlu1 %v1691_v28, %s3488_s14  ;;  %s3395_s14 = sshll.u32 %s3494_s12, 4  ;;  %s3396_s14 = int_to_ptr.vmem [resolvable:$false] %s3395_s14 }
 0x2fd   : > { %s3397_s10 = scalar_lea.vmem %s3396_s14, 4096  ;;  %p3398_p13 = scmp.lt.s32.totalorder %s4228_s19, %s3396_s14 }
 0x34b   : > { %v959_v29 = vpop.permute.xlu0 %958 }
 0x34c   : > { %v1011_v30 = vsel %vm1009_vm5, %v959_v29, 0  ;;  %2937 = vmatprep.subr.msk.bf16.mxu1 %vm1009_vm5, %v959_v29 }
 0x34d   : > { %2829 = vmatpush3.bf16.msra.mxu1 %v1011_v30 }
 0x350   : > { %2831 = vmatmul.mubr.msk.bf16.vlgmr.msra.gmra.mrb[12].mxu1 %vm960_vm2, %v3102_v31 }
 0x351   : > { %2834 = vmatprep.mubr.msk.bf16.mxu1 %vm960_vm2, %v3103_v32 }
 0x358   : > { %2835 = vmatmul.mubr.msk.bf16.gmra.mrb[16].mxu1 %vm960_vm2, %v3104_v33 }
 0x359   : > { %2838 = vmatprep.mubr.msk.bf16.mxu1 %vm960_vm2, %v3105_v34 }
 0x35c   : > { %v1695_v35 = vpop.permute.xlu1 %1694  ;;  %v1693_v36 = vpop.permute.xlu0 %1692 }
 0x35d   : > { %2896 = vmatprep.subr.bf16.mxu1 %v1693_v36 }
 0x35e   : > { %2897 = vmatpush3.bf16.msra.mxu1 %v1693_v36 }
 0x35f   : > { %2898 = vmatprep.subr.bf16.mxu1 %v1695_v35 }
 0x360   : > { %2839 = vmatmul.mubr.msk.bf16.gmra.mrb[20].mxu1 %vm960_vm2, %v3106_v37  ;;  %v1316_v39 = vpop.permute.xlu0 %1315 }
 0x361   : > { %2862 = vmatprep.subr.bf16.mxu0 %v1316_v39  ;;  %2842 = vmatprep.mubr.msk.bf16.mxu1 %vm960_vm2, %v3109_v38 }
 0x362   : > { %2863 = vmatpush3.bf16.msra.mxu0 %v1316_v39  ;;  %2899 = vmatpush3.bf16.msra.mxu1 %v1695_v35 }
 0x365   : > { %2865 = vmatmul.mubr.msk.bf16.vlgmr.msra.gmra.mrb[24].mxu0 %vm1318_vm4, %v3108_v40 }
 0x366   : > { %2868 = vmatprep.mubr.msk.bf16.mxu0 %vm1318_vm4, %v3111_v41 }
 0x368   : > { %2843 = vmatmul.mubr.msk.bf16.gmra.mrb[24].mxu1 %vm960_vm2, %v3110_v42 }
 0x369   : > { %2846 = vmatprep.mubr.msk.bf16.mxu1 %vm960_vm2, %v3113_v43 }
 0x36a   : > { %v1697_v45 = vpop.permute.xlu1 %1696 }
 0x36b   : > { %2900 = vmatprep.subr.bf16.mxu1 %v1697_v45 }
 0x36c   : > { %2901 = vmatpush3.bf16.msra.mxu1 %v1697_v45 }
 0x36d   : > { %2869 = vmatmul.mubr.msk.bf16.gmra.mrb[28].mxu0 %vm1318_vm4, %v3112_v44 }
 0x36e   : > { %2872 = vmatprep.mubr.msk.bf16.mxu0 %vm1318_vm4, %v3115_v46  ;;  %v1699_v49 = vpop.permute.xlu1 %1698 }
 0x36f   : > { %2902 = vmatprep.subr.bf16.mxu1 %v1699_v49 }
 0x370   : > { %2847 = vmatmul.mubr.msk.bf16.gmra.mrb[28].mxu1 %vm960_vm2, %v3114_v47 }
 0x371   : > { %2850 = vmatprep.mubr.msk.bf16.mxu1 %vm960_vm2, %v3117_v48  ;;  %2903 = vmatpush3.bf16.msra.mxu1 %v1699_v49 }
 0x375   : > { %2873 = vmatmul.mubr.msk.bf16.gmra.mrb[32].mxu0 %vm1318_vm4, %v3116_v50 }
 0x376   : > { %2876 = vmatprep.mubr.msk.bf16.mxu0 %vm1318_vm4, %v3119_v51 }
 0x378   : > { %2851 = vmatmul.mubr.msk.bf16.gmra.mrb[32].mxu1 %vm960_vm2, %v3118_v52 }
 0x379   : > { %2854 = vmatprep.mubr.msk.bf16.mxu1 %vm960_vm2, %v3121_v53 }
 0x37d   : > { %2877 = vmatmul.mubr.msk.bf16.gmra.mrb[36].mxu0 %vm1318_vm4, %v3120_v54 }
 0x37e   : > { %2880 = vmatprep.mubr.msk.bf16.mxu0 %vm1318_vm4, %v3123_v55 }
 0x380   : > { %2855 = vmatmul.mubr.msk.bf16.gmra.mrb[36].mxu1 %vm960_vm2, %v3122_v56 }
 0x381   : > { %2858 = vmatprep.mubr.msk.bf16.mxu1 %vm960_vm2, %v3125_v57 }
 0x385   : > { %2881 = vmatmul.mubr.msk.bf16.gmra.mrb[40].mxu0 %vm1318_vm4, %v3124_v58 }
 0x386   : > { %2884 = vmatprep.mubr.msk.bf16.mxu0 %vm1318_vm4, %v3127_v59 }
 0x388   : > { %2859 = vmatmul.mubr.msk.bf16.gmra.mrb[40].mxu1 %vm960_vm2, %v3126_v60 }
 0x389   : > { %2904 = vmatprep.mubr.msk.bf16.mxu1 %vm1704_vm6, %v3129_v61 }
 0x38d   : > { %2885 = vmatmul.mubr.msk.bf16.gmra.mrb[44].mxu0 %vm1318_vm4, %v3128_v62 }
 0x38e   : > { %2888 = vmatprep.mubr.msk.bf16.mxu0 %vm1318_vm4, %v3131_v63 }
 0x390   : > { %2905 = vmatmul.mubr.msk.bf16.vlgmr.msra.gmra.mrb[44].mxu1 %vm1704_vm6, %v3130_v0 }
 0x391   : > { %2908 = vmatprep.mubr.msk.bf16.mxu1 %vm1704_vm6, %v3133_v1 }
 0x395   : > { %2889 = vmatmul.mubr.msk.bf16.gmra.mrb[48].mxu0 %vm1318_vm4, %v3132_v2 }
 0x396   : > { %2892 = vmatprep.mubr.msk.bf16.mxu0 %vm1318_vm4, %v3135_v3 }
 0x398   : > { %2909 = vmatmul.mubr.msk.bf16.gmra.mrb[48].mxu1 %vm1704_vm6, %v3134_v4 }
 0x399   : > { %2912 = vmatprep.mubr.msk.bf16.mxu1 %vm1704_vm6, %v3137_v5 }
 0x39d   : > { %2893 = vmatmul.mubr.msk.bf16.gmra.mrb[52].mxu0 %vm1318_vm4, %v3136_v6 }
 0x3a0   : > { %2913 = vmatmul.mubr.msk.bf16.gmra.mrb[52].mxu1 %vm1704_vm6, %v3138_v7 }
 0x3a1   : > { %2916 = vmatprep.mubr.msk.bf16.mxu1 %vm1704_vm6, %v3139_v9 }
 0x3a8   : > { %2917 = vmatmul.mubr.msk.bf16.gmra.mrb[56].mxu1 %vm1704_vm6, %v3140_v10 }
 0x3a9   : > { %2920 = vmatprep.mubr.msk.bf16.mxu1 %vm1704_vm6, %v3141_v11 }
 0x3b0   : > { %2921 = vmatmul.mubr.msk.bf16.gmra.mrb[60].mxu1 %vm1704_vm6, %v3142_v12 }
 0x3b1   : > { %2924 = vmatprep.mubr.msk.bf16.mxu1 %vm1704_vm6, %v3143_v13 }
 0x3b8   : > { %2925 = vmatmul.mubr.msk.bf16.gmra.mrb[64].mxu1 %vm1704_vm6, %v3144_v14 }
 0x3b9   : > { %2928 = vmatprep.mubr.msk.bf16.mxu1 %vm1704_vm6, %v3145_v15 }
 0x3c0   : > { %2929 = vmatmul.mubr.msk.bf16.gmra.mrb[68].mxu1 %vm1704_vm6, %v3146_v16 }
 0x3c1   : > { %2932 = vmatprep.mubr.msk.bf16.mxu1 %vm1704_vm6, %v3147_v17 }
 0x3c8   : > { %2933 = vmatmul.mubr.msk.bf16.gmra.mrb[72].mxu1 %vm1704_vm6, %v3148_v18 }
 0x423   : > { %v2832_v19 = vpop.f32.mrb[12].mxu1 }
 0x424   : > { %v1047_v20 = vpop.f32.mrb[13].mxu1 }
 0x425   : > { %v2833_v21 = vpop.f32.mrb[14].mxu1 }
 0x426   : > { %v1175_v22 = vpack.c.bf16 %v2833_v21, %v2832_v19  ;;  %v1050_v24 = vpop.f32.mrb[15].mxu1 }
 0x427   : > { %v1174_v25 = vpack.c.bf16 %v1050_v24, %v1047_v20 }
 0x428   : > { %1951 = vrot.lane.b32.xlu0 %v1175_v22, %s3491_s24 }
 0x429   : > { %1949 = vrot.lane.b32.xlu1 %v1174_v25, %s3491_s24 }
 0x42b   : > { %v2836_v8 = vpop.f32.mrb[16].mxu1 }
 0x42c   : > { %v1063_v26 = vpop.f32.mrb[17].mxu1 }
 0x42d   : > { %v2837_v27 = vpop.f32.mrb[18].mxu1 }
 0x42e   : > { %v1177_v23 = vpack.c.bf16 %v2837_v27, %v2836_v8  ;;  %v1066_v28 = vpop.f32.mrb[19].mxu1 }
 0x42f   : > { %v1176_v29 = vpack.c.bf16 %v1066_v28, %v1063_v26 }
 0x433   : > { %v2840_v30 = vpop.f32.mrb[20].mxu1 }
 0x434   : > { %v1079_v31 = vpop.f32.mrb[21].mxu1 }
 0x435   : > { %v2841_v32 = vpop.f32.mrb[22].mxu1 }
 0x436   : > { %v1179_v33 = vpack.c.bf16 %v2841_v32, %v2840_v30  ;;  %v1082_v34 = vpop.f32.mrb[23].mxu1 }
 0x437   : > { %v1178_v35 = vpack.c.bf16 %v1082_v34, %v1079_v31 }
 0x438   : > { %v2866_v36 = vpop.f32.mrb[24].mxu0 }
 0x439   : > { %v1401_v37 = vpop.f32.mrb[25].mxu0 }
 0x43a   : > { %v2867_v38 = vpop.f32.mrb[26].mxu0 }
 0x43b   : > { %v1529_v39 = vpack.c.bf16 %v2867_v38, %v2866_v36  ;;  %v1404_v40 = vpop.f32.mrb[27].mxu0  ;;  %v2844_v41 = vpop.f32.mrb[24].mxu1 }
 0x43c   : > { %v1528_v42 = vpack.c.bf16 %v1404_v40, %v1401_v37  ;;  %v1095_v43 = vpop.f32.mrb[25].mxu1 }
 0x43d   : > { %1999 = vrot.lane.b32.xlu0 %v1529_v39, %s3492_s25  ;;  %v2845_v44 = vpop.f32.mrb[26].mxu1 }
 0x43e   : > { %1997 = vrot.lane.b32.xlu1 %v1528_v42, %s3492_s25  ;;  %v1181_v45 = vpack.c.bf16 %v2845_v44, %v2844_v41  ;;  %v1098_v46 = vpop.f32.mrb[27].mxu1 }
 0x43f   : > { %v1180_v47 = vpack.c.bf16 %v1098_v46, %v1095_v43 }
 0x440   : > { %v2870_v48 = vpop.f32.mrb[28].mxu0 }
 0x441   : > { %v1417_v49 = vpop.f32.mrb[29].mxu0  ;;  %1955 = vrot.lane.b32.xlu0 %v1177_v23, %s3491_s24 }
 0x442   : > { %1953 = vrot.lane.b32.xlu1 %v1176_v29, %s3491_s24  ;;  %v2871_v50 = vpop.f32.mrb[30].mxu0 }
 0x443   : > { %v1531_v51 = vpack.c.bf16 %v2871_v50, %v2870_v48  ;;  %v1420_v52 = vpop.f32.mrb[31].mxu0  ;;  %v2848_v53 = vpop.f32.mrb[28].mxu1 }
 0x444   : > { %v1530_v54 = vpack.c.bf16 %v1420_v52, %v1417_v49  ;;  %v1111_v55 = vpop.f32.mrb[29].mxu1 }
 0x445   : > { %2003 = vrot.lane.b32.xlu0 %v1531_v51, %s3492_s25  ;;  %v2849_v56 = vpop.f32.mrb[30].mxu1 }
 0x446   : > { %2001 = vrot.lane.b32.xlu1 %v1530_v54, %s3492_s25  ;;  %v1183_v57 = vpack.c.bf16 %v2849_v56, %v2848_v53  ;;  %v1114_v58 = vpop.f32.mrb[31].mxu1 }
 0x447   : > { %v1182_v59 = vpack.c.bf16 %v1114_v58, %v1111_v55 }
 0x448   : > { %v2874_v60 = vpop.f32.mrb[32].mxu0 }
 0x449   : > { %v1433_v61 = vpop.f32.mrb[33].mxu0  ;;  %1959 = vrot.lane.b32.xlu0 %v1179_v33, %s3491_s24 }
 0x44a   : > { %1957 = vrot.lane.b32.xlu1 %v1178_v35, %s3491_s24  ;;  %v2875_v62 = vpop.f32.mrb[34].mxu0 }
 0x44b   : > { %v1533_v63 = vpack.c.bf16 %v2875_v62, %v2874_v60  ;;  %v1436_v0 = vpop.f32.mrb[35].mxu0  ;;  %v2852_v1 = vpop.f32.mrb[32].mxu1 }
 0x44c   : > { %v1532_v2 = vpack.c.bf16 %v1436_v0, %v1433_v61  ;;  %v1127_v3 = vpop.f32.mrb[33].mxu1 }
 0x44d   : > { %2007 = vrot.lane.b32.xlu0 %v1533_v63, %s3492_s25  ;;  %v2853_v4 = vpop.f32.mrb[34].mxu1 }
 0x44e   : > { %2005 = vrot.lane.b32.xlu1 %v1532_v2, %s3492_s25  ;;  %v1185_v5 = vpack.c.bf16 %v2853_v4, %v2852_v1  ;;  %v1130_v6 = vpop.f32.mrb[35].mxu1 }
 0x44f   : > { %v1184_v7 = vpack.c.bf16 %v1130_v6, %v1127_v3 }
 0x450   : > { %v2878_v9 = vpop.f32.mrb[36].mxu0 }
 0x451   : > { %v1449_v10 = vpop.f32.mrb[37].mxu0  ;;  %1963 = vrot.lane.b32.xlu0 %v1181_v45, %s3491_s24 }
 0x452   : > { %1961 = vrot.lane.b32.xlu1 %v1180_v47, %s3491_s24  ;;  %v2879_v11 = vpop.f32.mrb[38].mxu0 }
 0x453   : > { %v1535_v12 = vpack.c.bf16 %v2879_v11, %v2878_v9  ;;  %v1452_v13 = vpop.f32.mrb[39].mxu0  ;;  %v2856_v14 = vpop.f32.mrb[36].mxu1 }
 0x454   : > { %v1534_v15 = vpack.c.bf16 %v1452_v13, %v1449_v10  ;;  %v1143_v16 = vpop.f32.mrb[37].mxu1 }
 0x455   : > { %2011 = vrot.lane.b32.xlu0 %v1535_v12, %s3492_s25  ;;  %v2857_v17 = vpop.f32.mrb[38].mxu1 }
 0x456   : > { %2009 = vrot.lane.b32.xlu1 %v1534_v15, %s3492_s25  ;;  %v1187_v18 = vpack.c.bf16 %v2857_v17, %v2856_v14  ;;  %v1146_v19 = vpop.f32.mrb[39].mxu1 }
 0x457   : > { %v1186_v20 = vpack.c.bf16 %v1146_v19, %v1143_v16 }
 0x458   : > { %v2882_v21 = vpop.f32.mrb[40].mxu0 }
 0x459   : > { %v1465_v22 = vpop.f32.mrb[41].mxu0  ;;  %1967 = vrot.lane.b32.xlu0 %v1183_v57, %s3491_s24 }
 0x45a   : > { %1965 = vrot.lane.b32.xlu1 %v1182_v59, %s3491_s24  ;;  %v2883_v24 = vpop.f32.mrb[42].mxu0 }
 0x45b   : > { %v1537_v25 = vpack.c.bf16 %v2883_v24, %v2882_v21  ;;  %v1468_v8 = vpop.f32.mrb[43].mxu0  ;;  %v2860_v26 = vpop.f32.mrb[40].mxu1 }
 0x45c   : > { %v1536_v27 = vpack.c.bf16 %v1468_v8, %v1465_v22  ;;  %v1159_v23 = vpop.f32.mrb[41].mxu1 }
 0x45d   : > { %2015 = vrot.lane.b32.xlu0 %v1537_v25, %s3492_s25  ;;  %v2861_v28 = vpop.f32.mrb[42].mxu1 }
 0x45e   : > { %2013 = vrot.lane.b32.xlu1 %v1536_v27, %s3492_s25  ;;  %v1189_v29 = vpack.c.bf16 %v2861_v28, %v2860_v26  ;;  %v1162_v30 = vpop.f32.mrb[43].mxu1 }
 0x45f   : > { %v1188_v31 = vpack.c.bf16 %v1162_v30, %v1159_v23 }
 0x460   : > { %v2886_v32 = vpop.f32.mrb[44].mxu0 }
 0x461   : > { %v1481_v33 = vpop.f32.mrb[45].mxu0  ;;  %1971 = vrot.lane.b32.xlu0 %v1185_v5, %s3491_s24 }
 0x462   : > { %1969 = vrot.lane.b32.xlu1 %v1184_v7, %s3491_s24  ;;  %v2887_v34 = vpop.f32.mrb[46].mxu0 }
 0x463   : > { %v1539_v35 = vpack.c.bf16 %v2887_v34, %v2886_v32  ;;  %v1484_v36 = vpop.f32.mrb[47].mxu0  ;;  %v2906_v37 = vpop.f32.mrb[44].mxu1 }
 0x464   : > { %v1538_v38 = vpack.c.bf16 %v1484_v36, %v1481_v33  ;;  %v1787_v39 = vpop.f32.mrb[45].mxu1  ;;  %v3991_v34 = vpop.permute.xlu0 %1931 }
 0x465   : > { %2019 = vrot.lane.b32.xlu0 %v1539_v35, %s3492_s25  ;;  %v2907_v40 = vpop.f32.mrb[46].mxu1 }
 0x466   : > { %2017 = vrot.lane.b32.xlu1 %v1538_v38, %s3492_s25  ;;  %v1915_v41 = vpack.c.bf16 %v2907_v40, %v2906_v37  ;;  %v1790_v42 = vpop.f32.mrb[47].mxu1 }
 0x467   : > { %v1914_v43 = vpack.c.bf16 %v1790_v42, %v1787_v39 }
 0x468   : > { %v2890_v44 = vpop.f32.mrb[48].mxu0 }
 0x469   : > { %v1497_v45 = vpop.f32.mrb[49].mxu0  ;;  %1975 = vrot.lane.b32.xlu0 %v1187_v18, %s3491_s24 }
 0x46a   : > { %1973 = vrot.lane.b32.xlu1 %v1186_v20, %s3491_s24  ;;  %v2891_v46 = vpop.f32.mrb[50].mxu0 }
 0x46b   : > { %v1541_v47 = vpack.c.bf16 %v2891_v46, %v2890_v44  ;;  %v1500_v48 = vpop.f32.mrb[51].mxu0  ;;  %v2910_v49 = vpop.f32.mrb[48].mxu1 }
 0x46c   : > { %v1540_v50 = vpack.c.bf16 %v1500_v48, %v1497_v45  ;;  %v1803_v51 = vpop.f32.mrb[49].mxu1 }
 0x46d   : > { %2023 = vrot.lane.b32.xlu0 %v1541_v47, %s3492_s25  ;;  %v2911_v52 = vpop.f32.mrb[50].mxu1 }
 0x46e   : > { %2021 = vrot.lane.b32.xlu1 %v1540_v50, %s3492_s25  ;;  %v1917_v53 = vpack.c.bf16 %v2911_v52, %v2910_v49  ;;  %v1806_v54 = vpop.f32.mrb[51].mxu1 }
 0x46f   : > { %v1916_v55 = vpack.c.bf16 %v1806_v54, %v1803_v51 }
 0x470   : > { %v2894_v56 = vpop.f32.mrb[52].mxu0 }
 0x471   : > { %v1513_v57 = vpop.f32.mrb[53].mxu0  ;;  %1979 = vrot.lane.b32.xlu0 %v1189_v29, %s3491_s24 }
 0x472   : > { %1977 = vrot.lane.b32.xlu1 %v1188_v31, %s3491_s24  ;;  %v2895_v58 = vpop.f32.mrb[54].mxu0 }
 0x473   : > { %v1543_v59 = vpack.c.bf16 %v2895_v58, %v2894_v56  ;;  %v1516_v60 = vpop.f32.mrb[55].mxu0  ;;  %v2914_v61 = vpop.f32.mrb[52].mxu1 }
 0x474   : > { %v1542_v62 = vpack.c.bf16 %v1516_v60, %v1513_v57  ;;  %v1819_v63 = vpop.f32.mrb[53].mxu1 }
 0x475   : > { %2027 = vrot.lane.b32.xlu0 %v1543_v59, %s3492_s25  ;;  %v2915_v0 = vpop.f32.mrb[54].mxu1 }
 0x476   : > { %2025 = vrot.lane.b32.xlu1 %v1542_v62, %s3492_s25  ;;  %v1919_v1 = vpack.c.bf16 %v2915_v0, %v2914_v61  ;;  %v1822_v2 = vpop.f32.mrb[55].mxu1 }
 0x477   : > { %v1918_v3 = vpack.c.bf16 %v1822_v2, %v1819_v63 }
 0x479   : > { %2047 = vrot.lane.b32.xlu0 %v1915_v41, %s3493_s20 }
 0x47a   : > { %2045 = vrot.lane.b32.xlu1 %v1914_v43, %s3493_s20 }
 0x47b   : > { %v2918_v4 = vpop.f32.mrb[56].mxu1 }
 0x47c   : > { %v1835_v5 = vpop.f32.mrb[57].mxu1 }
 0x47d   : > { %2051 = vrot.lane.b32.xlu0 %v1917_v53, %s3493_s20  ;;  %v2919_v6 = vpop.f32.mrb[58].mxu1 }
 0x47e   : > { %2049 = vrot.lane.b32.xlu1 %v1916_v55, %s3493_s20  ;;  %v1921_v7 = vpack.c.bf16 %v2919_v6, %v2918_v4  ;;  %v1838_v9 = vpop.f32.mrb[59].mxu1  ;;  %v3150_v6 = vld [vmem:[%s3827_s15] sm:$0xff]  }
 0x47f   : > { %v1920_v10 = vpack.c.bf16 %v1838_v9, %v1835_v5 }
 0x481   : > { %2055 = vrot.lane.b32.xlu0 %v1919_v1, %s3493_s20 }
 0x482   : > { %2053 = vrot.lane.b32.xlu1 %v1918_v3, %s3493_s20  ;;  %v3149_v3 = vld [vmem:[%s3827_s15 + $0x8] sm:$0xff]  }
 0x483   : > { %v2922_v11 = vpop.f32.mrb[60].mxu1  ;;  %v2081_v4 = vsel %vm713_vm1, %v3149_v3, %v3991_v34 }
 0x484   : > { %v1851_v12 = vpop.f32.mrb[61].mxu1 }
 0x485   : > { %2059 = vrot.lane.b32.xlu0 %v1921_v7, %s3493_s20  ;;  %v2923_v13 = vpop.f32.mrb[62].mxu1  ;;  %v2079_v7 = vsel %vm713_vm1, %v3150_v6, %v3991_v34 }
 0x486   : > { %v1923_v14 = vpack.c.bf16 %v2923_v13, %v2922_v11  ;;  %2057 = vrot.lane.b32.xlu1 %v1920_v10, %s3493_s20  ;;  %v1854_v15 = vpop.f32.mrb[63].mxu1 }
 0x487   : > { %v1922_v16 = vpack.c.bf16 %v1854_v15, %v1851_v12  ;;  %v3151_v15 = vld [vmem:[%s3827_s15 + $0x18] sm:$0xff]  }
 0x489   : > { %2063 = vrot.lane.b32.xlu0 %v1923_v14, %s3493_s20 }
 0x48a   : > { %2061 = vrot.lane.b32.xlu1 %v1922_v16, %s3493_s20  ;;  %v2085_v16 = vsel %vm713_vm1, %v3151_v15, %v3991_v34 }
 0x48b   : > { %v2926_v17 = vpop.f32.mrb[64].mxu1 }
 0x48c   : > { %v1867_v18 = vpop.f32.mrb[65].mxu1 }
 0x48d   : > { %v2927_v19 = vpop.f32.mrb[66].mxu1 }
 0x48e   : > { %v1925_v20 = vpack.c.bf16 %v2927_v19, %v2926_v17  ;;  %v1870_v21 = vpop.f32.mrb[67].mxu1 }
 0x48f   : > { %v1924_v22 = vpack.c.bf16 %v1870_v21, %v1867_v18  ;;  %v3152_v21 = vld [vmem:[%s3827_s15 + $0x10] sm:$0xff]  }
 0x490   : > { %2067 = vrot.lane.b32.xlu0 %v1925_v20, %s3493_s20 }
 0x491   : > { %2065 = vrot.lane.b32.xlu1 %v1924_v22, %s3493_s20  ;;  %v2083_v22 = vsel %vm713_vm1, %v3152_v21, %v3991_v34 }
 0x493   : > { %v2930_v24 = vpop.f32.mrb[68].mxu1 }
 0x494   : > { %v1883_v25 = vpop.f32.mrb[69].mxu1 }
 0x495   : > { %v2931_v8 = vpop.f32.mrb[70].mxu1 }
 0x496   : > { %v1927_v26 = vpack.c.bf16 %v2931_v8, %v2930_v24  ;;  %v1886_v27 = vpop.f32.mrb[71].mxu1 }
 0x497   : > { %v1926_v23 = vpack.c.bf16 %v1886_v27, %v1883_v25 }
 0x498   : > { %2071 = vrot.lane.b32.xlu0 %v1927_v26, %s3493_s20 }
 0x499   : > { %2069 = vrot.lane.b32.xlu1 %v1926_v23, %s3493_s20 }
 0x49a   : > { %v1952_v35 = vpop.permute.xlu0 %1951 }
 0x49b   : > { %v2934_v28 = vpop.f32.mrb[72].mxu1  ;;  %v1950_v36 = vpop.permute.xlu1 %1949  ;;  %v2114_v5 = vsel %vm2110_vm7, %v2081_v4, %v1952_v35 }
 0x49c   : > { %v1899_v29 = vpop.f32.mrb[73].mxu1  ;;  %v2112_v9 = vsel %vm2110_vm7, %v2079_v7, %v1950_v36 }
 0x49d   : > { %v2935_v30 = vpop.f32.mrb[74].mxu1 }
 0x49e   : > { %v1929_v31 = vpack.c.bf16 %v2935_v30, %v2934_v28  ;;  %v1902_v32 = vpop.f32.mrb[75].mxu1  ;;  %v3153_v30 = vld [vmem:[%s3827_s15 + $0x28] sm:$0xff]  }
 0x49f   : > { %v1928_v33 = vpack.c.bf16 %v1902_v32, %v1899_v29 }
 0x4a0   : > { %2075 = vrot.lane.b32.xlu0 %v1929_v31, %s3493_s20  ;;  %v2089_v31 = vsel %vm713_vm1, %v3153_v30, %v3991_v34 }
 0x4a1   : > { %2073 = vrot.lane.b32.xlu1 %v1928_v33, %s3493_s20 }
 0x4af   : > { %v2000_v37 = vpop.permute.xlu0 %1999 }
 0x4b0   : > { %v1998_v38 = vpop.permute.xlu1 %1997  ;;  %v2147_v10 = vsel %vm2143_vm8, %v2114_v5, %v2000_v37  ;;  %v3154_v37 = vld [vmem:[%s3827_s15 + $0x20] sm:$0xff]   ;;  %v3155_v5 = vld [vmem:[%s3827_s15 + $0x38] sm:$0xff]  }
 0x4b1   : > { %v2145_v12 = vsel %vm2143_vm8, %v2112_v9, %v1998_v38  ;;  %v2087_v38 = vsel %vm713_vm1, %v3154_v37, %v3991_v34 }
 0x4b3   : > { %v1956_v39 = vpop.permute.xlu0 %1955 }
 0x4b4   : > { %v1954_v40 = vpop.permute.xlu1 %1953  ;;  %v2118_v20 = vsel %vm2110_vm7, %v2085_v16, %v1956_v39 }
 0x4b5   : > { %v2116_v8 = vsel %vm2110_vm7, %v2083_v22, %v1954_v40  ;;  %v3158_v22 = vld [vmem:[%s3827_s15 + $0x40] sm:$0xff]  }
 0x4b7   : > { %v2004_v41 = vpop.permute.xlu0 %2003 }
 0x4b8   : > { %v2002_v42 = vpop.permute.xlu1 %2001  ;;  %v2151_v26 = vsel %vm2143_vm8, %v2118_v20, %v2004_v41 }
 0x4b9   : > { %v2149_v23 = vsel %vm2143_vm8, %v2116_v8, %v2002_v42 }
 0x4bb   : > { %v3993_v43 = vpop.permute.xlu0 %1959 }
 0x4bc   : > { %v3995_v44 = vpop.permute.xlu1 %1957  ;;  %v2122_v36 = vsel %vm2110_vm7, %v2089_v31, %v3993_v43 }
 0x4bd   : > { %v2120_v41 = vsel %vm2110_vm7, %v2087_v38, %v3995_v44 }
 0x4bf   : > { %v3997_v45 = vpop.permute.xlu0 %2007 }
 0x4c0   : > { %v3999_v46 = vpop.permute.xlu1 %2005  ;;  %v2155_v42 = vsel %vm2143_vm8, %v2122_v36, %v3997_v45  ;;  %v2093_v45 = vsel %vm713_vm1, %v3155_v5, %v3991_v34  ;;  %v3160_v36 = vld [vmem:[%s3827_s15 + $0x50] sm:$0xff]  }
 0x4c1   : > { %v2153_v43 = vsel %vm2143_vm8, %v2120_v41, %v3999_v46  ;;  %v2099_v37 = vsel %vm713_vm1, %v3160_v36, %v3991_v34 }
 0x4c3   : > { %v4001_v47 = vpop.permute.xlu0 %1963 }
 0x4c4   : > { %v4003_v48 = vpop.permute.xlu1 %1961  ;;  %v2126_v46 = vsel %vm2110_vm7, %v2093_v45, %v4001_v47  ;;  %v3162_v45 = vld [vmem:[%s3827_s15 + $0x60] sm:$0xff]  }
 0x4c7   : > { %v4005_v49 = vpop.permute.xlu0 %2011 }
 0x4c8   : > { %v4007_v50 = vpop.permute.xlu1 %2009  ;;  %v2159_v15 = vsel %vm2143_vm8, %v2126_v46, %v4005_v49 }
 0x4cb   : > { %v4009_v51 = vpop.permute.xlu0 %1967 }
 0x4cc   : > { %v4011_v52 = vpop.permute.xlu1 %1965 }
 0x4cf   : > { %v4013_v53 = vpop.permute.xlu0 %2015 }
 0x4d0   : > { %v4015_v54 = vpop.permute.xlu1 %2013 }
 0x4d3   : > { %v4017_v55 = vpop.permute.xlu0 %1971 }
 0x4d4   : > { %v4019_v56 = vpop.permute.xlu1 %1969 }
 0x4d5   : > { %v2132_v38 = vsel %vm2110_vm7, %v2099_v37, %v4019_v56  ;;  %v3161_v56 = vld [vmem:[%s3827_s15 + $0x68] sm:$0xff]  }
 0x4d7   : > { %v4021_v57 = vpop.permute.xlu0 %2019 }
 0x4d8   : > { %v4023_v58 = vpop.permute.xlu1 %2017 }
 0x4d9   : > { %v2165_v41 = vsel %vm2143_vm8, %v2132_v38, %v4023_v58 }
 0x4db   : > { %v4025_v59 = vpop.permute.xlu0 %1975 }
 0x4dc   : > { %v4027_v60 = vpop.permute.xlu1 %1973 }
 0x4df   : > { %v4029_v61 = vpop.permute.xlu0 %2023 }
 0x4e0   : > { %v4031_v62 = vpop.permute.xlu1 %2021 }
 0x4e3   : > { %v4033_v63 = vpop.permute.xlu0 %1979 }
 0x4e4   : > { %v4035_v0 = vpop.permute.xlu1 %1977 }
 0x4e7   : > { %v4037_v1 = vpop.permute.xlu0 %2027 }
 0x4e8   : > { %v4039_v2 = vpop.permute.xlu1 %2025 }
 0x4eb   : > { %v2048_v11 = vpop.permute.xlu0 %2047 }
 0x4ec   : > { %v2180_v13 = vsel %vm2176_vm9, %v2147_v10, %v2048_v11  ;;  %v2046_v14 = vpop.permute.xlu1 %2045  ;;  %v3156_v10 = vld [vmem:[%s3827_s15 + $0x30] sm:$0xff]  }
 0x4ed   : > { %v2664_v17 = vcombine.low %v2180_v13, %v2180_v13  ;;  %v2665_v18 = vcombine.high %v2180_v13, %v2180_v13  ;;  %v2178_v19 = vsel %vm2176_vm9, %v2145_v12, %v2046_v14  ;;  %v2091_v11 = vsel %vm713_vm1, %v3156_v10, %v3991_v34 }
 0x4ee   : > { %v2662_v24 = vcombine.low %v2178_v19, %v2178_v19  ;;  %v2663_v25 = vcombine.high %v2178_v19, %v2178_v19  ;;  %v2124_v14 = vsel %vm2110_vm7, %v2091_v11, %v4003_v48 }
 0x4ef   : > { %2324 = vst.msk [vmem:[%s4064_s13 + $0x8] sm:$0xf] %vm2321_vm10, %v2664_v17  ;;  %2325 = vst.msk [vmem:[%s4064_s13 + $0xc] sm:$0xf] %vm2321_vm10, %v2665_v18  ;;  %v2052_v27 = vpop.permute.xlu0 %2051  ;;  %v2157_v47 = vsel %vm2143_vm8, %v2124_v14, %v4007_v50  ;;  %v3157_v18 = vld [vmem:[%s3827_s15 + $0x48] sm:$0xff]  }
 0x4f0   : > { %2322 = vst.msk [vmem:[%s4064_s13] sm:$0xf] %vm2321_vm10, %v2662_v24  ;;  %2323 = vst.msk [vmem:[%s4064_s13 + $0x4] sm:$0xf] %vm2321_vm10, %v2663_v25  ;;  %v2184_v28 = vsel %vm2176_vm9, %v2151_v26, %v2052_v27  ;;  %v2050_v29 = vpop.permute.xlu1 %2049  ;;  %v2097_v49 = vsel %vm713_vm1, %v3157_v18, %v3991_v34  ;;  %v2095_v24 = vsel %vm713_vm1, %v3158_v22, %v3991_v34 }
 0x4f1   : > { %v2668_v32 = vcombine.low %v2184_v28, %v2184_v28  ;;  %v2669_v33 = vcombine.high %v2184_v28, %v2184_v28  ;;  %v2182_v35 = vsel %vm2176_vm9, %v2149_v23, %v2050_v29  ;;  %v2130_v50 = vsel %vm2110_vm7, %v2097_v49, %v4009_v51 }
 0x4f2   : > { %v2666_v39 = vcombine.low %v2182_v35, %v2182_v35  ;;  %v2667_v40 = vcombine.high %v2182_v35, %v2182_v35  ;;  %v2128_v26 = vsel %vm2110_vm7, %v2095_v24, %v4011_v52  ;;  %v2163_v27 = vsel %vm2143_vm8, %v2130_v50, %v4013_v53 }
 0x4f3   : > { %2328 = vst.msk [vmem:[%s4064_s13 + $0x18] sm:$0xf] %vm2321_vm10, %v2668_v32  ;;  %2329 = vst.msk [vmem:[%s4064_s13 + $0x1c] sm:$0xf] %vm2321_vm10, %v2669_v33  ;;  %v2056_v3 = vpop.permute.xlu0 %2055  ;;  %v2161_v23 = vsel %vm2143_vm8, %v2128_v26, %v4015_v54  ;;  %v3159_v33 = vld [vmem:[%s3827_s15 + $0x58] sm:$0xff]  }
 0x4f4   : > { %2326 = vst.msk [vmem:[%s4064_s13 + $0x10] sm:$0xf] %vm2321_vm10, %v2666_v39  ;;  %2327 = vst.msk [vmem:[%s4064_s13 + $0x14] sm:$0xf] %vm2321_vm10, %v2667_v40  ;;  %v2188_v44 = vsel %vm2176_vm9, %v2155_v42, %v2056_v3  ;;  %v2054_v4 = vpop.permute.xlu1 %2053  ;;  %v2101_v54 = vsel %vm713_vm1, %v3159_v33, %v3991_v34 }
 0x4f5   : > { %v2672_v6 = vcombine.low %v2188_v44, %v2188_v44  ;;  %v2673_v7 = vcombine.high %v2188_v44, %v2188_v44  ;;  %v2186_v9 = vsel %vm2176_vm9, %v2153_v43, %v2054_v4  ;;  %v2134_v35 = vsel %vm2110_vm7, %v2101_v54, %v4017_v55 }
 0x4f6   : > { %v2670_v12 = vcombine.low %v2186_v9, %v2186_v9  ;;  %v2671_v13 = vcombine.high %v2186_v9, %v2186_v9  ;;  %v2167_v39 = vsel %vm2143_vm8, %v2134_v35, %v4021_v57  ;;  %v2105_v57 = vsel %vm713_vm1, %v3161_v56, %v3991_v34 }
 0x4f7   : > { %2332 = vst.msk [vmem:[%s4064_s13 + $0x28] sm:$0xf] %vm2321_vm10, %v2672_v6  ;;  %2333 = vst.msk [vmem:[%s4064_s13 + $0x2c] sm:$0xf] %vm2321_vm10, %v2673_v7  ;;  %v2060_v16 = vpop.permute.xlu0 %2059  ;;  %v2138_v58 = vsel %vm2110_vm7, %v2105_v57, %v4025_v59  ;;  %v2103_v6 = vsel %vm713_vm1, %v3162_v45, %v3991_v34 }
 0x4f8   : > { %2330 = vst.msk [vmem:[%s4064_s13 + $0x20] sm:$0xf] %vm2321_vm10, %v2670_v12  ;;  %2331 = vst.msk [vmem:[%s4064_s13 + $0x24] sm:$0xf] %vm2321_vm10, %v2671_v13  ;;  %v2192_v48 = vsel %vm2176_vm9, %v2159_v15, %v2060_v16  ;;  %v2058_v17 = vpop.permute.xlu1 %2057  ;;  %v2136_v7 = vsel %vm2110_vm7, %v2103_v6, %v4027_v60  ;;  %v2171_v9 = vsel %vm2143_vm8, %v2138_v58, %v4029_v61  ;;  %v3163_v60 = vld [vmem:[%s3827_s15 + $0x78] sm:$0xff]  }
 0x4f9   : > { %v2676_v19 = vcombine.low %v2192_v48, %v2192_v48  ;;  %v2677_v20 = vcombine.high %v2192_v48, %v2192_v48  ;;  %v2190_v21 = vsel %vm2176_vm9, %v2157_v47, %v2058_v17  ;;  %v2169_v10 = vsel %vm2143_vm8, %v2136_v7, %v4031_v62  ;;  %v3164_v47 = vld [vmem:[%s3827_s15 + $0x70] sm:$0xff]   ;;  %s3391_s15 = scalar_lea.vmem %s4228_s19, 2048 }
 0x4fa   : > { %v2674_v25 = vcombine.low %v2190_v21, %v2190_v21  ;;  %v2675_v8 = vcombine.high %v2190_v21, %v2190_v21  ;;  %v2109_v61 = vsel %vm713_vm1, %v3163_v60, %v3991_v34  ;;  %v2107_v48 = vsel %vm713_vm1, %v3164_v47, %v3991_v34  ;;  %p3392_p10 = scmp.ne.s32.totalorder %s4228_s19, %s3391_s15  ;;  %p3399_p8 = scmp.lt.s32.totalorder %s3397_s10, %s3391_s15 }
 0x4fb   : > { %2336 = vst.msk [vmem:[%s4064_s13 + $0x38] sm:$0xf] %vm2321_vm10, %v2676_v19  ;;  %2337 = vst.msk [vmem:[%s4064_s13 + $0x3c] sm:$0xf] %vm2321_vm10, %v2677_v20  ;;  %v2064_v51 = vpop.permute.xlu0 %2063  ;;  %v2142_v62 = vsel %vm2110_vm7, %v2109_v61, %v4033_v63  ;;  %v2140_v17 = vsel %vm2110_vm7, %v2107_v48, %v4035_v0 }
 0x4fc   : > { %2334 = vst.msk [vmem:[%s4064_s13 + $0x30] sm:$0xf] %vm2321_vm10, %v2674_v25  ;;  %2335 = vst.msk [vmem:[%s4064_s13 + $0x34] sm:$0xf] %vm2321_vm10, %v2675_v8  ;;  %v2196_v52 = vsel %vm2176_vm9, %v2163_v27, %v2064_v51  ;;  %v2062_v28 = vpop.permute.xlu1 %2061  ;;  %v2175_v18 = vsel %vm2143_vm8, %v2142_v62, %v4037_v1  ;;  %v2173_v63 = vsel %vm2143_vm8, %v2140_v17, %v4039_v2  ;;  %p3393_p11 = pnand %p3392_p10, %p4313_p1  ;;  %p3400_p6 = por %p3399_p8, %p3398_p13 }
 0x4fd   : > { %v2680_v53 = vcombine.low %v2196_v52, %v2196_v52  ;;  %v2681_v29 = vcombine.high %v2196_v52, %v2196_v52  ;;  %v2194_v30 = vsel %vm2176_vm9, %v2161_v23, %v2062_v28 }
 0x4fe   : > { %v2678_v31 = vcombine.low %v2194_v30, %v2194_v30  ;;  %v2679_v32 = vcombine.high %v2194_v30, %v2194_v30  ;;  %p3394_p12 = pneg %p3393_p11 }
 0x4ff   : > { %2340 = vst.msk [vmem:[%s4064_s13 + $0x48] sm:$0xf] %vm2321_vm10, %v2680_v53  ;;  %2341 = vst.msk [vmem:[%s4064_s13 + $0x4c] sm:$0xf] %vm2321_vm10, %v2681_v29 }
 0x500   : > { %2338 = vst.msk [vmem:[%s4064_s13 + $0x40] sm:$0xf] %vm2321_vm10, %v2678_v31  ;;  %2339 = vst.msk [vmem:[%s4064_s13 + $0x44] sm:$0xf] %vm2321_vm10, %v2679_v32  ;;  %p3401_p9 = pnand %p3400_p6, %p3394_p12 }
 0x502   : > { %v2068_v40 = vpop.permute.xlu0 %2067 }
 0x503   : > { %v2200_v55 = vsel %vm2176_vm9, %v2167_v39, %v2068_v40  ;;  %v2066_v42 = vpop.permute.xlu1 %2065 }
 0x504   : > { %v2684_v3 = vcombine.low %v2200_v55, %v2200_v55  ;;  %v2685_v43 = vcombine.high %v2200_v55, %v2200_v55  ;;  %v2198_v44 = vsel %vm2176_vm9, %v2165_v41, %v2066_v42 }
 0x505   : > { %v2682_v4 = vcombine.low %v2198_v44, %v2198_v44  ;;  %v2683_v5 = vcombine.high %v2198_v44, %v2198_v44 }
 0x506   : > { %2344 = vst.msk [vmem:[%s4064_s13 + $0x58] sm:$0xf] %vm2321_vm10, %v2684_v3  ;;  %2345 = vst.msk [vmem:[%s4064_s13 + $0x5c] sm:$0xf] %vm2321_vm10, %v2685_v43 }
 0x507   : > { %2342 = vst.msk [vmem:[%s4064_s13 + $0x50] sm:$0xf] %vm2321_vm10, %v2682_v4  ;;  %2343 = vst.msk [vmem:[%s4064_s13 + $0x54] sm:$0xf] %vm2321_vm10, %v2683_v5 }
 0x50a   : > { %v2072_v46 = vpop.permute.xlu0 %2071 }
 0x50b   : > { %v2204_v59 = vsel %vm2176_vm9, %v2171_v9, %v2072_v46  ;;  %v2070_v11 = vpop.permute.xlu1 %2069 }
 0x50c   : > { %v2688_v12 = vcombine.low %v2204_v59, %v2204_v59  ;;  %v2689_v13 = vcombine.high %v2204_v59, %v2204_v59  ;;  %v2202_v14 = vsel %vm2176_vm9, %v2169_v10, %v2070_v11 }
 0x50d   : > { %v2686_v15 = vcombine.low %v2202_v14, %v2202_v14  ;;  %v2687_v16 = vcombine.high %v2202_v14, %v2202_v14 }
 0x50e   : > { %2348 = vst.msk [vmem:[%s4064_s13 + $0x68] sm:$0xf] %vm2321_vm10, %v2688_v12  ;;  %2349 = vst.msk [vmem:[%s4064_s13 + $0x6c] sm:$0xf] %vm2321_vm10, %v2689_v13 }
 0x50f   : > { %2346 = vst.msk [vmem:[%s4064_s13 + $0x60] sm:$0xf] %vm2321_vm10, %v2686_v15  ;;  %2347 = vst.msk [vmem:[%s4064_s13 + $0x64] sm:$0xf] %vm2321_vm10, %v2687_v16 }
 0x512   : > { %v2076_v49 = vpop.permute.xlu0 %2075 }
 0x513   : > { %v2208_v19 = vsel %vm2176_vm9, %v2175_v18, %v2076_v49  ;;  %v2074_v34 = vpop.permute.xlu1 %2073 }
 0x514   : > { %v2692_v20 = vcombine.low %v2208_v19, %v2208_v19  ;;  %v2693_v21 = vcombine.high %v2208_v19, %v2208_v19  ;;  %v2206_v50 = vsel %vm2176_vm9, %v2173_v63, %v2074_v34 }
 0x515   : > { %v2690_v0 = vcombine.low %v2206_v50, %v2206_v50  ;;  %v2691_v1 = vcombine.high %v2206_v50, %v2206_v50 }
 0x516   : > { %2352 = vst.msk [vmem:[%s4064_s13 + $0x78] sm:$0xf] %vm2321_vm10, %v2692_v20  ;;  %2353 = vst.msk [vmem:[%s4064_s13 + $0x7c] sm:$0xf] %vm2321_vm10, %v2693_v21 }
 0x517   : > { %2350 = vst.msk [vmem:[%s4064_s13 + $0x70] sm:$0xf] %vm2321_vm10, %v2690_v0  ;;  %2351 = vst.msk [vmem:[%s4064_s13 + $0x74] sm:$0xf] %vm2321_vm10, %v2691_v1 }
 0x518   : > { %3404 = shalt.err (!%p3401_p9)
}
 0x519   : > { %s3405_s17 = scalar_lea.hbm %s4226_s21, 2048  ;;  %s3409_s20 = scalar_lea.hbm %s4288_s8, 4096 }
 0x51a   : > { %p3406_p4 = scmp.ne.s32.totalorder %s4226_s21, %s3405_s17  ;;  %p3410_p5 = scmp.lt.u32.totalorder %s4226_s21, %s4288_s8 }
 0x51b   : > { %p3411_p2 = scmp.lt.u32.totalorder %s3409_s20, %s3405_s17  ;;  %p3413_p10 = scmp.lt.u32.totalorder %s3405_s17, %s4226_s21 }
 0x51c   : > { %p3407_p3 = pnand %p3406_p4, %p4313_p1 }
 0x51d   : > { %p3412_p7 = por %p3411_p2, %p3410_p5 }
 0x51e   : > { %p3408_p0 = pneg %p3407_p3 }
 0x51f   : > { %p3414_p11 = por %p3413_p10, %p3412_p7 }
 0x521   : > { %p3415_p12 = pnand %p3414_p11, %p3408_p0 }
 0x523   : > { %3418 = shalt.err (!%p3415_p12)
}
 0x524   : > { %s3495_s11 = smov 64   ;;  %s3496_s22 = smov 4  }
 0x525   : > { %2968 = dma.vmem_to_hbm [thread:$0]  (%p4313_p1), %s4228_s19, 2048, %s4226_s21, %s2355_s9, %s3495_s11, %s3495_s11, %s3496_s22  }
 0x526 PF: > { %s2383_s15 = sand.u32 1, %s3461_s27   ;;  %p4314_p13 = scmp.ne.s32.totalorder %s4302_s3, 0 }
 0x527   : > { %p4315_p8 = scmp.ge.s32.totalorder %s3473_s30, 2  ;;  %s2384_s12 = scalar_lea.sflag [#allocation4], %s2383_s15 }
 0x529   : > { %p2997_p6 = pnand %p4315_p8, %p4314_p13 }
 0x52b   : > { %3456 = dma.done.wait (!%p2997_p6), %s2384_s12, 2048  }
 0x52c   : > { %3458 = vsyncadd (!%p2997_p6), %s2384_s12, 4294965248  ;;  %p25_p9 = scmp.ge.s32.totalorder %s3745_s23, 4   ;;  %s4316_s27 = smov %s3465_s28 }
 0x52d   : > { %s4317_s28 = smov %s3469_s29  ;;  %s4318_s29 = smov %s3757_s26 }
 0x52e   : > { %s4319_s30 = smov %s3745_s23  ;;  %27 = sbr.rel (!%p25_p9) target bundleno = 12 (0xc), region = 125 }
 0x535   :  { %2389 = vsyncpa [#allocation3], 1 }
 0x536   :  { %2391 = vsyncpa [#allocation3 + $0x1], 1 }
 0x537   :  { %2392 = vsyncpa [#allocation6], 1 }
 0x538   :  { %2393 = vsyncpa [#allocation9], 1 }
 0x539   :  { %2394 = vsyncpa [#allocation12], 1 }
 0x53a   :  { %2395 = vsyncpa [#allocation15], 1 }
 0x53b   :  { %2396 = vsyncpa [#allocation4], 1 }
 0x53c   :  { %2398 = vsyncpa [#allocation4 + $0x1], 1 }

// kernel: _lambda_.3
= control target key start
LH: loop header
LB: loop body
LE: loop exit
PB: predicated region body
PF: predicated region fallthrough
CT: control target
= control target key end

     0   :  { %s11654_s0 = inlined_call_operand.hbm [shape: bf16[2,18,18,16], index: 0, kind: input, shape index: {}, may-alias: {0,1}]   ;;  %s11655_s1 = inlined_call_operand.hbm [shape: bf16[2,18,18,16], index: 1, kind: input, shape index: {}, may-alias: {0,1}]   ;;  %s11656_s2 = inlined_call_operand.hbm [shape: bf16[3,16,6], index: 2, kind: input, shape index: {}]   ;;  %s11657_s3 = inlined_call_operand.hbm [shape: f32[1,2], index: 3, kind: input, shape index: {}]   ;;  %s11658_s4 = inlined_call_operand.hbm [shape: f32[2,16,16,2], index: 4, kind: output, shape index: {}]  }
   0x1   :  { %11721 = sst [smem:[#allocation59_spill]] %s11656_s2 }
   0x2   :  { %11722 = sst [smem:[#allocation60_spill]] %s11657_s3 }
   0x3   :  { %11723 = sst [smem:[#allocation61_spill]] %s11658_s4 }
   0x4   :  { %9 = vsyncpa [#allocation4], 0 }
   0x5   :  { %11 = vsyncpa [#allocation4 + $0x1], 0 }
   0x6   :  { %12 = vsyncpa [#allocation7], 0 }
   0x7   :  { %14 = vsyncpa [#allocation7 + $0x1], 0 }
   0x8   :  { %15 = vsyncpa [#allocation10], 0 }
   0x9   :  { %16 = vsyncpa [#allocation5], 0 }
   0xa   :  { %18 = vsyncpa [#allocation5 + $0x1], 0  ;;  %s8247_s15 = smov 0   ;;  %s8249_s16 = smov 0  }
   0xb   :  { %s8251_s17 = smov 0   ;;  %s8253_s18 = smov 0  }
   0xc   :  { %s8255_s19 = smov 0   ;;  %s8257_s20 = smov 0  }
   0xd   :  { %s8259_s21 = smov 0   ;;  %s8261_s22 = smov 0  }
   0xe   :  { %s8263_s23 = smov 0   ;;  %s8265_s24 = smov 0  }
   0xf   :  { %s8267_s25 = smov 0  }
  0x10 LB: > { %11724 = sst [smem:[#allocation17_spill]] %s8173_s18  ;;  %s8303_s26 = sadd.s32 4294967295, %s8201_s25   ;;  %s8201_s25 = sphi %s8267_s25, %s24_s25   ;;  %s8197_s24 = sphi %s8265_s24, %s11982_s24   ;;  %s8193_s23 = sphi %s8263_s23, %s11981_s23   ;;  %s8189_s22 = sphi %s8261_s22, %s11980_s22   ;;  %s8185_s21 = sphi %s8259_s21, %s11979_s21   ;;  %s8181_s20 = sphi %s8257_s20, %s11978_s20   ;;  %s8177_s19 = sphi %s8255_s19, %s11977_s19   ;;  %s8173_s18 = sphi %s8253_s18, %s11976_s18   ;;  %s8169_s17 = sphi %s8251_s17, %s11975_s17   ;;  %s8165_s16 = sphi %s8249_s16, %s11974_s16   ;;  %s8161_s15 = sphi %s8247_s15, %s11973_s15  }
  0x11   : > { %11725 = sst [smem:[#allocation18_spill]] %s8185_s21  ;;  %s33_s28 = sadd.s32 1, %s8193_s23 }
  0x12   : > { %11726 = sst [smem:[#allocation19_spill]] %s8189_s22  ;;  %s36_s29 = sadd.s32 1, %s8197_s24 }
  0x13   : > { %p34_p0 = scmp.ge.s32.totalorder %s33_s28, 2  ;;  %s45_s30 = sadd.s32 1, %s8181_s20 }
  0x14   : > { %p52_p1 = scmp.ne.s32.totalorder %s8181_s20, %s8177_s19  ;;  %p53_p2 = scmp.eq.s32.totalorder %s8201_s25, 0 }
  0x15   : > { %s11984_s28 = smov (%p34_p0, %s33_s28), 0  ;;  %s11986_s29 = smov (!%p34_p0, %s36_s29), %s8197_s24 }
  0x16   : > { %11727 = sst [smem:[#allocation20_spill]] %s11984_s28  ;;  %s41_s5 = ssub.s32 %s8193_s23, %s11984_s28 }
  0x17   : > { %p8322_p3 = por %p53_p2, %p52_p1  ;;  %p38_p4 = scmp.ge.s32.totalorder %s11986_s29, 2 }
  0x18   : > { %p11660_p5 = scmp.ne.s32.totalorder %s8177_s19, %s8173_s18  ;;  %p11665_p6 = scmp.eq.s32.totalorder %s8303_s26, 0 }
  0x19   : > { %s11728_s6 = scalar_select %p8322_p3, 1, 0 }
  0x1a   : > { %s7661_s7 = sshll.u32 %s8193_s23, 2  ;;  %s11988_s29 = smov (%p38_p4, %s11986_s29), 0 }
  0x1b   : > { %11729 = sst [smem:[#allocation21_spill]] %s11988_s29  ;;  %p8337_p7 = por %p11665_p6, %p11660_p5 }
  0x1c   : > { %s7662_s9 = sadd.s32 4, %s7661_s7  ;;  %s40_s10 = ssub.s32 %s8197_s24, %s11988_s29 }
  0x1d   : > { %s11730_s8 = scalar_select %p8337_p7, 1, 0 }
  0x1e   : > { %s7663_s11 = sshll.u32 %s11984_s28, 2  ;;  %s42_s12 = sor.u32 %s41_s5, %s40_s10 }
  0x1f   : > { %s7664_s13 = sadd.s32 4, %s7663_s11  ;;  %p43_p8 = scmp.eq.s32.totalorder %s42_s12, 0 }
  0x20   : > { %s73_s14 = ssub.s32 %s7662_s9, %s7664_s13  ;;  %s77_s4 = sadd.s32 1, %s8169_s17 }
  0x21   : > { %s74_s27 = sor.u32 %s73_s14, %s40_s10  ;;  %p84_p10 = scmp.ne.s32.totalorder %s8169_s17, %s8165_s16 }
  0x22   : > { %s8346_s22 = scalar_select %p43_p8, %s8181_s20, %s45_s30  }
  0x23   : > { %p75_p9 = scmp.eq.s32.totalorder %s74_s27, 0  ;;  %p90_p11 = scmp.ne.s32.totalorder %s8165_s16, %s8161_s15 }
  0x24   : > { %11731 = sst [smem:[#allocation22_spill]] %s8346_s22  ;;  %p158_p12 = scmp.eq.s32.totalorder %s8303_s26, 3 }
  0x25   : > { %s8354_s7 = scalar_select %p75_p9, %s8169_s17, %s77_s4  }
  0x26   : > { %p8358_p13 = por %p84_p10, %p53_p2  ;;  %p8364_p0 = por %p90_p11, %p11665_p6 }
  0x27   : > { %11732 = sst [smem:[#allocation23_spill]] %s8354_s7  ;;  %p8371_p4 = por %p158_p12, %p52_p1 }
  0x28   : > { %s11733_s5 = scalar_select %p8358_p13, 1, 0 }
  0x29   : > { %s11734_s11 = scalar_select %p8364_p0, 1, 0 }
  0x2a   : > { %s11735_s30 = scalar_select %p8371_p4, 1, 0 }
  0x2b   : > { %s11737_s27 = sadd.s32 4294967294, %s8201_s25   ;;  %p7468_p5 = scmp.ge.s32.totalorder %s8201_s25, 1 }
  0x2c   : > { %11736 = sst [smem:[#allocation24_spill]] %s11735_s30  ;;  %p164_p8 = scmp.eq.s32.totalorder %s11737_s27, 3 }
  0x2d   : > { %p171_p9 = scmp.lt.s32.totalorder %s8201_s25, 5  ;;  %p11738_p7 = scmp.ne.s32.totalorder %s8177_s19, %s8173_s18 }
  0x2e   : > { %s8203_s9 = smov [#allocation8]   ;;  %s8204_s13 = smov [#allocation9]  }
  0x2f   : > { %p8382_p3 = por %p164_p8, %p11738_p7  ;;  %p8386_p2 = pnand %p7468_p5, %p171_p9 }
  0x30   : > { %s183_s10 = sshll.u32 %s8203_s9, 4  ;;  %s197_s14 = sshll.u32 %s8204_s13, 4  ;;  %s184_s10 = int_to_ptr.vmem [resolvable:$true] %s183_s10  ;;  %s8398_s14 = int_to_ptr.vmem [resolvable:$true] %s197_s14 }
  0x31   : > { %s11739_s4 = scalar_select %p8382_p3, 1, 0 }
  0x32   : > { %s11741_s15 = scalar_select %p8386_p2, 1, 0 }
  0x33   : > { %11740 = sst [smem:[#allocation25_spill]] %s11739_s4  ;;  %p7825_p1 = pneg %p8386_p2 }
  0x34   : > { %s11743_s2 = sld [smem:[#allocation59_spill]] }
  0x35   : > { %p8394_p10 = pnand %p7825_p1, %p11665_p6 }
  0x37   : > { %p7954_p7 = pneg %p8394_p10 }
  0x3a   : > { %s7952_s28 = scalar_lea.hbm %s11743_s2, 384 }
  0x3b   : > { %p7953_p5 = scmp.ne.s32.totalorder %s11743_s2, %s7952_s28  ;;  %p7959_p8 = scmp.lt.u32.totalorder %s7952_s28, %s11743_s2 }
  0x3d   : > { %p7955_p11 = pnand %p7954_p7, %p7953_p5 }
  0x3f   : > { %p7956_p12 = pneg %p7955_p11 }
  0x41   : > { %p7961_p9 = pnand %p7959_p8, %p7956_p12 }
  0x43   : > { %7964 = shalt.err (!%p7961_p9)
}
  0x44   : > { %s7965_s13 = scalar_lea.vmem %s184_s10, 384  ;;  %p7973_p4 = scmp.lt.s32.totalorder %s184_s10, %s184_s10 }
  0x45   : > { %p7966_p1 = scmp.ne.s32.totalorder %s184_s10, %s7965_s13  ;;  %p7974_p0 = scmp.lt.s32.totalorder %s7965_s13, %s7965_s13 }
  0x47   : > { %p7968_p6 = pnand %p7966_p1, %p7954_p7  ;;  %p7975_p2 = por %p7974_p0, %p7973_p4 }
  0x49   : > { %p7969_p3 = pneg %p7968_p6 }
  0x4b   : > { %p7976_p13 = pnand %p7975_p2, %p7969_p3 }
  0x4d   : > { %7979 = shalt.err (!%p7976_p13)
}
  0x4e   : > { %s8205_s22 = smov 64   ;;  %s8206_s29 = smov 4  }
  0x4f   : > { %7828 = dma.hbm_to_vmem [thread:$0]  (!%p8394_p10), %s11743_s2, 384, %s184_s10, [#allocation7], %s8205_s22, %s8205_s22, %s8206_s29  }
  0x50   : > { %s11744_s3 = sld [smem:[#allocation60_spill]] }
  0x56   : > { %s7980_s9 = scalar_lea.hbm %s11744_s3, 16 }
  0x57   : > { %p7981_p6 = scmp.ne.s32.totalorder %s11744_s3, %s7980_s9  ;;  %p7987_p0 = scmp.lt.u32.totalorder %s7980_s9, %s11744_s3 }
  0x59   : > { %p7983_p3 = pnand %p7981_p6, %p7954_p7 }
  0x5b   : > { %p7984_p13 = pneg %p7983_p3 }
  0x5d   : > { %p7989_p4 = pnand %p7987_p0, %p7984_p13 }
  0x5f   : > { %7992 = shalt.err (!%p7989_p4)
}
  0x60   : > { %s7993_s10 = scalar_lea.vmem %s8398_s14, 16  ;;  %s8000_s18 = scalar_lea.vmem %s8398_s14, 32 }
  0x61   : > { %p7994_p2 = scmp.ne.s32.totalorder %s8398_s14, %s7993_s10  ;;  %p8001_p12 = scmp.lt.s32.totalorder %s8398_s14, %s8398_s14 }
  0x62   : > { %p8002_p8 = scmp.lt.s32.totalorder %s8000_s18, %s7993_s10 }
  0x63   : > { %p7996_p5 = pnand %p7994_p2, %p7954_p7 }
  0x64   : > { %p8003_p9 = por %p8002_p8, %p8001_p12 }
  0x65   : > { %p7997_p11 = pneg %p7996_p5 }
  0x67   : > { %p8004_p1 = pnand %p8003_p9, %p7997_p11 }
  0x69   : > { %8007 = shalt.err (!%p8004_p1)
}
  0x6a   : > { %7831 = dma.hbm_to_vmem [thread:$0]  (!%p8394_p10), %s11744_s3, 16, %s8398_s14, [#allocation10]  }
  0x6b   : > { %p7471_p6 = scmp.ge.s32.totalorder %s8201_s25, 4 }
  0x6c   : > { %p11745_p7 = scmp.ne.s32.totalorder (!%p7471_p6), %s11728_s6, 0 }
  0x6d   : > { %204 = sbr.rel (%p7471_p6) target bundleno = 177 (0xb1), region = 24 }
  0x74   : > { %207 = sbr.rel (!%p11745_p7) target bundleno = 146 (0x92), region = 28  ;;  %s208_s22 = sand.u32 (%p11745_p7), 1, %s8181_s20  }
  0x75   : > { %s7806_s29 = smul.u32 (%p11745_p7), 96, %s208_s22  ;;  %s8452_s28 = scalar_lea.sflag (%p11745_p7), [#allocation4], %s208_s22 }
  0x76   : > { %s7807_s12 = smul.u32 (%p11745_p7), 24, %s8193_s23  ;;  %s8012_s2 = scalar_lea.hbm (%p11745_p7), %s11654_s0, 6912 }
  0x77   : > { %s212_s7 = scalar_lea.vmem (%p11745_p7), [#allocation3], %s7806_s29  ;;  %s7808_s4 = smul.u32 (%p11745_p7), 54, %s8197_s24 }
  0x78   : > { %s230_s27 = sshll.u32 (%p11745_p7), %s212_s7, 4  ;;  %s8456_s27 = int_to_ptr.vmem [resolvable:$true] %s230_s27 }
  0x79   : > { %s225_s14 = sadd.s32 (%p11745_p7), %s7808_s4, %s7807_s12 }
  0x7a   : > { %s7477_s9 = sshll.u32 (%p11745_p7), %s225_s14, 6 }
  0x7b   : > { %s227_s6 = scalar_lea.hbm %s11654_s0, %s7477_s9 }
  0x7c   : > { %s8008_s18 = scalar_lea.hbm %s227_s6, 1536  ;;  %p8013_p3 = scmp.lt.u32.totalorder %s227_s6, %s11654_s0 }
  0x7d   : > { %p8009_p10 = scmp.ne.s32.totalorder %s227_s6, %s8008_s18  ;;  %p8014_p13 = scmp.lt.u32.totalorder %s8012_s2, %s8008_s18 }
  0x7e   : > { %p8016_p4 = scmp.lt.u32.totalorder %s8008_s18, %s227_s6 }
  0x7f   : > { %p8015_p0 = por %p8014_p13, %p8013_p3 }
  0x81   : > { %p8017_p2 = por %p8016_p4, %p8015_p0 }
  0x83   : > { %p8018_p5 = pnand %p8017_p2, %p8009_p10 }
  0x85   : > { %8021 = shalt.err (!%p8018_p5)
}
  0x86   : > { %s8022_s29 = scalar_lea.vmem %s8456_s27, 1536  ;;  %s8207_s7 = smov [#allocation3]  }
  0x87   : > { %p8023_p11 = scmp.ne.s32.totalorder %s8456_s27, %s8022_s29  ;;  %s8026_s12 = sshll.u32 %s8207_s7, 4  ;;  %s8027_s12 = int_to_ptr.vmem [resolvable:$false] %s8026_s12 }
  0x88   : > { %s8028_s4 = scalar_lea.vmem %s8027_s12, 3072  ;;  %p8029_p12 = scmp.lt.s32.totalorder %s8456_s27, %s8027_s12 }
  0x89   : > { %p8030_p8 = scmp.lt.s32.totalorder %s8028_s4, %s8022_s29 }
  0x8b   : > { %p8031_p9 = por %p8030_p8, %p8029_p12 }
  0x8d   : > { %p8032_p1 = pnand %p8031_p9, %p8023_p11 }
  0x8f   : > { %8035 = shalt.err (!%p8032_p1)
}
  0x90   : > { %s8208_s2 = smov 64   ;;  %s8209_s3 = smov 4  }
  0x91   : > { %236 = dma.hbm_to_vmem [thread:$0]  %s227_s6, 1536, %s8456_s27, %s8452_s28, %s8208_s2, %s8208_s2, %s8209_s3  }
  0x92 PF: > { %s240_s14 = sand.u32 1, %s8201_s25   ;;  %s242_s9 = sand.u32 1, %s8169_s17  }
  0x93   : > { %s7809_s13 = smul.u32 24, %s242_s9  ;;  %s8483_s6 = scalar_lea.sflag [#allocation7], %s240_s14 }
  0x94   : > { %s7370_s10 = smul.u32 24, %s8193_s23  ;;  %p11746_p7 = scmp.ne.s32.totalorder %s11733_s5, 0 }
  0x95   : > { %s7371_s18 = smul.u32 54, %s8197_s24  ;;  %s244_s21 = scalar_lea.vmem [#allocation6], %s7809_s13 }
  0x96   : > { %s256_s30 = sshll.u32 %s244_s21, 4  ;;  %s8040_s9 = scalar_lea.hbm %s11655_s1, 6912  ;;  %s8476_s30 = int_to_ptr.vmem [resolvable:$true] %s256_s30 }
  0x97   : > { %s7372_s22 = sadd.s32 %s7371_s18, %s7370_s10 }
  0x98   : > { %s7480_s29 = sshll.u32 %s7372_s22, 6 }
  0x99   : > { %s7374_s28 = scalar_lea.hbm %s11655_s1, %s7480_s29 }
  0x9a   : > { %s8481_s27 = scalar_lea.hbm %s7374_s28, 1536  ;;  %s8064_s4 = scalar_lea.hbm %s7374_s28, 1920 }
  0x9b   : > { %p8037_p6 = scmp.ne.s32.totalorder %s8481_s27, %s8064_s4  ;;  %p8041_p13 = scmp.lt.u32.totalorder %s8481_s27, %s11655_s1 }
  0x9c   : > { %p8042_p0 = scmp.lt.u32.totalorder %s8040_s9, %s8064_s4  ;;  %p8044_p2 = scmp.lt.u32.totalorder %s8064_s4, %s8481_s27 }
  0x9d   : > { %p8038_p10 = pnand %p8037_p6, %p11746_p7 }
  0x9e   : > { %p8043_p4 = por %p8042_p0, %p8041_p13 }
  0x9f   : > { %p8039_p3 = pneg %p8038_p10 }
  0xa0   : > { %p8045_p5 = por %p8044_p2, %p8043_p4 }
  0xa2   : > { %p8046_p11 = pnand %p8045_p5, %p8039_p3 }
  0xa4   : > { %8049 = shalt.err (!%p8046_p11)
}
  0xa5   : > { %s8050_s14 = scalar_lea.vmem %s8476_s30, 384  ;;  %s8210_s18 = smov [#allocation6]  }
  0xa6   : > { %p8051_p12 = scmp.ne.s32.totalorder %s8476_s30, %s8050_s14  ;;  %s8054_s21 = sshll.u32 %s8210_s18, 4  ;;  %s8055_s21 = int_to_ptr.vmem [resolvable:$false] %s8054_s21 }
  0xa7   : > { %s8056_s22 = scalar_lea.vmem %s8055_s21, 768  ;;  %p8057_p1 = scmp.lt.s32.totalorder %s8476_s30, %s8055_s21 }
  0xa8   : > { %p8052_p8 = pnand %p8051_p12, %p11746_p7  ;;  %p8058_p6 = scmp.lt.s32.totalorder %s8056_s22, %s8050_s14 }
  0xaa   : > { %p8053_p9 = pneg %p8052_p8  ;;  %p8059_p10 = por %p8058_p6, %p8057_p1 }
  0xac   : > { %p8060_p13 = pnand %p8059_p10, %p8053_p9 }
  0xae   : > { %8063 = shalt.err (!%p8060_p13)
}
  0xaf   : > { %s8211_s29 = smov 64   ;;  %s8212_s7 = smov 4  }
  0xb0   : > { %7816 = dma.hbm_to_vmem [thread:$0]  (%p11746_p7), %s8481_s27, 384, %s8476_s30, %s8483_s6, %s8211_s29, %s8211_s29, %s8212_s7  }
  0xb1 PF: > { %p11747_p3 = scmp.ne.s32.totalorder %s11741_s15, 0 }
  0xb3   : > { %268 = sbr.rel (%p11747_p3) target bundleno = 830 (0x33e), region = 36 }
  0xba   : > { %s8509_s12 = sand.u32 1, %s8177_s19   ;;  %p11748_p0 = scmp.ne.s32.totalorder %s11730_s8, 0 }
  0xbb   : > { %s7810_s28 = smul.u32 96, %s8509_s12  ;;  %s271_s4 = scalar_lea.sflag [#allocation4], %s8509_s12 }
  0xbd   : > { %s8513_s2 = scalar_lea.vmem [#allocation3], %s7810_s28 }
  0xbe   : > { %8138 = dma.done.wait (%p11748_p0), %s271_s4, 1536  }
  0xbf   : > { %8140 = vsyncadd (%p11748_p0), %s271_s4, 4294965760  ;;  %s279_s5 = sand.u32 1, %s8303_s26   ;;  %s281_s15 = sand.u32 1, %s8165_s16  }
  0xc0   : > { %s7811_s30 = smul.u32 24, %s281_s15  ;;  %s280_s27 = scalar_lea.sflag [#allocation7], %s279_s5 }
  0xc1   : > { %p11749_p7 = scmp.ne.s32.totalorder %s11734_s11, 0 }
  0xc2   : > { %s8521_s6 = scalar_lea.vmem [#allocation6], %s7811_s30 }
  0xc3   : > { %8142 = dma.done.wait (%p11749_p7), %s280_s27, 384  }
  0xc4   : > { %8144 = vsyncadd (%p11749_p7), %s280_s27, 4294966912  ;;  %p11750_p4 = scmp.eq.s32.totalorder %s8303_s26, 0 }
  0xc6   : > { %8146 = dma.done.wait (%p11750_p4), [#allocation7], 384   ;;  %p11751_p2 = pmov %p11750_p4 }
  0xc8   : > { %8148 = vsyncadd (%p11751_p2), [#allocation7], 4294966912  ;;  %p11752_p5 = pmov %p11751_p2 }
  0xc9   : > { %p11753_p11 = pmov %p11751_p2 }
  0xca   : > { %8150 = dma.done.wait (%p11752_p5), [#allocation10], 16  }
  0xcb   : > { %8152 = vsyncadd (%p11753_p11), [#allocation10], 4294967280  ;;  %v393_v0 = vlaneseq  ;;  %v8213_v1 = vmov 0.0   ;;  %vm8214_vm0 = vmmov 0   ;;  %v8215_v2 = vmov 1966171168  }
  0xcc   : > { %7700 = vmatprep.subr.bf16.mxu0 %v8213_v1  ;;  %7702 = vmatprep.mubr.msk.bf16.mxu0 %vm8214_vm0, %v8213_v1  ;;  %v391_v3 = vunpack.c.l.s4 %v8215_v2  ;;  %v7945_v7 = vld [vmem:[#allocation8] sm:$0xff]   ;;  %v7946_v8 = vld [vmem:[#allocation8 + $0x8] sm:$0xff]   ;;  %v7485_v9 = vld.sshfl [vmem:[%s8513_s2] sm:$0x33 pattern:$0x75316420] }
  0xcd   : > { %v8538_v4 = vshrl.u32 %v393_v0, 7  ;;  %7701 = vmatpush3.bf16.msra.mxu0 %v7945_v7  ;;  %7738 = vmatprep.subr.bf16.mxu1 %v7946_v8  ;;  %v7486_v10 = vld.sshfl [vmem:[%s8513_s2 + $0x4] sm:$0x33 pattern:$0x75316420]  ;;  %v389_v11 = vcombine.high %v7485_v9, %v7485_v9  ;;  %v8549_v16 = vld [vmem:[#allocation8 + $0x8] sm:$0xff]  }
  0xce   : > { %v392_v5 = vunpack.c.0.s8 %v391_v3  ;;  %7792 = vmatprep.subr.bf16.mxu0 %v8213_v1  ;;  %7739 = vmatpush3.bf16.msra.mxu1 %v7946_v8  ;;  %v413_v13 = vcombine.high %v7486_v10, %v7486_v10  ;;  %v7548_v15 = vld.sshfl [vmem:[%s8513_s2 + $0xc] sm:$0x33 pattern:$0x75316420]  ;;  %vm1325_vm1 = vcmask 130048   ;;  %vm2070_vm2 = vcmask 15360  }
  0xcf   : > { %v7549_v18 = vld.sshfl [vmem:[%s8513_s2 + $0x10] sm:$0x33 pattern:$0x75316420]  ;;  %v2701_v19 = vcombine.high %v7548_v15, %v7548_v15  ;;  %7756 = vmatprep.subr.bf16.mxu1 %v8549_v16  ;;  %s8217_s26 = smov 124   ;;  %vm2159_vm3 = vcmask 1046528  }
  0xd0   : > { %v8541_v6 = vsub.s32 %v392_v5, %v8538_v4  ;;  %v2725_v22 = vcombine.high %v7549_v18, %v7549_v18  ;;  %v7550_v24 = vld.sshfl [vmem:[%s8513_s2 + $0x14] sm:$0x1 pattern:$0x75316420]  ;;  %s8218_s8 = smov 126   ;;  %vm4819_vm4 = vcmask 1045504  }
  0xd1   : > { %v7551_v28 = vld.sshfl [vmem:[%s8513_s2 + $0x18] sm:$0x33 pattern:$0x75316420]  ;;  %s7484_s11 = sshll.u32 %s8509_s12, 7  ;;  %s11961_s9 = sld [smem:[#allocation18_spill]] }
  0xd2   : > { %v396_v12 = vrot.slane %v7485_v9, %v8541_v6  ;;  %v420_v14 = vrot.slane %v7486_v10, %v8541_v6  ;;  %v403_v17 = vrot.slane %v389_v11, %v8541_v6  ;;  %v8554_v20 = vrot.slane %v7548_v15, %v8541_v6  ;;  %v7552_v42 = vld.sshfl [vmem:[%s8513_s2 + $0x1c] sm:$0x33 pattern:$0x75316420]  ;;  %s11493_s3 = scalar_lea.vmem [#allocation11], %s7484_s11  ;;  %s11962_s13 = sld [smem:[#allocation19_spill]] }
  0xd3   : > { %v427_v21 = vrot.slane %v413_v13, %v8541_v6  ;;  %v8558_v23 = vrot.slane %v7549_v18, %v8541_v6  ;;  %v2715_v27 = vrot.slane %v2701_v19, %v8541_v6  ;;  %v8565_v29 = vrot.slane %v7550_v24, %v8541_v6  ;;  %v7487_v59 = vld.sshfl [vmem:[%s8513_s2 + $0x8] sm:$0x1 pattern:$0x75316420]  ;;  %s7328_s21 = sshll.u32 %s11493_s3, 4  ;;  %s11963_s22 = sld [smem:[#allocation24_spill]]  ;;  %s11582_s21 = int_to_ptr.vmem [resolvable:$true] %s7328_s21 }
  0xd4   : > { %v878_v25 = vcombine.low %v396_v12, %v403_v17  ;;  %v7509_v26 = vcombine.high %v396_v12, %v403_v17  ;;  %v8568_v32 = vrot.slane %v2725_v22, %v8541_v6  ;;  %v2763_v33 = vcombine.high %v7551_v28, %v7551_v28  ;;  %v7553_v11 = vld.sshfl [vmem:[%s8513_s2 + $0x20] sm:$0x1 pattern:$0x75316420]  ;;  %s11964_s4 = sld [smem:[#allocation61_spill]]  ;;  %s7312_s5 = scalar_lea.sflag [#allocation5], %s8509_s12 }
  0xd5   : > { %v880_v30 = vcombine.low %v420_v14, %v427_v21  ;;  %v7510_v31 = vcombine.high %v420_v14, %v427_v21  ;;  %v3128_v36 = vcombine.low %v8554_v20, %v2715_v27  ;;  %v7569_v37 = vcombine.high %v8554_v20, %v2715_v27  ;;  %v7950_v12 = vld [vmem:[#allocation8 + $0x10] sm:$0xff]   ;;  %s8065_s15 = scalar_lea.vmem %s11582_s21, 2048  ;;  %s8219_s30 = smov [#allocation11]  }
  0xd6   : > { %v888_v34 = vrot.slane %v878_v25, %v8541_v6  ;;  %v895_v35 = vrot.slane %v7509_v26, %v8541_v6  ;;  %v3130_v40 = vcombine.low %v8558_v23, %v8568_v32  ;;  %v7570_v41 = vcombine.high %v8558_v23, %v8568_v32  ;;  %v7554_v24 = vld.sshfl [vmem:[%s8513_s2 + $0x24] sm:$0x33 pattern:$0x75316420]  ;;  %p8066_p12 = scmp.ne.s32.totalorder %s11582_s21, %s8065_s15  ;;  %s8069_s27 = sshll.u32 %s8219_s30, 4  ;;  %s8070_s27 = int_to_ptr.vmem [resolvable:$false] %s8069_s27 }
  0xd7   : > { %v902_v38 = vrot.slane %v880_v30, %v8541_v6  ;;  %v909_v39 = vrot.slane %v7510_v31, %v8541_v6  ;;  %v3138_v44 = vrot.slane %v3128_v36, %v8541_v6  ;;  %v3145_v45 = vrot.slane %v7569_v37, %v8541_v6  ;;  %s7665_s10 = sshll.u32 %s11961_s9, 4  ;;  %p8072_p6 = scmp.lt.s32.totalorder %s11582_s21, %s8070_s27 }
  0xd8   : > { %v910_v43 = vcombine.low %v888_v34, %v895_v35  ;;  %v8584_v46 = vrot.slane %v7551_v28, %v8541_v6  ;;  %v3152_v48 = vrot.slane %v3130_v40, %v8541_v6  ;;  %v3159_v49 = vrot.slane %v7570_v41, %v8541_v6  ;;  %v7555_v28 = vld.sshfl [vmem:[%s8513_s2 + $0x28] sm:$0x33 pattern:$0x75316420]  ;;  %s7657_s14 = sshll.u32 %s11962_s13, 5 }
  0xd9   : > { %v911_v47 = vcombine.low %v902_v38, %v909_v39  ;;  %v8589_v50 = vrot.slane %v2763_v33, %v8541_v6  ;;  %v3160_v52 = vcombine.low %v3138_v44, %v3145_v45  ;;  %v2787_v54 = vcombine.high %v7552_v42, %v7552_v42  ;;  %v7556_v35 = vld.sshfl [vmem:[%s8513_s2 + $0x2c] sm:$0x1 pattern:$0x75316420]  ;;  %s7325_s18 = sadd.s32 %s7665_s10, %s7657_s14  ;;  %p11965_p8 = scmp.ne.s32.totalorder %s11963_s22, 0 }
  0xda   : > { %v918_v51 = vrot.slane %v910_v43, %v8541_v6  ;;  %v2778_v53 = vcombine.high %v8584_v46, %v8584_v46  ;;  %v3161_v56 = vcombine.low %v3152_v48, %v3159_v49  ;;  %v8598_v58 = vrot.slane %v7552_v42, %v8541_v6  ;;  %v7557_v39 = vld.sshfl [vmem:[%s8513_s2 + $0x30] sm:$0x33 pattern:$0x75316420]  ;;  %s7658_s29 = sshll.u32 %s7325_s18, 7 }
  0xdb   : > { %v925_v55 = vrot.slane %v911_v47, %v8541_v6  ;;  %v2779_v57 = vcombine.high %v8589_v50, %v8589_v50  ;;  %v3168_v60 = vrot.slane %v3160_v52, %v8541_v6  ;;  %v8603_v61 = vrot.slane %v2787_v54, %v8541_v6  ;;  %p8067_p9 = pnand %p8066_p12, %p11965_p8 }
  0xdc   : > { %v3177_v62 = vcombine.low %v8565_v29, %v8584_v46  ;;  %v3178_v63 = vcombine.low %v8589_v50, %v2778_v53  ;;  %v3175_v2 = vrot.slane %v3161_v56, %v8541_v6  ;;  %v2802_v3 = vcombine.high %v8598_v58, %v8598_v58  ;;  %v7558_v53 = vld.sshfl [vmem:[%s8513_s2 + $0x34] sm:$0x33 pattern:$0x75316420] }
  0xdd   : > { %v926_v0 = vcombine.low %v918_v51, %v925_v55  ;;  %v3179_v5 = vcombine.low %v2779_v57, %v8598_v58  ;;  %v443_v9 = vrot.slane %v7487_v59, %v8541_v6  ;;  %v466_v10 = vcombine.high %v8554_v20, %v8554_v20  ;;  %p8068_p1 = pneg %p8067_p9 }
  0xde   : > { %v3187_v7 = vrot.slane %v3177_v62, %v8541_v6  ;;  %v3194_v8 = vrot.slane %v3178_v63, %v8541_v6  ;;  %v3176_v13 = vcombine.low %v3168_v60, %v3175_v2  ;;  %v3180_v14 = vcombine.low %v8603_v61, %v2802_v3 }
  0xdf   : > { %7703 = vmatmul.mubr.msk.bf16.vlgmr.msra.gmra.mrb[0].mxu0 %vm1325_vm1, %v926_v0  ;;  %v3201_v15 = vrot.slane %v3179_v5, %v8541_v6  ;;  %v467_v17 = vcombine.high %v2715_v27, %v2715_v27  ;;  %v490_v19 = vcombine.high %v8558_v23, %v8558_v23  ;;  %v927_v21 = vcombine.low %v443_v9, %v8554_v20 }
  0xe0   : > { %v3209_v18 = vcombine.low %v3187_v7, %v3194_v8  ;;  %7706 = vmatprep.mubr.msk.bf16.mxu0 %vm8214_vm0, %v8213_v1  ;;  %v928_v22 = vcombine.low %v2715_v27, %v466_v10  ;;  %7740 = vmatprep.mubr.msk.bf16.mxu1 %vm1325_vm1, %v3176_v13  ;;  %v3208_v25 = vrot.slane %v3180_v14, %v8541_v6 }
  0xe1   : > { %v929_v26 = vcombine.low %v467_v17, %v8558_v23  ;;  %v2803_v30 = vcombine.high %v8603_v61, %v8603_v61  ;;  %v8634_v31 = vrot.slane %v7553_v11, %v8541_v6  ;;  %v930_v20 = vcombine.low %v8568_v32, %v490_v19  ;;  %7793 = vmatpush3.bf16.msra.mxu0 %v7950_v12 }
  0xe2   : > { %v3217_v33 = vrot.slane %v3209_v18, %v8541_v6  ;;  %v937_v27 = vrot.slane %v927_v21, %v8541_v6  ;;  %v944_v34 = vrot.slane %v928_v22, %v8541_v6  ;;  %v3210_v36 = vcombine.low %v3201_v15, %v3208_v25 }
  0xe3   : > { %v951_v23 = vrot.slane %v929_v26, %v8541_v6  ;;  %v2825_v37 = vcombine.high %v7554_v24, %v7554_v24  ;;  %v8643_v38 = vrot.slane %v7554_v24, %v8541_v6  ;;  %v958_v40 = vrot.slane %v930_v20, %v8541_v6 }
  0xe4   : > { %v959_v41 = vcombine.low %v937_v27, %v944_v34  ;;  %v2849_v42 = vcombine.high %v7555_v28, %v7555_v28  ;;  %v8648_v43 = vrot.slane %v7555_v28, %v8541_v6  ;;  %v3224_v44 = vrot.slane %v3210_v36, %v8541_v6 }
  0xe5   : > { %v8652_v45 = vrot.slane %v2825_v37, %v8541_v6  ;;  %v3226_v47 = vcombine.low %v2803_v30, %v8634_v31  ;;  %v8656_v48 = vrot.slane %v7556_v35, %v8541_v6  ;;  %v960_v49 = vcombine.low %v951_v23, %v958_v40  ;;  %v7561_v37 = vld.sshfl [vmem:[%s8513_s2 + $0x40] sm:$0x33 pattern:$0x75316420] }
  0xe6   : > { %v967_v51 = vrot.slane %v959_v41, %v8541_v6  ;;  %v8660_v52 = vrot.slane %v2849_v42, %v8541_v6  ;;  %v2887_v54 = vcombine.high %v7557_v39, %v7557_v39  ;;  %v3225_v55 = vcombine.low %v3217_v33, %v3224_v44  ;;  %v7559_v33 = vld.sshfl [vmem:[%s8513_s2 + $0x38] sm:$0x1 pattern:$0x75316420] }
  0xe7   : > { %v3227_v56 = vcombine.low %v8643_v38, %v8652_v45  ;;  %v7571_v57 = vcombine.high %v8643_v38, %v8652_v45  ;;  %v3236_v59 = vrot.slane %v3226_v47, %v8541_v6  ;;  %v974_v60 = vrot.slane %v960_v49, %v8541_v6  ;;  %v7562_v44 = vld.sshfl [vmem:[%s8513_s2 + $0x44] sm:$0x1 pattern:$0x75316420] }
  0xe8   : > { %v3229_v62 = vcombine.low %v8648_v43, %v8660_v52  ;;  %v8672_v63 = vrot.slane %v7557_v39, %v8541_v6  ;;  %v8675_v0 = vrot.slane %v2887_v54, %v8541_v6  ;;  %7741 = vmatmul.mubr.msk.bf16.vlgmr.msra.gmra.mrb[0].mxu1 %vm1325_vm1, %v3225_v55  ;;  %v8681_v5 = vrot.slane %v7558_v53, %v8541_v6  ;;  %v7563_v54 = vld.sshfl [vmem:[%s8513_s2 + $0x48] sm:$0x33 pattern:$0x75316420] }
  0xe9   : > { %v3243_v2 = vrot.slane %v3227_v56, %v8541_v6  ;;  %v3250_v3 = vrot.slane %v7571_v57, %v8541_v6  ;;  %v7572_v7 = vcombine.high %v8648_v43, %v8660_v52  ;;  %v975_v8 = vcombine.low %v967_v51, %v974_v60  ;;  %7757 = vmatpush3.bf16.msra.mxu1 %v8549_v16 }
  0xea   : > { %v3257_v9 = vrot.slane %v3229_v62, %v8541_v6  ;;  %v2902_v10 = vcombine.high %v8672_v63, %v8672_v63  ;;  %v2903_v11 = vcombine.high %v8675_v0, %v8675_v0  ;;  %v3276_v13 = vcombine.low %v8656_v48, %v8672_v63  ;;  %7762 = vmatprep.subr.bf16.mxu1 %v8213_v1 }
  0xeb   : > { %v3258_v12 = vcombine.low %v3236_v59, %v3243_v2  ;;  %v3285_v14 = vrot.slane %v7572_v7, %v8541_v6  ;;  %v491_v15 = vcombine.high %v8568_v32, %v8568_v32  ;;  %7707 = vmatmul.mubr.msk.bf16.gmra.mrb[4].mxu0 %vm1325_vm1, %v975_v8  ;;  %v977_v16 = vcombine.low %v8584_v46, %v8589_v50 }
  0xec   : > { %v3259_v17 = vcombine.low %v3250_v3, %v3257_v9  ;;  %v3277_v18 = vcombine.low %v8675_v0, %v2902_v10  ;;  %v3278_v19 = vcombine.low %v2903_v11, %v8681_v5  ;;  %v3292_v22 = vrot.slane %v3276_v13, %v8541_v6  ;;  %7710 = vmatprep.mubr.msk.bf16.mxu0 %vm8214_vm0, %v8213_v1 }
  0xed   : > { %v3266_v21 = vrot.slane %v3258_v12, %v8541_v6  ;;  %v976_v32 = vcombine.low %v491_v15, %v8565_v29  ;;  %v7511_v24 = vcombine.high %v8584_v46, %v8589_v50  ;;  %v979_v30 = vcombine.low %v8598_v58, %v8603_v61  ;;  %v7560_v46 = vld.sshfl [vmem:[%s8513_s2 + $0x3c] sm:$0x33 pattern:$0x75316420] }
  0xee   : > { %v3273_v25 = vrot.slane %v3259_v17, %v8541_v6  ;;  %v3299_v26 = vrot.slane %v3277_v18, %v8541_v6  ;;  %v3306_v28 = vrot.slane %v3278_v19, %v8541_v6  ;;  %v3307_v20 = vcombine.low %v3285_v14, %v3292_v22 }
  0xef   : > { %v986_v27 = vrot.slane %v976_v32, %v8541_v6  ;;  %v8717_v29 = vrot.slane %v977_v16, %v8541_v6  ;;  %v8720_v34 = vrot.slane %v7511_v24, %v8541_v6  ;;  %v8724_v36 = vrot.slane %v979_v30, %v8541_v6 }
  0xf0   : > { %v3274_v50 = vcombine.low %v3266_v21, %v3273_v25  ;;  %v3308_v35 = vcombine.low %v3299_v26, %v3306_v28  ;;  %v2911_v23 = vcombine.high %v7558_v53, %v7558_v53  ;;  %v3315_v39 = vrot.slane %v3307_v20, %v8541_v6 }
  0xf1   : > { %v1008_v40 = vcombine.low %v986_v27, %v8717_v29  ;;  %v2926_v41 = vcombine.high %v8681_v5, %v8681_v5  ;;  %v8732_v42 = vrot.slane %v7559_v33, %v8541_v6  ;;  %v1009_v49 = vcombine.low %v8720_v34, %v8724_v36 }
  0xf2   : > { %7744 = vmatprep.mubr.msk.bf16.mxu1 %vm1325_vm1, %v3274_v50  ;;  %v3322_v47 = vrot.slane %v3308_v35, %v8541_v6  ;;  %v8740_v51 = vrot.slane %v2911_v23, %v8541_v6  ;;  %v2949_v53 = vcombine.high %v7560_v46, %v7560_v46  ;;  %v8745_v56 = vrot.slane %v7560_v46, %v8541_v6 }
  0xf3   : > { %v1016_v55 = vrot.slane %v1008_v40, %v8541_v6  ;;  %v2973_v57 = vcombine.high %v7561_v37, %v7561_v37  ;;  %v8748_v59 = vrot.slane %v7561_v37, %v8541_v6  ;;  %v1023_v62 = vrot.slane %v1009_v49, %v8541_v6  ;;  %v7564_v37 = vld.sshfl [vmem:[%s8513_s2 + $0x4c] sm:$0x33 pattern:$0x75316420] }
  0xf4   : > { %v3323_v60 = vcombine.low %v3315_v39, %v3322_v47  ;;  %v2927_v2 = vcombine.high %v8740_v51, %v8740_v51  ;;  %v8754_v3 = vrot.slane %v2949_v53, %v8541_v6  ;;  %v3324_v7 = vcombine.low %v8740_v51, %v2926_v41  ;;  %v7565_v47 = vld.sshfl [vmem:[%s8513_s2 + $0x50] sm:$0x1 pattern:$0x75316420] }
  0xf5   : > { %v8758_v8 = vrot.slane %v2973_v57, %v8541_v6  ;;  %v8761_v9 = vrot.slane %v7562_v44, %v8541_v6  ;;  %v3011_v10 = vcombine.high %v7563_v54, %v7563_v54  ;;  %v1024_v11 = vcombine.low %v1016_v55, %v1023_v62 }
  0xf6   : > { %7745 = vmatmul.mubr.msk.bf16.gmra.mrb[4].mxu1 %vm1325_vm1, %v3323_v60  ;;  %v3325_v12 = vcombine.low %v2927_v2, %v8732_v42  ;;  %v3326_v13 = vcombine.low %v8745_v56, %v8754_v3  ;;  %v7573_v14 = vcombine.high %v8745_v56, %v8754_v3  ;;  %v3334_v15 = vrot.slane %v3324_v7, %v8541_v6  ;;  %v7567_v7 = vld.sshfl [vmem:[%s8513_s2 + $0x58] sm:$0x33 pattern:$0x75316420] }
  0xf7   : > { %v8771_v17 = vrot.slane %v7563_v54, %v8541_v6  ;;  %v8774_v18 = vrot.slane %v3011_v10, %v8541_v6  ;;  %v3373_v19 = vcombine.low %v8748_v59, %v8758_v8  ;;  %7711 = vmatmul.mubr.msk.bf16.gmra.mrb[8].mxu0 %vm1325_vm1, %v1024_v11  ;;  %v7574_v32 = vcombine.high %v8748_v59, %v8758_v8 }
  0xf8   : > { %v3341_v16 = vrot.slane %v3325_v12, %v8541_v6  ;;  %v3348_v21 = vrot.slane %v3326_v13, %v8541_v6  ;;  %v3355_v22 = vrot.slane %v7573_v14, %v8541_v6  ;;  %7714 = vmatprep.mubr.msk.bf16.mxu0 %vm8214_vm0, %v8213_v1  ;;  %v590_v28 = vcombine.high %v8643_v38, %v8643_v38 }
  0xf9   : > { %v3026_v24 = vcombine.high %v8771_v17, %v8771_v17  ;;  %v3375_v25 = vcombine.low %v8761_v9, %v8771_v17  ;;  %v3383_v26 = vrot.slane %v3373_v19, %v8541_v6  ;;  %v3390_v20 = vrot.slane %v7574_v32, %v8541_v6 }
  0xfa   : > { %v3356_v30 = vcombine.low %v3334_v15, %v3341_v16  ;;  %v3357_v33 = vcombine.low %v3348_v21, %v3355_v22  ;;  %v591_v27 = vcombine.high %v8652_v45, %v8652_v45  ;;  %v7512_v35 = vcombine.high %v8598_v58, %v8603_v61  ;;  %v7566_v61 = vld.sshfl [vmem:[%s8513_s2 + $0x54] sm:$0x33 pattern:$0x75316420] }
  0xfb   : > { %v3376_v46 = vcombine.low %v8774_v18, %v3026_v24  ;;  %v3397_v50 = vrot.slane %v3375_v25, %v8541_v6  ;;  %v1026_v23 = vcombine.low %v8634_v31, %v8643_v38  ;;  %v3405_v41 = vcombine.low %v3383_v26, %v3390_v20  ;;  %v7568_v24 = vld.sshfl [vmem:[%s8513_s2 + $0x5c] sm:$0x1 pattern:$0x75316420]  ;;  %s11589_s2 = scalar_lea.hbm %s11964_s4, %s7658_s29 }
  0xfc   : > { %v3364_v39 = vrot.slane %v3356_v30, %v8541_v6  ;;  %v3371_v40 = vrot.slane %v3357_v33, %v8541_v6  ;;  %v1027_v44 = vcombine.low %v8652_v45, %v590_v28  ;;  %v1028_v53 = vcombine.low %v591_v27, %v8648_v43 }
  0xfd   : > { %v3404_v49 = vrot.slane %v3376_v46, %v8541_v6  ;;  %v8810_v54 = vrot.slane %v7512_v35, %v8541_v6  ;;  %v8813_v58 = vrot.slane %v1026_v23, %v8541_v6  ;;  %v3413_v38 = vrot.slane %v3405_v41, %v8541_v6 }
  0xfe   : > { %v3372_v31 = vcombine.low %v3364_v39, %v3371_v40  ;;  %v8818_v55 = vrot.slane %v1027_v44, %v8541_v6  ;;  %v3027_v45 = vcombine.high %v8774_v18, %v8774_v18  ;;  %v8823_v60 = vrot.slane %v1028_v53, %v8541_v6 }
  0xff   : > { %v3406_v57 = vcombine.low %v3397_v50, %v3404_v49  ;;  %v1057_v62 = vcombine.low %v8810_v54, %v8813_v58  ;;  %v3035_v2 = vcombine.high %v7564_v37, %v7564_v37  ;;  %v8830_v10 = vrot.slane %v7564_v37, %v8541_v6 }
 0x100   : > { %7748 = vmatprep.mubr.msk.bf16.mxu1 %vm1325_vm1, %v3372_v31  ;;  %v8833_v11 = vrot.slane %v7565_v47, %v8541_v6  ;;  %v3073_v12 = vcombine.high %v7566_v61, %v7566_v61  ;;  %v8836_v13 = vrot.slane %v7566_v61, %v8541_v6  ;;  %v1058_v15 = vcombine.low %v8818_v55, %v8823_v60 }
 0x101   : > { %v3420_v14 = vrot.slane %v3406_v57, %v8541_v6  ;;  %v1065_v19 = vrot.slane %v1057_v62, %v8541_v6  ;;  %v8843_v16 = vrot.slane %v3035_v2, %v8541_v6  ;;  %v3050_v21 = vcombine.high %v8830_v10, %v8830_v10 }
 0x102   : > { %v8848_v22 = vrot.slane %v3073_v12, %v8541_v6  ;;  %v3422_v32 = vcombine.low %v3027_v45, %v8830_v10  ;;  %v3097_v25 = vcombine.high %v7567_v7, %v7567_v7  ;;  %v1072_v28 = vrot.slane %v1058_v15, %v8541_v6 }
 0x103   : > { %v3421_v26 = vcombine.low %v3413_v38, %v3420_v14  ;;  %v3051_v30 = vcombine.high %v8843_v16, %v8843_v16  ;;  %v8856_v33 = vrot.slane %v7567_v7, %v8541_v6  ;;  %v3423_v20 = vcombine.low %v8843_v16, %v3050_v21 }
 0x104   : > { %v3425_v27 = vcombine.low %v8836_v13, %v8848_v22  ;;  %v3432_v46 = vrot.slane %v3422_v32, %v8541_v6  ;;  %v8863_v50 = vrot.slane %v3097_v25, %v8541_v6  ;;  %v1073_v35 = vcombine.low %v1065_v19, %v1072_v28 }
 0x105   : > { %7749 = vmatmul.mubr.msk.bf16.gmra.mrb[8].mxu1 %vm1325_vm1, %v3421_v26  ;;  %v3424_v23 = vcombine.low %v3051_v30, %v8833_v11  ;;  %v8868_v37 = vrot.slane %v7568_v24, %v8541_v6  ;;  %v7575_v39 = vcombine.high %v8836_v13, %v8848_v22  ;;  %v3439_v40 = vrot.slane %v3423_v20, %v8541_v6  ;;  %v7948_v20 = vld [vmem:[%s8521_s6] sm:$0xff]  }
 0x106   : > { %v3453_v41 = vrot.slane %v3425_v27, %v8541_v6  ;;  %v3472_v44 = vcombine.low %v8856_v33, %v8863_v50  ;;  %v7576_v47 = vcombine.high %v8856_v33, %v8863_v50  ;;  %7715 = vmatmul.mubr.msk.bf16.gmra.mrb[12].mxu0 %vm1325_vm1, %v1073_v35  ;;  %v614_v31 = vcombine.high %v8648_v43, %v8648_v43 }
 0x107   : > { %v3446_v49 = vrot.slane %v3424_v23, %v8541_v6  ;;  %v3480_v53 = vrot.slane %v7575_v39, %v8541_v6  ;;  %v3501_v61 = vrot.slane %v8868_v37, %v8541_v6  ;;  %v3454_v38 = vcombine.low %v3432_v46, %v3439_v40  ;;  %7718 = vmatprep.mubr.msk.bf16.mxu0 %vm8214_vm0, %v8213_v1 }
 0x108   : > { %v3487_v45 = vrot.slane %v3472_v44, %v8541_v6  ;;  %v3494_v57 = vrot.slane %v7576_v47, %v8541_v6  ;;  %v615_v62 = vcombine.high %v8660_v52, %v8660_v52  ;;  %v1074_v7 = vcombine.low %v8660_v52, %v614_v31 }
 0x109   : > { %v3455_v2 = vcombine.low %v3446_v49, %v3453_v41  ;;  %v1076_v12 = vcombine.low %v8672_v63, %v8675_v0  ;;  %v7513_v43 = vcombine.high %v8672_v63, %v8675_v0  ;;  %v3462_v14 = vrot.slane %v3454_v38, %v8541_v6 }
 0x10a   : > { %v3502_v15 = vcombine.low %v3480_v53, %v3487_v45  ;;  %v3503_v19 = vcombine.low %v3494_v57, %v3501_v61  ;;  %v1075_v21 = vcombine.low %v615_v62, %v8656_v48  ;;  %v8900_v24 = vrot.slane %v1074_v7, %v8541_v6 }
 0x10b   : > { %v3469_v32 = vrot.slane %v3455_v2, %v8541_v6  ;;  %v8903_v52 = vrot.slane %v1076_v12, %v8541_v6  ;;  %v8906_v25 = vrot.slane %v7513_v43, %v8541_v6  ;;  %v714_v48 = vcombine.high %v8745_v56, %v8745_v56  ;;  %v7949_v43 = vld [vmem:[%s8521_s6 + $0x8] ss:$0 sps:$4 sm:$0x11]  }
 0x10c   : > { %v3510_v26 = vrot.slane %v3502_v15, %v8541_v6  ;;  %v3517_v63 = vrot.slane %v3503_v19, %v8541_v6  ;;  %v8911_v0 = vrot.slane %v1075_v21, %v8541_v6  ;;  %v1123_v27 = vcombine.low %v8681_v5, %v8740_v51 }
 0x10d   : > { %v3470_v28 = vcombine.low %v3462_v14, %v3469_v32  ;;  %v1107_v30 = vcombine.low %v8903_v52, %v8906_v25  ;;  %v7514_v46 = vcombine.high %v8681_v5, %v8740_v51  ;;  %v1125_v39 = vcombine.low %v8732_v42, %v8745_v56  ;;  %v7951_v32 = vld [vmem:[#allocation8 + $0x10] sm:$0xff]  }
 0x10e   : > { %v3518_v35 = vcombine.low %v3510_v26, %v3517_v63  ;;  %v1106_v23 = vcombine.low %v8900_v24, %v8911_v0  ;;  %v1126_v40 = vcombine.low %v8754_v3, %v714_v48  ;;  %v8930_v44 = vrot.slane %v1123_v27, %v8541_v6 }
 0x10f   : > { %7752 = vmatprep.mubr.msk.bf16.mxu1 %vm1325_vm1, %v3470_v28  ;;  %v1121_v41 = vrot.slane %v1107_v30, %v8541_v6  ;;  %v8933_v47 = vrot.slane %v7514_v46, %v8541_v6  ;;  %v715_v5 = vcombine.high %v8754_v3, %v8754_v3  ;;  %v8940_v42 = vrot.slane %v1125_v39, %v8541_v6 }
 0x110   : > { %7753 = vmatmul.mubr.msk.bf16.gmra.mrb[12].mxu1 %vm1325_vm1, %v3518_v35  ;;  %v1114_v51 = vrot.slane %v1106_v23, %v8541_v6  ;;  %v8943_v56 = vrot.slane %v1126_v40, %v8541_v6  ;;  %v738_v49 = vcombine.high %v8748_v59, %v8748_v59  ;;  %v739_v3 = vcombine.high %v8758_v8, %v8758_v8 }
 0x111   : > { %7758 = vmatprep.mubr.msk.bf16.mxu1 %vm1325_vm1, %v7948_v20  ;;  %v1155_v53 = vcombine.low %v8930_v44, %v8933_v47  ;;  %v1172_v61 = vcombine.low %v715_v5, %v8748_v59  ;;  %v1175_v31 = vcombine.low %v8771_v17, %v8774_v18  ;;  %v7515_v62 = vcombine.high %v8771_v17, %v8774_v18 }
 0x112   : > { %v1122_v38 = vcombine.low %v1114_v51, %v1121_v41  ;;  %v1156_v45 = vcombine.low %v8940_v42, %v8943_v56  ;;  %v1173_v57 = vcombine.low %v8758_v8, %v738_v49  ;;  %v1174_v7 = vcombine.low %v739_v3, %v8761_v9 }
 0x113   : > { %v1163_v2 = vrot.slane %v1155_v53, %v8541_v6  ;;  %v8963_v12 = vrot.slane %v1172_v61, %v8541_v6  ;;  %v8966_v59 = vrot.slane %v1175_v31, %v8541_v6  ;;  %v1222_v17 = vcombine.low %v8830_v10, %v8843_v16 }
 0x114   : > { %7719 = vmatmul.mubr.msk.bf16.gmra.mrb[16].mxu0 %vm1325_vm1, %v1122_v38  ;;  %v1170_v14 = vrot.slane %v1156_v45, %v8541_v6  ;;  %v8972_v8 = vrot.slane %v1173_v57, %v8541_v6  ;;  %v7516_v9 = vcombine.high %v8830_v10, %v8843_v16  ;;  %v8981_v18 = vrot.slane %v1174_v7, %v8541_v6 }
 0x115   : > { %7722 = vmatprep.mubr.msk.bf16.mxu0 %vm8214_vm0, %v8213_v1  ;;  %v1224_v15 = vcombine.low %v8833_v11, %v8836_v13  ;;  %v8986_v19 = vrot.slane %v7515_v62, %v8541_v6  ;;  %v838_v21 = vcombine.high %v8836_v13, %v8836_v13  ;;  %v8993_v16 = vrot.slane %v1222_v17, %v8541_v6 }
 0x116   : > { %v1171_v26 = vcombine.low %v1163_v2, %v1170_v14  ;;  %v1204_v10 = vcombine.low %v8963_v12, %v8972_v8  ;;  %v8996_v63 = vrot.slane %v7516_v9, %v8541_v6  ;;  %v1205_v11 = vcombine.low %v8981_v18, %v8966_v59 }
 0x117   : > { %v9001_v48 = vrot.slane %v1224_v15, %v8541_v6  ;;  %v839_v13 = vcombine.high %v8848_v22, %v8848_v22  ;;  %v862_v28 = vcombine.high %v8856_v33, %v8856_v33  ;;  %v1253_v20 = vcombine.low %v8986_v19, %v8993_v16 }
 0x118   : > { %7759 = vmatmul.mubr.msk.bf16.vlgmr.msra.gmra.mrb[16].mxu1 %vm1325_vm1, %v7949_v43  ;;  %v1212_v30 = vrot.slane %v1204_v10, %v8541_v6  ;;  %v863_v27 = vcombine.high %v8863_v50, %v8863_v50  ;;  %v1270_v46 = vcombine.low %v8848_v22, %v838_v21  ;;  %v1219_v35 = vrot.slane %v1205_v11, %v8541_v6 }
 0x119   : > { %v1254_v23 = vcombine.low %v8996_v63, %v9001_v48  ;;  %v1271_v39 = vcombine.low %v839_v13, %v8856_v33  ;;  %v1272_v40 = vcombine.low %v8863_v50, %v862_v28  ;;  %7763 = vmatpush3.bf16.msra.mxu1 %v7951_v32  ;;  %v1261_v41 = vrot.slane %v1253_v20, %v8541_v6  ;;  %v7644_v32 = vld.sshfl [vmem:[%s8521_s6 + $0xc] sm:$0x33 pattern:$0x75316420] }
 0x11a   : > { %v1273_v5 = vcombine.low %v863_v27, %v8868_v37  ;;  %v9022_v51 = vrot.slane %v1270_v46, %v8541_v6  ;;  %7764 = vmatprep.mubr.msk.bf16.mxu1 %vm8214_vm0, %v8213_v1  ;;  %v1220_v22 = vcombine.low %v1212_v30, %v1219_v35  ;;  %v5279_v45 = vcombine.low %v8717_v29, %v8720_v34 }
 0x11b   : > { %v1268_v49 = vrot.slane %v1254_v23, %v8541_v6  ;;  %v9028_v53 = vrot.slane %v1271_v39, %v8541_v6  ;;  %v9031_v33 = vrot.slane %v1272_v40, %v8541_v6  ;;  %v5280_v57 = vcombine.low %v8724_v36, %v8810_v54 }
 0x11c   : > { %7723 = vmatmul.mubr.msk.bf16.gmra.mrb[20].mxu0 %vm1325_vm1, %v1171_v26  ;;  %v9035_v50 = vrot.slane %v1273_v5, %v8541_v6  ;;  %v5287_v2 = vrot.slane %v5279_v45, %v8541_v6  ;;  %v5328_v14 = vcombine.low %v8813_v58, %v8818_v55  ;;  %v5329_v29 = vcombine.low %v8823_v60, %v8900_v24 }
 0x11d   : > { %7726 = vmatprep.mubr.msk.bf16.mxu0 %vm8214_vm0, %v8213_v1  ;;  %v1269_v37 = vcombine.low %v1261_v41, %v1268_v49  ;;  %v1302_v3 = vcombine.low %v9022_v51, %v9028_v53  ;;  %v5294_v7 = vrot.slane %v5280_v57, %v8541_v6  ;;  %v5377_v54 = vcombine.low %v8911_v0, %v8903_v52  ;;  %v7641_v52 = vld.sshfl [vmem:[%s8521_s6] sm:$0x33 pattern:$0x75316420] }
 0x11e   : > { %v1303_v61 = vcombine.low %v9031_v33, %v9035_v50  ;;  %v5336_v34 = vrot.slane %v5328_v14, %v8541_v6  ;;  %v5343_v36 = vrot.slane %v5329_v29, %v8541_v6  ;;  %v5378_v58 = vcombine.low %v8906_v25, %v8930_v44  ;;  %v7642_v44 = vld.sshfl [vmem:[%s8521_s6 + $0x4] sm:$0x33 pattern:$0x75316420] }
 0x11f   : > { %v1310_v31 = vrot.slane %v1302_v3, %v8541_v6  ;;  %v5295_v43 = vcombine.low %v5287_v2, %v5294_v7  ;;  %v5385_v60 = vrot.slane %v5377_v54, %v8541_v6  ;;  %v5426_v17 = vcombine.low %v8933_v47, %v8940_v42 }
 0x120   : > { %v1317_v38 = vrot.slane %v1303_v61, %v8541_v6  ;;  %v5344_v55 = vcombine.low %v5336_v34, %v5343_v36  ;;  %v5392_v24 = vrot.slane %v5378_v58, %v8541_v6  ;;  %v5427_v15 = vcombine.low %v8943_v56, %v8963_v12  ;;  %v7643_v56 = vld.sshfl [vmem:[%s8521_s6 + $0x8] sm:$0x1 pattern:$0x75316420] }
 0x121   : > { %7765 = vmatmul.mubr.msk.bf16.vlgmr.msra.gmra.mrb[20].mxu1 %vm1325_vm1, %v5295_v43  ;;  %v5434_v25 = vrot.slane %v5426_v17, %v8541_v6  ;;  %v5476_v47 = vcombine.low %v8966_v59, %v8986_v19  ;;  %v6633_v42 = vcombine.high %v7641_v52, %v7641_v52  ;;  %v5475_v21 = vcombine.low %v8972_v8, %v8981_v18  ;;  %v7645_v18 = vld.sshfl [vmem:[%s8521_s6 + $0x10] sm:$0x33 pattern:$0x75316420] }
 0x122   : > { %v1318_v62 = vcombine.low %v1310_v31, %v1317_v38  ;;  %7768 = vmatprep.mubr.msk.bf16.mxu1 %vm8214_vm0, %v8213_v1  ;;  %v5393_v9 = vcombine.low %v5385_v60, %v5392_v24  ;;  %v5441_v0 = vrot.slane %v5427_v15, %v8541_v6  ;;  %v6640_v10 = vrot.slane %v7641_v52, %v8541_v6  ;;  %v7646_v24 = vld.sshfl [vmem:[%s8521_s6 + $0x14] sm:$0x1 pattern:$0x75316420]  ;;  %s8071_s6 = scalar_lea.vmem %s8070_s27, 4096 }
 0x123   : > { %v9090_v26 = vrot.slane %v5476_v47, %v8541_v6  ;;  %v9094_v11 = vrot.slane %v5475_v21, %v8541_v6  ;;  %v5524_v13 = vcombine.low %v8993_v16, %v8996_v63  ;;  %v6647_v59 = vrot.slane %v6633_v42, %v8541_v6  ;;  %p8073_p10 = scmp.lt.s32.totalorder %s8071_s6, %s8065_s15 }
 0x124   : > { %7727 = vmatmul.mubr.msk.bf16.gmra.mrb[24].mxu0 %vm1325_vm1, %v1220_v22  ;;  %v5442_v12 = vcombine.low %v5434_v25, %v5441_v0  ;;  %v6657_v19 = vcombine.high %v7642_v44, %v7642_v44  ;;  %v5525_v28 = vcombine.low %v9001_v48, %v9022_v51  ;;  %v6664_v8 = vrot.slane %v7642_v44, %v8541_v6 }
 0x125   : > { %7730 = vmatprep.mubr.msk.bf16.mxu0 %vm8214_vm0, %v8213_v1  ;;  %v6687_v30 = vrot.slane %v7643_v56, %v8541_v6  ;;  %v6695_v20 = vcombine.high %v7644_v32, %v7644_v32  ;;  %v5491_v27 = vcombine.low %v9094_v11, %v9090_v26  ;;  %v5532_v46 = vrot.slane %v5524_v13, %v8541_v6  ;;  %p8074_p13 = por %p8073_p10, %p8072_p6 }
 0x126   : > { %v6671_v16 = vrot.slane %v6657_v19, %v8541_v6  ;;  %v6750_v63 = vcombine.low %v6640_v10, %v6647_v59  ;;  %v5539_v35 = vrot.slane %v5525_v28, %v8541_v6  ;;  %v7647_v48 = vcombine.high %v6640_v10, %v6647_v59 }
 0x127   : > { %v6702_v23 = vrot.slane %v7644_v32, %v8541_v6  ;;  %v6709_v39 = vrot.slane %v6695_v20, %v8541_v6  ;;  %v6719_v51 = vcombine.high %v7645_v18, %v7645_v18  ;;  %v6726_v38 = vrot.slane %v7645_v18, %v8541_v6  ;;  %p8075_p3 = pnand %p8074_p13, %p8068_p1 }
 0x128   : > { %v6752_v40 = vcombine.low %v6664_v8, %v6671_v16  ;;  %v7648_v41 = vcombine.high %v6664_v8, %v6671_v16  ;;  %v6760_v5 = vrot.slane %v6750_v63, %v8541_v6  ;;  %v5540_v22 = vcombine.low %v5532_v46, %v5539_v35 }
 0x129   : > { %7769 = vmatmul.mubr.msk.bf16.gmra.mrb[24].mxu1 %vm1325_vm1, %v5344_v55  ;;  %v6767_v49 = vrot.slane %v7647_v48, %v8541_v6  ;;  %v6711_v3 = vcombine.high %v6709_v39, %v6709_v39  ;;  %v6733_v45 = vrot.slane %v6719_v51, %v8541_v6  ;;  %v6734_v43 = vcombine.high %v6726_v38, %v6726_v38 }
 0x12a   : > { %7772 = vmatprep.mubr.msk.bf16.mxu1 %vm8214_vm0, %v8213_v1  ;;  %v6774_v61 = vrot.slane %v6752_v40, %v8541_v6  ;;  %v6781_v31 = vrot.slane %v7648_v41, %v8541_v6  ;;  %v6749_v0 = vrot.slane %v7646_v24, %v8541_v6  ;;  %v5565_v44 = vcombine.low %v9028_v53, %v9031_v33 }
 0x12b   : > { %v6782_v57 = vcombine.low %v6760_v5, %v6767_v49  ;;  %v6801_v14 = vcombine.low %v6711_v3, %v6726_v38  ;;  %v6802_v58 = vcombine.low %v6733_v45, %v6734_v43  ;;  %v6735_v25 = vcombine.high %v6733_v45, %v6733_v45 }
 0x12c   : > { %7731 = vmatmul.mubr.msk.bf16.gmra.mrb[28].mxu0 %vm1325_vm1, %v1269_v37  ;;  %v6710_v37 = vcombine.high %v6702_v23, %v6702_v23  ;;  %v6783_v7 = vcombine.low %v6774_v61, %v6781_v31  ;;  %v5579_v47 = vrot.slane %v9035_v50, %v8541_v6  ;;  %v5572_v56 = vrot.slane %v5565_v44, %v8541_v6 }
 0x12d   : > { %7734 = vmatprep.mubr.msk.bf16.mxu0 %vm8214_vm0, %v8213_v1  ;;  %v6790_v29 = vrot.slane %v6782_v57, %v8541_v6  ;;  %v6823_v55 = vrot.slane %v6801_v14, %v8541_v6  ;;  %v6848_v21 = vcombine.low %v6735_v25, %v6749_v0  ;;  %v8216_v33 = vmov 1983009808  }
 0x12e   : > { %v6800_v2 = vcombine.low %v6709_v39, %v6710_v37  ;;  %v6797_v54 = vrot.slane %v6783_v7, %v8541_v6  ;;  %v5580_v32 = vcombine.low %v5572_v56, %v5579_v47  ;;  %v1478_v50 = vunpack.c.l.s4 %v8216_v33 }
 0x12f   : > { %v6855_v26 = vrot.slane %v6848_v21, %v8541_v6 }
 0x130   : > { %v6816_v36 = vrot.slane %v6800_v2, %v8541_v6  ;;  %v6798_v17 = vcombine.low %v6790_v29, %v6797_v54  ;;  %v1479_v10 = vunpack.c.0.s8 %v1478_v50 }
 0x131   : > { %7773 = vmatmul.mubr.msk.bf16.gmra.mrb[28].mxu1 %vm1325_vm1, %v5393_v9  ;;  %v6830_v9 = vrot.slane %v6802_v58, %v8541_v6  ;;  %v6862_v53 = vrot.slane %v6855_v26, %v8541_v6 }
 0x132   : > { %7776 = vmatprep.mubr.msk.bf16.mxu1 %vm8214_vm0, %v8213_v1  ;;  %v9158_v11 = vsub.s32 %v1479_v10, %v8538_v4 }
 0x133   : > { %v6832_v15 = vcombine.low %v6823_v55, %v6830_v9 }
 0x134   : > { %7735 = vmatmul.mubr.msk.bf16.gmra.mrb[32].mxu0 %vm1325_vm1, %v1318_v62  ;;  %v6799_v62 = vcombine.low %v6687_v30, %v6702_v23 }
 0x135   : > { %7794 = vmatprep.mubr.msk.bf16.mxu0 %vm8214_vm0, %v8213_v1  ;;  %v6846_v42 = vrot.slane %v6832_v15, %v8541_v6 }
 0x136   : > { %v6809_v34 = vrot.slane %v6799_v62, %v8541_v6 }
 0x138   : > { %v6831_v60 = vcombine.low %v6809_v34, %v6816_v36 }
 0x139   : > { %7777 = vmatmul.mubr.msk.bf16.gmra.mrb[32].mxu1 %vm1325_vm1, %v5442_v12 }
 0x13a   : > { %7780 = vmatprep.mubr.msk.bf16.mxu1 %vm8214_vm0, %v8213_v1  ;;  %v6839_v52 = vrot.slane %v6831_v60, %v8541_v6 }
 0x13c   : > { %7795 = vmatmul.mubr.msk.bf16.vlgmr.msra.gmra.mrb[36].mxu0 %vm1325_vm1, %v6798_v17  ;;  %v6847_v12 = vcombine.low %v6839_v52, %v6846_v42 }
 0x13d   : > { %7798 = vmatprep.mubr.msk.bf16.mxu0 %vm8214_vm0, %v8213_v1 }
 0x141   : > { %7781 = vmatmul.mubr.msk.bf16.gmra.mrb[36].mxu1 %vm1325_vm1, %v5491_v27 }
 0x142   : > { %7784 = vmatprep.mubr.msk.bf16.mxu1 %vm8214_vm0, %v8213_v1 }
 0x144   : > { %7799 = vmatmul.mubr.msk.bf16.gmra.mrb[40].mxu0 %vm1325_vm1, %v6847_v12 }
 0x145   : > { %7802 = vmatprep.mubr.msk.bf16.mxu0 %vm8214_vm0, %v8213_v1 }
 0x149   : > { %7785 = vmatmul.mubr.msk.bf16.gmra.mrb[40].mxu1 %vm1325_vm1, %v5540_v22 }
 0x14a   : > { %7788 = vmatprep.mubr.msk.bf16.mxu1 %vm8214_vm0, %v8213_v1 }
 0x14c   : > { %7803 = vmatmul.mubr.msk.bf16.gmra.mrb[44].mxu0 %vm1325_vm1, %v6862_v53 }
 0x151   : > { %7789 = vmatmul.mubr.msk.bf16.gmra.mrb[44].mxu1 %vm1325_vm1, %v5580_v32 }
 0x1b2   : > { %v1387_v13 = vpop.f32.mrb[0].mxu0 }
 0x1b3   : > { %v1476_v59 = vcombine.high %v1387_v13, %v1387_v13  ;;  %v1483_v19 = vrot.slane %v1387_v13, %v9158_v11  ;;  %v7704_v6 = vpop.f32.mrb[1].mxu0 }
 0x1b4   : > { %v1390_v28 = vpop.f32.mrb[2].mxu0 }
 0x1b5   : > { %v1490_v8 = vrot.slane %v1476_v59, %v9158_v11  ;;  %v1491_v18 = vcombine.high %v1483_v19, %v1483_v19  ;;  %v1493_v1 = vcombine.high %v1390_v28, %v1390_v28  ;;  %v1500_v30 = vrot.slane %v1390_v28, %v9158_v11  ;;  %v7705_v20 = vpop.f32.mrb[3].mxu0 }
 0x1b7   : > { %v1782_v27 = vcombine.low %v1483_v19, %v1491_v18  ;;  %v1507_v46 = vrot.slane %v1493_v1, %v9158_v11  ;;  %v1508_v16 = vcombine.high %v1500_v30, %v1500_v30  ;;  %v1492_v63 = vcombine.high %v1490_v8, %v1490_v8 }
 0x1b8   : > { %v2296_v4 = vcombine.low %v1491_v18, %v1490_v8 }
 0x1b9   : > { %v1783_v35 = vcombine.low %v1490_v8, %v1492_v63  ;;  %v2297_v48 = vcombine.low %v1492_v63, %v1500_v30  ;;  %v1790_v23 = vrot.slane %v1782_v27, %v9158_v11  ;;  %v1799_v39 = vcombine.low %v1500_v30, %v1508_v16 }
 0x1ba   : > { %v9165_v40 = vcombine.high %v1507_v46, %v1507_v46  ;;  %v2304_v41 = vrot.slane %v2296_v4, %v9158_v11  ;;  %v2313_v51 = vcombine.low %v1508_v16, %v1507_v46 }
 0x1bb   : > { %v2311_v5 = vrot.slane %v2297_v48, %v9158_v11  ;;  %v1797_v22 = vrot.slane %v1783_v35, %v9158_v11  ;;  %v7742_v49 = vpop.f32.mrb[0].mxu1  ;;  %v9177_v57 = vrot.slane %v1799_v39, %v9158_v11 }
 0x1bc   : > { %v1800_v37 = vcombine.low %v1507_v46, %v9165_v40  ;;  %v3696_v3 = vcombine.high %v7742_v49, %v7742_v49  ;;  %v9172_v61 = vrot.slane %v7742_v49, %v9158_v11  ;;  %v3583_v31 = vpop.f32.mrb[1].mxu1  ;;  %v9187_v54 = vrot.slane %v2313_v51, %v9158_v11 }
 0x1bd   : > { %v2312_v38 = vcombine.low %v2304_v41, %v2311_v5  ;;  %v9174_v45 = vcombine.low %v1790_v23, %v1797_v22  ;;  %v3662_v62 = vcombine.high %v3583_v31, %v3583_v31  ;;  %v3669_v2 = vrot.slane %v3583_v31, %v9158_v11  ;;  %v7743_v7 = vpop.f32.mrb[2].mxu1 }
 0x1be   : > { %v9181_v43 = vrot.slane %v3696_v3, %v9158_v11  ;;  %v3711_v14 = vcombine.high %v9172_v61, %v9172_v61  ;;  %v3713_v29 = vcombine.high %v7743_v7, %v7743_v7  ;;  %v3586_v34 = vpop.f32.mrb[3].mxu1  ;;  %v1395_v36 = vpop.f32.mrb[4].mxu0  ;;  %v3720_v60 = vrot.slane %v7743_v7, %v9158_v11 }
 0x1bf   : > { %2568 = vrot.lane.b32.xlu0 %v2312_v38, %s8217_s26  ;;  %2071 = vst.msk [vmem:[#allocation2] sm:$0xff] %vm2070_vm2, %v9174_v45  ;;  %v9192_v58 = vrot.slane %v3662_v62, %v9158_v11  ;;  %v9194_v55 = vcombine.high %v3669_v2, %v3669_v2  ;;  %v3679_v24 = vcombine.high %v3586_v34, %v3586_v34  ;;  %v7708_v17 = vpop.f32.mrb[5].mxu0 }
 0x1c0   : > { %v9199_v9 = vcombine.high %v9181_v43, %v9181_v43  ;;  %v9202_v15 = vrot.slane %v3713_v29, %v9158_v11  ;;  %v9205_v52 = vrot.slane %v3586_v34, %v9158_v11  ;;  %v1398_v25 = vpop.f32.mrb[6].mxu0  ;;  %v9208_v0 = vrot.slane %v1800_v37, %v9158_v11 }
 0x1c1   : > { %v9214_v47 = vcombine.high %v9192_v58, %v9192_v58  ;;  %v3947_v42 = vcombine.low %v3669_v2, %v9194_v55  ;;  %v9217_v56 = vcombine.high %v3720_v60, %v3720_v60  ;;  %v7709_v12 = vpop.f32.mrb[7].mxu0  ;;  %v9221_v32 = vrot.slane %v3679_v24, %v9158_v11 }
 0x1c2   : > { %v3982_v21 = vcombine.low %v9199_v9, %v3720_v60  ;;  %v9225_v26 = vcombine.high %v9205_v52, %v9205_v52  ;;  %v1510_v53 = vcombine.high %v1395_v36, %v1395_v36  ;;  %v9228_v33 = vcombine.low %v3711_v14, %v9181_v43 }
 0x1c3   : > { %v3948_v50 = vcombine.low %v9192_v58, %v9214_v47  ;;  %v3955_v10 = vrot.slane %v3947_v42, %v9158_v11  ;;  %v4409_v13 = vcombine.low %v9194_v55, %v9192_v58  ;;  %v9239_v19 = vcombine.high %v9221_v32, %v9221_v32 }
 0x1c4   : > { %v3964_v6 = vcombine.low %v9205_v52, %v9225_v26  ;;  %v4410_v28 = vcombine.low %v9214_v47, %v9205_v52  ;;  %v9247_v18 = vrot.slane %v1395_v36, %v9158_v11  ;;  %v9250_v1 = vrot.slane %v1510_v53, %v9158_v11 }
 0x1c5   : > { %v3962_v8 = vrot.slane %v3948_v50, %v9158_v11  ;;  %v1527_v30 = vcombine.high %v1398_v25, %v1398_v25  ;;  %v9253_v20 = vrot.slane %v3982_v21, %v9158_v11  ;;  %v4444_v27 = vcombine.low %v3720_v60, %v9217_v56 }
 0x1c6   : > { %v9259_v16 = vrot.slane %v1398_v25, %v9158_v11  ;;  %v9262_v63 = vrot.slane %v3964_v6, %v9158_v11  ;;  %v1525_v4 = vcombine.high %v9247_v18, %v9247_v18  ;;  %v9268_v35 = vcombine.high %v9250_v1, %v9250_v1 }
 0x1c7   : > { %v9272_v48 = vcombine.high %v9202_v15, %v9202_v15  ;;  %v9274_v23 = vcombine.low %v3955_v10, %v3962_v8  ;;  %v9279_v41 = vrot.slane %v1527_v30, %v9158_v11  ;;  %v4443_v31 = vcombine.low %v9181_v43, %v9199_v9 }
 0x1c8   : > { %v9283_v5 = vcombine.high %v9259_v16, %v9259_v16  ;;  %v1817_v22 = vcombine.low %v9268_v35, %v9259_v16  ;;  %v9293_v38 = vcombine.low %v1525_v4, %v9250_v1  ;;  %v4458_v29 = vrot.slane %v4444_v27, %v9158_v11 }
 0x1c9   : > { %11754 = vst [vmem:[#allocation26_spill] sm:$0xff] %v9274_v23  ;;  %v7746_v51 = vpop.f32.mrb[4].mxu1  ;;  %v2314_v59 = vcombine.low %v9165_v40, %v9247_v18  ;;  %v4417_v40 = vrot.slane %v4409_v13, %v9158_v11  ;;  %v4426_v58 = vcombine.low %v9225_v26, %v9221_v32  ;;  %v4427_v52 = vcombine.low %v9239_v19, %v9172_v61 }
 0x1ca   : > { %v3764_v49 = vcombine.high %v7746_v51, %v7746_v51  ;;  %v9288_v37 = vrot.slane %v7746_v51, %v9158_v11  ;;  %v3599_v3 = vpop.f32.mrb[5].mxu1  ;;  %v1403_v14 = vpop.f32.mrb[8].mxu0  ;;  %v9327_v30 = vrot.slane %v1817_v22, %v9158_v11  ;;  %v1815_v47 = vcombine.low %v9177_v57, %v9208_v0 }
 0x1cb   : > { %v3730_v62 = vcombine.high %v3599_v3, %v3599_v3  ;;  %v9296_v2 = vrot.slane %v3599_v3, %v9158_v11  ;;  %v7747_v7 = vpop.f32.mrb[6].mxu1  ;;  %v7712_v17 = vpop.f32.mrb[9].mxu0  ;;  %v4441_v57 = vrot.slane %v4427_v52, %v9158_v11 }
 0x1cc   : > { %v9302_v36 = vrot.slane %v3764_v49, %v9158_v11  ;;  %v9306_v43 = vcombine.high %v9288_v37, %v9288_v37  ;;  %v3781_v60 = vcombine.high %v7747_v7, %v7747_v7  ;;  %v3602_v24 = vpop.f32.mrb[7].mxu1  ;;  %v9316_v12 = vrot.slane %v7747_v7, %v9158_v11  ;;  %v9318_v21 = vpop.f32.mrb[10].mxu0  ;;  %2072 = vst.msk [vmem:[#allocation2 + $0x8] sm:$0xff] %vm2070_vm2, %v1815_v47 }
 0x1cd   : > { %v3744_v9 = vrot.slane %v3730_v62, %v9158_v11  ;;  %v9311_v25 = vcombine.high %v9296_v2, %v9296_v2  ;;  %v3999_v42 = vcombine.low %v9272_v48, %v9296_v2  ;;  %v3747_v6 = vcombine.high %v3602_v24, %v3602_v24  ;;  %v7713_v8 = vpop.f32.mrb[11].mxu0 }
 0x1ce   : > { %v4033_v50 = vcombine.low %v9288_v37, %v9306_v43  ;;  %v3780_v10 = vcombine.high %v9302_v36, %v9302_v36  ;;  %v9332_v4 = vrot.slane %v3781_v60, %v9158_v11  ;;  %v9336_v51 = vcombine.high %v9316_v12, %v9316_v12 }
 0x1cf   : > { %v9329_v27 = vcombine.high %v3744_v9, %v3744_v9  ;;  %v9339_v49 = vrot.slane %v3999_v42, %v9158_v11  ;;  %v9345_v62 = vrot.slane %v3602_v24, %v9158_v11  ;;  %v9348_v22 = vrot.slane %v3747_v6, %v9158_v11 }
 0x1d0   : > { %v9342_v3 = vcombine.low %v3780_v10, %v9316_v12  ;;  %v9351_v7 = vrot.slane %v4033_v50, %v9158_v11  ;;  %v9372_v50 = vcombine.high %v9279_v41, %v9279_v41  ;;  %v1544_v8 = vcombine.high %v1403_v14, %v1403_v14 }
 0x1d1   : > { %v4015_v60 = vcombine.low %v3744_v9, %v9329_v27  ;;  %v9362_v24 = vcombine.high %v9345_v62, %v9345_v62  ;;  %v9366_v6 = vcombine.high %v9348_v22, %v9348_v22  ;;  %v9375_v42 = vrot.slane %v1403_v14, %v9158_v11 }
 0x1d2   : > { %11755 = vst [vmem:[#allocation27_spill] sm:$0xff] %v9342_v3  ;;  %11756 = vst [vmem:[#allocation28_spill] sm:$0xff] %v9351_v7  ;;  %v4451_v10 = vrot.slane %v4443_v31, %v9158_v11  ;;  %v1558_v14 = vrot.slane %v1544_v8, %v9158_v11  ;;  %v9395_v53 = vcombine.high %v9332_v4, %v9332_v4 }
 0x1d3   : > { %v9379_v34 = vrot.slane %v4015_v60, %v9158_v11  ;;  %v4016_v9 = vcombine.low %v9345_v62, %v9362_v24  ;;  %v1834_v31 = vcombine.low %v9372_v50, %v9375_v42  ;;  %v2328_v60 = vrot.slane %v2314_v59, %v9158_v11 }
 0x1d4   : > { %v4459_v17 = vcombine.low %v4451_v10, %v4458_v29  ;;  %v4424_v8 = vrot.slane %v4410_v28, %v9158_v11  ;;  %v9410_v59 = vcombine.high %v9375_v42, %v9375_v42  ;;  %v9412_v29 = vcombine.high %v1558_v14, %v1558_v14 }
 0x1d5   : > { %11757 = vst [vmem:[#allocation29_spill] sm:$0xff] %v9379_v34  ;;  %v9406_v39 = vrot.slane %v4016_v9, %v9158_v11  ;;  %v2329_v55 = vcombine.low %v9187_v54, %v2328_v60  ;;  %v9423_v28 = vrot.slane %v1834_v31, %v9158_v11 }
 0x1d6   : > { %4651 = vrot.lane.b32.xlu0 %v4459_v17, %s8217_s26  ;;  %v4425_v10 = vcombine.low %v4417_v40, %v4424_v8  ;;  %v1850_v9 = vcombine.low %v1558_v14, %v9412_v29  ;;  %v4434_v40 = vrot.slane %v4426_v58, %v9158_v11 }
 0x1d7   : > { %11758 = vst [vmem:[#allocation30_spill] sm:$0xff] %v9406_v39  ;;  %2570 = vrot.lane.b32.xlu1 %v2329_v55, %s8217_s26  ;;  %v2160_v55 = vrot.slane %v9174_v45, 1  ;;  %v2330_v45 = vcombine.low %v9250_v1, %v9268_v35  ;;  %v11771_v35 = vcombine.low %v9259_v16, %v9283_v5 }
 0x1d8   : > { %v7750_v13 = vpop.f32.mrb[8].mxu1  ;;  %v4442_v3 = vcombine.low %v4434_v40, %v4441_v57  ;;  %v9472_v7 = vrot.slane %v1850_v9, %v9158_v11 }
 0x1d9   : > { %v3832_v44 = vcombine.high %v7750_v13, %v7750_v13  ;;  %v9427_v17 = vrot.slane %v7750_v13, %v9158_v11  ;;  %v3615_v26 = vpop.f32.mrb[9].mxu1  ;;  %v1411_v0 = vpop.f32.mrb[12].mxu0  ;;  %v2161_v13 = vrot.slane %v1815_v47, 1  ;;  %v2338_v1 = vrot.slane %v2330_v45, %v9158_v11 }
 0x1da   : > { %v3798_v54 = vcombine.high %v3615_v26, %v3615_v26  ;;  %v9431_v60 = vrot.slane %v3615_v26, %v9158_v11  ;;  %v9436_v31 = vpop.f32.mrb[10].mxu1  ;;  %4647 = vrot.lane.b32.xlu0 %v4425_v10, %s8217_s26  ;;  %v7716_v52 = vpop.f32.mrb[13].mxu0  ;;  %11761 = vst [vmem:[#allocation32_spill] sm:$0xff] %v9472_v7  ;;  %v4495_v45 = vcombine.low %v9306_v43, %v9302_v36 }
 0x1db   : > { %11759 = vst [vmem:[#allocation31_spill] sm:$0xff] %v9427_v17  ;;  %v9439_v14 = vrot.slane %v3832_v44, %v9158_v11  ;;  %v9443_v8 = vcombine.high %v9427_v17, %v9427_v17  ;;  %v9447_v58 = vpop.f32.mrb[11].mxu1  ;;  %v9458_v34 = vpop.f32.mrb[14].mxu0  ;;  %v2162_v47 = vsel %vm2159_vm3, %v2160_v55, %v2161_v13  ;;  %4649 = vrot.lane.b32.xlu1 %v4442_v3, %s8217_s26 }
 0x1dc   : > { %v9450_v26 = vrot.slane %v3798_v54, %v9158_v11  ;;  %v9454_v46 = vcombine.high %v9431_v60, %v9431_v60  ;;  %v4066_v44 = vcombine.low %v9395_v53, %v9431_v60  ;;  %v11760_v54 = vcombine.low %v9221_v32, %v9239_v19  ;;  %v7717_v39 = vpop.f32.mrb[15].mxu0 }
 0x1dd   : > { %v9464_v10 = vcombine.high %v9439_v14, %v9439_v14  ;;  %v4100_v40 = vcombine.low %v9427_v17, %v9443_v8  ;;  %v11764_v55 = vrot.slane %v9172_v61, %v9158_v11  ;;  %v1561_v3 = vcombine.high %v9318_v21, %v9318_v21 }
 0x1de   : > { %v3979_v52 = vrot.slane %v11760_v54, %v9158_v11  ;;  %v9478_v57 = vcombine.high %v9450_v26, %v9450_v26  ;;  %v9486_v19 = vrot.slane %v4066_v44, %v9158_v11  ;;  %2200 = vrot.lane.b32.xlu0 %v2162_v47, %s8218_s8  ;;  %v9501_v44 = vrot.slane %v9318_v21, %v9158_v11 }
 0x1df   : > { %v4293_v54 = vrot.slane %v11764_v55, 1  ;;  %v9504_v32 = vrot.slane %v1411_v0, %v9158_v11  ;;  %v11766_v61 = vcombine.low %v9296_v2, %v9311_v25  ;;  %v9517_v21 = vrot.slane %v1561_v3, %v9158_v11 }
 0x1e0   : > { %11762 = vst [vmem:[#allocation33_spill] sm:$0xff] %v9486_v19  ;;  %v9492_v9 = vcombine.low %v9262_v63, %v3979_v52  ;;  %v4460_v63 = vcombine.low %v9202_v15, %v9272_v48  ;;  %v11767_v52 = vrot.slane %v9247_v18, %v9158_v11  ;;  %v9521_v39 = vcombine.high %v9501_v44, %v9501_v44 }
 0x1e1   : > { %11765 = vst [vmem:[#allocation35_spill] sm:$0xff] %v9504_v32  ;;  %v4475_v47 = vrot.slane %v11766_v61, %v9158_v11  ;;  %v1578_v48 = vcombine.high %v1411_v0, %v1411_v0  ;;  %v9530_v61 = vcombine.high %v9504_v32, %v9504_v32  ;;  %v9537_v19 = vcombine.high %v9517_v21, %v9517_v21 }
 0x1e2   : > { %11763 = vst [vmem:[#allocation34_spill] sm:$0xff] %v9492_v9  ;;  %v2163_v55 = vrot.slane %v11767_v52, 1  ;;  %v11768_v7 = vrot.slane %v9492_v9, 1  ;;  %v4468_v18 = vrot.slane %v4460_v63, %v9158_v11  ;;  %v1851_v0 = vcombine.low %v9501_v44, %v9521_v39 }
 0x1e3   : > { %v7754_v52 = vpop.f32.mrb[12].mxu1  ;;  %v3849_v16 = vcombine.high %v9436_v31, %v9436_v31  ;;  %v4509_v43 = vrot.slane %v4495_v45, %v9158_v11 }
 0x1e4   : > { %v4294_v2 = vsel %vm2159_vm3, %v11768_v7, %v4293_v54  ;;  %v2164_v3 = vsel %vm2159_vm3, %v2161_v13, %v2163_v55  ;;  %v11769_v7 = vcombine.low %v9217_v56, %v9202_v15  ;;  %v9546_v63 = vpop.f32.mrb[13].mxu1  ;;  %v9549_v13 = vrot.slane %v4100_v40, %v9158_v11 }
 0x1e5   : > { %4327 = vrot.lane.b32.xlu1 %v4294_v2, %s8218_s8  ;;  %2202 = vrot.lane.b32.xlu0 %v2164_v3, %s8218_s8  ;;  %v4476_v55 = vcombine.low %v4468_v18, %v4475_v47  ;;  %v4254_v2 = vrot.slane %v9311_v25, %v9158_v11  ;;  %v9555_v17 = vpop.f32.mrb[14].mxu1  ;;  %v9558_v3 = vrot.slane %v1578_v48, %v9158_v11  ;;  %v4290_v40 = vrot.slane %v9274_v23, 1 }
 0x1e6   : > { %v4006_v54 = vrot.slane %v11769_v7, %v9158_v11  ;;  %v9566_v47 = vpop.f32.mrb[15].mxu1  ;;  %v1868_v25 = vcombine.low %v9504_v32, %v9530_v61  ;;  %v2345_v48 = vrot.slane %v11771_v35, %v9158_v11  ;;  %v4494_v15 = vcombine.low %v9366_v6, %v9288_v37 }
 0x1e7   : > { %v4298_v18 = vrot.slane %v4254_v2, 1  ;;  %v9575_v7 = vpop.f32.mrb[16].mxu0  ;;  %v9590_v35 = vrot.slane %v9436_v31, %v9158_v11  ;;  %v3989_v37 = vrot.slane %v9228_v33, %v9158_v11 }
 0x1e8   : > { %v9563_v56 = vcombine.low %v4006_v54, %v9339_v49  ;;  %v9578_v49 = vrot.slane %v1851_v0, %v9158_v11  ;;  %v7720_v2 = vpop.f32.mrb[17].mxu0  ;;  %v2346_v23 = vcombine.low %v2338_v1, %v2345_v48  ;;  %v3815_v0 = vcombine.high %v9447_v58, %v9447_v58 }
 0x1e9   : > { %4653 = vrot.lane.b32.xlu1 %v4476_v55, %s8217_s26  ;;  %v9594_v55 = vpop.f32.mrb[18].mxu0  ;;  %v3822_v1 = vrot.slane %v9447_v58, %v9158_v11  ;;  %v9603_v2 = vrot.slane %v1868_v25, %v9158_v11 }
 0x1ea   : > { %11770 = vst [vmem:[#allocation36_spill] sm:$0xff] %v9563_v56  ;;  %v4296_v54 = vrot.slane %v9563_v56, 1  ;;  %11772 = vst [vmem:[#allocation37_spill] sm:$0xff] %v9594_v55  ;;  %v4502_v56 = vrot.slane %v4494_v15, %v9158_v11  ;;  %v7721_v48 = vpop.f32.mrb[19].mxu0  ;;  %2572 = vrot.lane.b32.xlu0 %v2346_v23, %s8217_s26  ;;  %v9608_v55 = vrot.slane %v3849_v16, %v9158_v11  ;;  %v11776_v23 = vrot.slane %v9492_v9, 1 }
 0x1eb   : > { %11773 = vst [vmem:[#allocation38_spill] sm:$0xff] %v9603_v2  ;;  %v9612_v15 = vpop.f32.mrb[16].mxu1  ;;  %v9616_v58 = vrot.slane %v3815_v0, %v9158_v11  ;;  %v9618_v25 = vcombine.high %v3822_v1, %v3822_v1  ;;  %v3900_v48 = vcombine.high %v7754_v52, %v7754_v52  ;;  %v9626_v2 = vrot.slane %v7754_v52, %v9158_v11 }
 0x1ec   : > { %v4299_v31 = vsel %vm2159_vm3, %v4296_v54, %v4298_v18  ;;  %11774 = vst [vmem:[#allocation39_spill] sm:$0xff] %v9612_v15  ;;  %v4510_v45 = vcombine.low %v4502_v56, %v4509_v43  ;;  %v9620_v18 = vpop.f32.mrb[17].mxu1  ;;  %v4292_v16 = vsel %vm2159_vm3, %v4290_v40, %v11776_v23  ;;  %v2347_v56 = vcombine.low %v9279_v41, %v9372_v50 }
 0x1ed   : > { %4331 = vrot.lane.b32.xlu1 %v4299_v31, %s8218_s8  ;;  %11775 = vst [vmem:[#allocation40_spill] sm:$0xff] %v9620_v18  ;;  %11777 = vst [vmem:[#allocation41_spill] sm:$0xff] %v9626_v2  ;;  %v7761_v0 = vpop.f32.mrb[18].mxu1  ;;  %v3864_v43 = vcombine.high %v9590_v35, %v9590_v35  ;;  %v9636_v31 = vcombine.high %v9616_v58, %v9616_v58  ;;  %v4083_v9 = vcombine.low %v3822_v1, %v9618_v25 }
 0x1ee   : > { %v9640_v40 = vrot.slane %v3900_v48, %v9158_v11  ;;  %v9642_v52 = vpop.f32.mrb[19].mxu1  ;;  %4325 = vrot.lane.b32.xlu0 %v4292_v16, %s8218_s8  ;;  %v9647_v33 = vcombine.high %v9626_v2, %v9626_v2  ;;  %v9650_v50 = vcombine.low %v3989_v37, %v9253_v20  ;;  %v2355_v23 = vrot.slane %v2347_v56, %v9158_v11 }
 0x1ef   : > { %11778 = vst [vmem:[#allocation42_spill] sm:$0xff] %v9642_v52  ;;  %v11781_v1 = vcombine.low %v9375_v42, %v9410_v59  ;;  %v9657_v48 = vpop.f32.mrb[20].mxu0  ;;  %v4084_v52 = vcombine.low %v9616_v58, %v9636_v31  ;;  %v4091_v20 = vrot.slane %v4083_v9, %v9158_v11  ;;  %v9667_v37 = vcombine.high %v9608_v55, %v9608_v55 }
 0x1f0   : > { %11779 = vst [vmem:[#allocation43_spill] sm:$0xff] %v9647_v33  ;;  %11780 = vst [vmem:[#allocation44_spill] sm:$0xff] %v9650_v50  ;;  %v7724_v56 = vpop.f32.mrb[21].mxu0  ;;  %v9671_v42 = vcombine.high %v9640_v40, %v9640_v40  ;;  %v3866_v16 = vcombine.high %v9546_v63, %v9546_v63  ;;  %v4152_v9 = vcombine.low %v9626_v2, %v9647_v33 }
 0x1f1   : > { %v2362_v0 = vrot.slane %v11781_v1, %v9158_v11  ;;  %11782 = vst [vmem:[#allocation45_spill] sm:$0xff] %v9657_v48  ;;  %4657 = vrot.lane.b32.xlu1 %v4510_v45, %s8217_s26  ;;  %v4295_v1 = vrot.slane %v9650_v50, 1  ;;  %v9676_v48 = vpop.f32.mrb[22].mxu0  ;;  %v4098_v18 = vrot.slane %v4084_v52, %v9158_v11  ;;  %v9683_v56 = vrot.slane %v9546_v63, %v9158_v11 }
 0x1f2   : > { %v3917_v15 = vcombine.high %v9555_v17, %v9555_v17  ;;  %v7725_v32 = vpop.f32.mrb[23].mxu0  ;;  %v9695_v52 = vrot.slane %v9555_v17, %v9158_v11  ;;  %v9700_v63 = vrot.slane %v3866_v16, %v9158_v11  ;;  %v4478_v16 = vcombine.low %v9362_v24, %v9348_v22 }
 0x1f3   : > { %v2363_v45 = vcombine.low %v2355_v23, %v2362_v0  ;;  %v9688_v23 = vcombine.low %v3864_v43, %v9608_v55  ;;  %v4297_v50 = vsel %vm2159_vm3, %v4295_v1, %v4296_v54  ;;  %v9704_v32 = vcombine.high %v9683_v56, %v9683_v56 }
 0x1f4   : > { %11784 = vst [vmem:[#allocation47_spill] sm:$0xff] %v9695_v52  ;;  %4329 = vrot.lane.b32.xlu0 %v4297_v50, %s8218_s8  ;;  %v4118_v43 = vcombine.low %v9667_v37, %v9683_v56  ;;  %v9712_v17 = vcombine.high %v9695_v52, %v9695_v52  ;;  %v9718_v1 = vcombine.low %v4091_v20, %v4098_v18 }
 0x1f5   : > { %11783 = vst [vmem:[#allocation46_spill] sm:$0xff] %v9688_v23  ;;  %2574 = vrot.lane.b32.xlu1 %v2363_v45, %s8217_s26  ;;  %v9721_v45 = vrot.slane %v4152_v9, %v9158_v11  ;;  %v9724_v0 = vrot.slane %v3917_v15, %v9158_v11  ;;  %v11788_v54 = vcombine.low %v9329_v27, %v9345_v62 }
 0x1f6   : > { %11785 = vst [vmem:[#allocation48_spill] sm:$0xff] %v9712_v17  ;;  %11786 = vst [vmem:[#allocation49_spill] sm:$0xff] %v9718_v1  ;;  %v9731_v23 = vrot.slane %v4118_v43, %v9158_v11  ;;  %v4492_v18 = vrot.slane %v4478_v16, %v9158_v11  ;;  %v1824_v15 = vrot.slane %v9293_v38, %v9158_v11 }
 0x1f7   : > { %11787 = vst [vmem:[#allocation50_spill] sm:$0xff] %v9721_v45  ;;  %v4485_v33 = vrot.slane %v11788_v54, %v9158_v11  ;;  %v9738_v20 = vpop.f32.mrb[24].mxu0  ;;  %v11789_v27 = vcombine.low %v9283_v5, %v9279_v41  ;;  %v9748_v9 = vcombine.high %v9700_v63, %v9700_v63  ;;  %v3883_v43 = vcombine.high %v9566_v47, %v9566_v47 }
 0x1f8   : > { %v7728_v54 = vpop.f32.mrb[25].mxu0  ;;  %v4169_v16 = vcombine.low %v9695_v52, %v9712_v17  ;;  %v9756_v38 = vrot.slane %v9566_v47, %v9158_v11  ;;  %v4512_v41 = vcombine.low %v9332_v4, %v9395_v53  ;;  %v1832_v24 = vcombine.low %v1824_v15, %v9327_v30 }
 0x1f9   : > { %v1841_v62 = vrot.slane %v11789_v27, %v9158_v11  ;;  %v4493_v50 = vcombine.low %v4485_v33, %v4492_v18  ;;  %v9760_v5 = vpop.f32.mrb[26].mxu0  ;;  %v9762_v27 = vpop.f32.mrb[20].mxu1  ;;  %v9767_v54 = vrot.slane %v3883_v43, %v9158_v11  ;;  %v11791_v33 = vcombine.low %v9316_v12, %v9336_v51 }
 0x1fa   : > { %11790 = vst [vmem:[#allocation51_spill] sm:$0xff] %v9762_v27  ;;  %v7729_v18 = vpop.f32.mrb[27].mxu0  ;;  %v7766_v52 = vpop.f32.mrb[21].mxu1  ;;  %v4135_v30 = vcombine.low %v9748_v9, %v9756_v38  ;;  %v2116_v15 = vrot.slane %v9410_v59, %v9158_v11  ;;  %2073 = vst.msk [vmem:[#allocation2 + $0x10] sm:$0xff] %vm2070_vm2, %v1832_v24  ;;  %v2165_v12 = vrot.slane %v1832_v24, 1  ;;  %v9794_v59 = vrot.slane %v4169_v16, %v9158_v11 }
 0x1fb   : > { %v1849_v45 = vcombine.low %v1841_v62, %v9423_v28  ;;  %v4519_v47 = vrot.slane %v11791_v33, %v9158_v11  ;;  %4655 = vrot.lane.b32.xlu0 %v4493_v50, %s8217_s26  ;;  %v4526_v28 = vrot.slane %v4512_v41, %v9158_v11  ;;  %v9781_v62 = vpop.f32.mrb[22].mxu1  ;;  %v9787_v43 = vcombine.high %v9767_v54, %v9767_v54 }
 0x1fc   : > { %11792 = vst [vmem:[#allocation52_spill] sm:$0xff] %v9781_v62  ;;  %v11794_v50 = vcombine.low %v9348_v22, %v9366_v6  ;;  %v7767_v33 = vpop.f32.mrb[23].mxu1  ;;  %v2168_v62 = vrot.slane %v2116_v15, 1  ;;  %v9801_v24 = vcombine.high %v9756_v38, %v9756_v38  ;;  %v11795_v22 = vld [vmem:[#allocation28_spill] sm:$0xff]  ;;  %v11797_v15 = vrot.slane %v9590_v35, %v9158_v11 }
 0x1fd   : > { %2074 = vst.msk [vmem:[#allocation2 + $0x18] sm:$0xff] %vm2070_vm2, %v1849_v45  ;;  %v2166_v52 = vrot.slane %v1849_v45, 1  ;;  %11793 = vst [vmem:[#allocation53_spill] sm:$0xff] %v9787_v43  ;;  %v4527_v53 = vcombine.low %v4519_v47, %v4526_v28  ;;  %v4261_v47 = vrot.slane %v9302_v36, %v9158_v11  ;;  %v2365_v28 = vcombine.low %v9521_v39, %v9517_v21 }
 0x1fe   : > { %v4040_v41 = vrot.slane %v11794_v50, %v9158_v11  ;;  %v11798_v36 = vcombine.low %v9412_v29, %v9501_v44  ;;  %v4562_v39 = vcombine.low %v9443_v8, %v9439_v14  ;;  %v9845_v29 = vpop.f32.mrb[24].mxu1  ;;  %v1594_v44 = vcombine.high %v9558_v3, %v9558_v3 }
 0x1ff   : > { %v2167_v45 = vsel %vm2159_vm3, %v2165_v12, %v2166_v52  ;;  %4659 = vrot.lane.b32.xlu0 %v4527_v53, %s8217_s26  ;;  %v2169_v16 = vsel %vm2159_vm3, %v2166_v52, %v2168_v62  ;;  %v9818_v12 = vrot.slane %v11797_v15, 1  ;;  %v9820_v50 = vpop.f32.mrb[28].mxu0  ;;  %v4151_v53 = vcombine.low %v9767_v54, %v9787_v43  ;;  %v11800_v15 = vld [vmem:[#allocation30_spill] sm:$0xff]  ;;  %v11801_v54 = vld [vmem:[#allocation29_spill] sm:$0xff] }
 0x200   : > { %v9806_v6 = vcombine.low %v4040_v41, %v11795_v22  ;;  %2204 = vrot.lane.b32.xlu1 %v2167_v45, %s8218_s8  ;;  %v9823_v41 = vrot.slane %v4135_v30, %v9158_v11  ;;  %v2372_v62 = vrot.slane %v11798_v36, %v9158_v11  ;;  %v7732_v52 = vpop.f32.mrb[29].mxu0  ;;  %v2379_v45 = vrot.slane %v2365_v28, %v9158_v11 }
 0x201   : > { %v11799_v30 = vcombine.low %v9464_v10, %v9590_v35  ;;  %v9841_v18 = vcombine.low %v11801_v54, %v11800_v15  ;;  %v9843_v27 = vpop.f32.mrb[30].mxu0  ;;  %v4570_v8 = vrot.slane %v4562_v39, %v9158_v11  ;;  %v1595_v28 = vcombine.high %v9458_v34, %v9458_v34  ;;  %v7770_v52 = vpop.f32.mrb[25].mxu1 }
 0x202   : > { %11796 = vst [vmem:[#allocation28_spill] sm:$0xff] %v9806_v6  ;;  %v4301_v33 = vrot.slane %v9806_v6, 1  ;;  %v9854_v35 = vrot.slane %v9458_v34, %v9158_v11  ;;  %v7733_v36 = vpop.f32.mrb[31].mxu0  ;;  %v2380_v15 = vcombine.low %v2372_v62, %v2379_v45  ;;  %v1612_v39 = vcombine.high %v9575_v7, %v9575_v7  ;;  %v9860_v6 = vpop.f32.mrb[26].mxu1 }
 0x203   : > { %v4577_v22 = vrot.slane %v11799_v30, %v9158_v11  ;;  %11802 = vst [vmem:[#allocation30_spill] sm:$0xff] %v9841_v18  ;;  %v4303_v30 = vrot.slane %v4261_v47, 1  ;;  %v4300_v54 = vrot.slane %v9841_v18, 1  ;;  %11803 = vst [vmem:[#allocation29_spill] sm:$0xff] %v9860_v6  ;;  %v9863_v2 = vrot.slane %v1595_v28, %v9158_v11  ;;  %v11812_v18 = vld [vmem:[#allocation33_spill] sm:$0xff] }
 0x204   : > { %2206 = vrot.lane.b32.xlu1 %v2169_v16, %s8218_s8  ;;  %v9867_v34 = vcombine.high %v9854_v35, %v9854_v35  ;;  %v9870_v36 = vcombine.low %v1594_v44, %v9854_v35  ;;  %v7771_v16 = vpop.f32.mrb[27].mxu1  ;;  %2576 = vrot.lane.b32.xlu0 %v2380_v15, %s8217_s26  ;;  %v9877_v62 = vrot.slane %v9575_v7, %v9158_v11 }
 0x205   : > { %v4578_v17 = vcombine.low %v4570_v8, %v4577_v22  ;;  %v4529_v45 = vcombine.low %v9450_v26, %v9478_v57  ;;  %v9883_v8 = vrot.slane %v4151_v53, %v9158_v11  ;;  %v4304_v44 = vsel %vm2159_vm3, %v4301_v33, %v4303_v30 }
 0x206   : > { %v4302_v28 = vsel %vm2159_vm3, %v4300_v54, %v4301_v33  ;;  %v9889_v52 = vcombine.high %v9863_v2, %v9863_v2  ;;  %v9895_v15 = vrot.slane %v1612_v39, %v9158_v11  ;;  %v11804_v53 = vcombine.low %v9431_v60, %v9454_v46 }
 0x207   : > { %v4543_v30 = vrot.slane %v4529_v45, %v9158_v11  ;;  %v9902_v33 = vpop.f32.mrb[32].mxu0  ;;  %v11805_v39 = vcombine.low %v9336_v51, %v9332_v4  ;;  %v11806_v60 = vcombine.low %v9454_v46, %v9450_v26  ;;  %v9921_v54 = vcombine.high %v9877_v62, %v9877_v62  ;;  %v11807_v4 = vld [vmem:[#allocation31_spill] sm:$0xff]  ;;  %v9929_v46 = vpop.f32.mrb[28].mxu1 }
 0x208   : > { %4335 = vrot.lane.b32.xlu1 %v4304_v44, %s8218_s8  ;;  %v4536_v16 = vrot.slane %v11804_v53, %v9158_v11  ;;  %v1901_v44 = vcombine.low %v9889_v52, %v9877_v62  ;;  %v7736_v47 = vpop.f32.mrb[33].mxu0  ;;  %4333 = vrot.lane.b32.xlu0 %v4302_v28, %s8218_s8  ;;  %v4268_v22 = vrot.slane %v9478_v57, %v9158_v11  ;;  %v11809_v28 = vld [vmem:[#allocation27_spill] sm:$0xff]  ;;  %v7774_v6 = vpop.f32.mrb[29].mxu1 }
 0x209   : > { %v4064_v7 = vrot.slane %v11805_v39, %v9158_v11  ;;  %v4081_v53 = vrot.slane %v11806_v60, %v9158_v11  ;;  %v4546_v51 = vcombine.low %v9636_v31, %v11807_v4  ;;  %v9927_v39 = vpop.f32.mrb[34].mxu0  ;;  %11808 = vst [vmem:[#allocation31_spill] sm:$0xff] %v9929_v46  ;;  %v9933_v26 = vcombine.high %v9895_v15, %v9895_v15 }
 0x20a   : > { %v4544_v47 = vcombine.low %v4536_v16, %v4543_v30  ;;  %v11810_v60 = vrot.slane %v11809_v28, %v9158_v11  ;;  %v7737_v57 = vpop.f32.mrb[35].mxu0  ;;  %v11814_v31 = vcombine.low %v9618_v25, %v9616_v58  ;;  %v11815_v16 = vcombine.low %v9439_v14, %v9464_v10  ;;  %v11816_v30 = vld [vmem:[#allocation32_spill] sm:$0xff] }
 0x20b   : > { %v9941_v43 = vcombine.low %v11812_v18, %v4081_v53  ;;  %v4560_v46 = vrot.slane %v4546_v51, %v9158_v11  ;;  %v1866_v18 = vcombine.low %v11816_v30, %v9578_v49  ;;  %v9955_v53 = vpop.f32.mrb[30].mxu1  ;;  %v11817_v58 = vcombine.low %v9517_v21, %v9537_v19  ;;  %v11819_v49 = vld [vmem:[#allocation35_spill] sm:$0xff] }
 0x20c   : > { %v9938_v45 = vcombine.low %v11810_v60, %v4064_v7  ;;  %4665 = vrot.lane.b32.xlu1 %v4578_v17, %s8217_s26  ;;  %v4553_v4 = vrot.slane %v11814_v31, %v9158_v11  ;;  %v4115_v7 = vrot.slane %v11815_v16, %v9158_v11  ;;  %v2382_v51 = vcombine.low %v9530_v61, %v9558_v3  ;;  %v7775_v28 = vpop.f32.mrb[31].mxu1  ;;  %v11821_v16 = vld [vmem:[#allocation38_spill] sm:$0xff] }
 0x20d   : > { %11813 = vst [vmem:[#allocation33_spill] sm:$0xff] %v9941_v43  ;;  %v4306_v17 = vrot.slane %v9941_v43, 1  ;;  %v1875_v25 = vrot.slane %v11817_v58, %v9158_v11  ;;  %v4308_v14 = vrot.slane %v4268_v22, 1  ;;  %2075 = vst.msk [vmem:[#allocation2 + $0x20] sm:$0xff] %vm2070_vm2, %v1866_v18  ;;  %v11820_v57 = vcombine.low %v9537_v19, %v11819_v49  ;;  %v11823_v28 = vld [vmem:[#allocation39_spill] sm:$0xff] }
 0x20e   : > { %11811 = vst [vmem:[#allocation27_spill] sm:$0xff] %v9938_v45  ;;  %v4305_v6 = vrot.slane %v9938_v45, 1  ;;  %v4561_v10 = vcombine.low %v4553_v4, %v4560_v46  ;;  %v9966_v60 = vcombine.low %v9549_v13, %v4115_v7  ;;  %v2170_v58 = vrot.slane %v1866_v18, 1  ;;  %v11822_v46 = vld [vmem:[#allocation37_spill] sm:$0xff] }
 0x20f   : > { %v9973_v31 = vrot.slane %v11820_v57, %v9158_v11  ;;  %v1883_v30 = vcombine.low %v1875_v25, %v11821_v16  ;;  %v9978_v61 = vrot.slane %v2382_v51, %v9158_v11  ;;  %v1629_v4 = vcombine.high %v11822_v46, %v11822_v46 }
 0x210   : > { %11818 = vst [vmem:[#allocation32_spill] sm:$0xff] %v9966_v60  ;;  %v4307_v21 = vsel %vm2159_vm3, %v4305_v6, %v4306_v17  ;;  %4661 = vrot.lane.b32.xlu1 %v4544_v47, %s8217_s26  ;;  %v4311_v19 = vrot.slane %v9966_v60, 1  ;;  %v9990_v7 = vrot.slane %v1901_v44, %v9158_v11  ;;  %v1636_v25 = vrot.slane %v11822_v46, %v9158_v11  ;;  %v10004_v44 = vpop.f32.mrb[32].mxu1 }
 0x211   : > { %4337 = vrot.lane.b32.xlu0 %v4307_v21, %s8218_s8  ;;  %v2171_v18 = vrot.slane %v1883_v30, 1  ;;  %2076 = vst.msk [vmem:[#allocation2 + $0x28] sm:$0xff] %vm2070_vm2, %v1883_v30  ;;  %v2397_v6 = vcombine.low %v9973_v31, %v9978_v61  ;;  %v4309_v47 = vsel %vm2159_vm3, %v4306_v17, %v4308_v14  ;;  %v4805_v49 = vrot.slane %v11823_v28, 1 }
 0x212   : > { %v4314_v51 = vsel %vm2159_vm3, %v4311_v19, %v9818_v12  ;;  %v10002_v57 = vrot.slane %v1629_v4, %v9158_v11  ;;  %v10007_v16 = vcombine.high %v1636_v25, %v1636_v25  ;;  %v4579_v31 = vcombine.low %v9608_v55, %v9667_v37  ;;  %v7778_v12 = vpop.f32.mrb[33].mxu1  ;;  %v11826_v37 = vld [vmem:[#allocation45_spill] sm:$0xff]  ;;  %v10030_v4 = vpop.f32.mrb[36].mxu0 }
 0x213   : > { %v2172_v21 = vsel %vm2159_vm3, %v2170_v58, %v2171_v18  ;;  %v11824_v17 = vcombine.low %v9683_v56, %v9704_v32  ;;  %v11825_v58 = vld [vmem:[#allocation40_spill] sm:$0xff]  ;;  %v2123_v55 = vrot.slane %v9558_v3, %v9158_v11  ;;  %v1646_v46 = vcombine.high %v11826_v37, %v11826_v37  ;;  %v10028_v56 = vpop.f32.mrb[34].mxu1  ;;  %11827 = vst [vmem:[#allocation35_spill] sm:$0xff] %v10030_v4  ;;  %v7796_v13 = vpop.f32.mrb[37].mxu0 }
 0x214   : > { %4339 = vrot.lane.b32.xlu1 %v4309_v47, %s8218_s8  ;;  %v10021_v30 = vcombine.high %v10002_v57, %v10002_v57  ;;  %v4802_v61 = vrot.slane %v11825_v58, 1  ;;  %v11828_v47 = vrot.slane %v9718_v1, 1  ;;  %v4587_v12 = vrot.slane %v4579_v31, %v9158_v11  ;;  %v7779_v3 = vpop.f32.mrb[35].mxu1  ;;  %v11829_v1 = vld [vmem:[#allocation42_spill] sm:$0xff] }
 0x215   : > { %v10015_v14 = vrot.slane %v11824_v17, %v9158_v11  ;;  %4663 = vrot.lane.b32.xlu0 %v4561_v10, %s8217_s26  ;;  %v1918_v17 = vcombine.low %v1636_v25, %v10007_v16  ;;  %v10039_v22 = vrot.slane %v11826_v37, %v9158_v11  ;;  %v2173_v43 = vrot.slane %v2123_v55, 1  ;;  %v10086_v13 = vpop.f32.mrb[36].mxu1 }
 0x216   : > { %v4312_v10 = vsel %vm2159_vm3, %v11828_v47, %v4311_v19  ;;  %v1919_v60 = vcombine.low %v10002_v57, %v10021_v30  ;;  %v10044_v45 = vrot.slane %v1646_v46, %v9158_v11  ;;  %v4803_v4 = vrot.slane %v11829_v1, 1  ;;  %v10047_v19 = vpop.f32.mrb[38].mxu0 }
 0x217   : > { %11830 = vst [vmem:[#allocation38_spill] sm:$0xff] %v10047_v19  ;;  %v1926_v25 = vrot.slane %v1918_v17, %v9158_v11  ;;  %v4595_v31 = vcombine.low %v4587_v12, %v10015_v14  ;;  %v10053_v37 = vcombine.high %v10039_v22, %v10039_v22  ;;  %v7797_v47 = vpop.f32.mrb[39].mxu0  ;;  %v2174_v46 = vsel %vm2159_vm3, %v2171_v18, %v2173_v43 }
 0x218   : > { %4343 = vrot.lane.b32.xlu1 %v4314_v51, %s8218_s8  ;;  %v1933_v55 = vrot.slane %v1919_v60, %v9158_v11  ;;  %v10063_v17 = vcombine.high %v10044_v45, %v10044_v45  ;;  %v4596_v12 = vcombine.low %v9700_v63, %v9748_v9  ;;  %v11831_v51 = vcombine.low %v9756_v38, %v9801_v24 }
 0x219   : > { %4341 = vrot.lane.b32.xlu0 %v4312_v10, %s8218_s8  ;;  %v1935_v14 = vcombine.low %v10039_v22, %v10053_v37  ;;  %v2399_v60 = vcombine.low %v9863_v2, %v9889_v52  ;;  %v11832_v18 = vcombine.low %v9854_v35, %v9867_v34  ;;  %v10084_v9 = vsel %vm2159_vm3, %v4803_v4, %v4805_v49 }
 0x21a   : > { %v4611_v3 = vrot.slane %v11831_v51, %v9158_v11  ;;  %v10075_v10 = vcombine.low %v1926_v25, %v1933_v55  ;;  %v4604_v52 = vrot.slane %v4596_v12, %v9158_v11  ;;  %v10093_v55 = vsel %vm2159_vm3, %v4802_v61, %v4803_v4  ;;  %v7782_v51 = vpop.f32.mrb[37].mxu1  ;;  %v10109_v4 = vpop.f32.mrb[40].mxu0 }
 0x21b   : > { %v2406_v47 = vrot.slane %v11832_v18, %v9158_v11  ;;  %v2413_v25 = vrot.slane %v2399_v60, %v9158_v11  ;;  %v1663_v35 = vcombine.high %v9676_v48, %v9676_v48  ;;  %v10103_v49 = vrot.slane %v9676_v48, %v9158_v11  ;;  %v10107_v61 = vpop.f32.mrb[38].mxu1  ;;  %11834 = vst [vmem:[#allocation39_spill] sm:$0xff] %v10109_v4  ;;  %v7800_v38 = vpop.f32.mrb[41].mxu0  ;;  %v11844_v4 = vld [vmem:[#allocation50_spill] sm:$0xff] }
 0x21c   : > { %2578 = vrot.lane.b32.xlu1 %v2397_v6, %s8217_s26  ;;  %2079 = vst.msk [vmem:[#allocation2 + $0x40] sm:$0xff] %vm2070_vm2, %v10075_v10  ;;  %v1680_v12 = vcombine.high %v9738_v20, %v9738_v20  ;;  %11833 = vst [vmem:[#allocation37_spill] sm:$0xff] %v10107_v61  ;;  %v4612_v6 = vcombine.low %v4604_v52, %v4611_v3  ;;  %v10116_v60 = vrot.slane %v9738_v20, %v9158_v11  ;;  %v7783_v51 = vpop.f32.mrb[39].mxu1  ;;  %v10129_v52 = vpop.f32.mrb[42].mxu0  ;;  %v11838_v38 = vld [vmem:[#allocation46_spill] sm:$0xff] }
 0x21d   : > { %2208 = vrot.lane.b32.xlu0 %v2172_v21, %s8218_s8  ;;  %v10112_v21 = vrot.slane %v1935_v14, %v9158_v11  ;;  %v11835_v48 = vcombine.low %v9640_v40, %v9671_v42  ;;  %v2414_v43 = vcombine.low %v2406_v47, %v2413_v25  ;;  %v10123_v19 = vrot.slane %v1663_v35, %v9158_v11  ;;  %v7801_v35 = vpop.f32.mrb[43].mxu0 }
 0x21e   : > { %v1678_v14 = vcombine.high %v10103_v49, %v10103_v49  ;;  %11836 = vst [vmem:[#allocation45_spill] sm:$0xff] %v10129_v52  ;;  %v10132_v20 = vrot.slane %v1680_v12, %v9158_v11  ;;  %v4125_v25 = vrot.slane %v11838_v38, %v9158_v11  ;;  %v11839_v3 = vrot.slane %v9724_v0, %v9158_v11 }
 0x21f   : > { %v4176_v18 = vrot.slane %v11835_v48, %v9158_v11  ;;  %v10136_v48 = vcombine.high %v10116_v60, %v10116_v60  ;;  %v10149_v12 = vcombine.high %v10123_v19, %v10123_v19 }
 0x220   : > { %2210 = vrot.lane.b32.xlu1 %v2174_v46, %s8218_s8  ;;  %v10165_v51 = vcombine.low %v4125_v25, %v9731_v23  ;;  %v10185_v25 = vrot.slane %v9760_v5, %v9158_v11 }
 0x221   : > { %v10139_v47 = vcombine.low %v4176_v18, %v9794_v59  ;;  %4667 = vrot.lane.b32.xlu0 %v4595_v31, %s8217_s26  ;;  %v4323_v59 = vrot.slane %v11839_v3, 1  ;;  %v11840_v18 = vcombine.low %v9704_v32, %v9700_v63  ;;  %v10159_v31 = vcombine.low %v1678_v14, %v10123_v19  ;;  %v10178_v14 = vpop.f32.mrb[40].mxu1 }
 0x222   : > { %11841 = vst [vmem:[#allocation46_spill] sm:$0xff] %v10165_v51  ;;  %v1953_v52 = vcombine.low %v10149_v12, %v10116_v60  ;;  %v10174_v63 = vcombine.high %v10132_v20, %v10132_v20  ;;  %v1697_v32 = vcombine.high %v9760_v5, %v9760_v5  ;;  %11843 = vst [vmem:[#allocation56_spill] sm:$0xff] %v10178_v14  ;;  %v4315_v23 = vrot.slane %v10165_v51, 1  ;;  %v10200_v14 = vpop.f32.mrb[44].mxu0 }
 0x223   : > { %11837 = vst [vmem:[#allocation54_spill] sm:$0xff] %v10139_v47  ;;  %v4142_v38 = vrot.slane %v11840_v18, %v9158_v11  ;;  %v4321_v35 = vrot.slane %v10139_v47, 1  ;;  %v10196_v51 = vcombine.low %v9883_v8, %v11844_v4  ;;  %11847 = vst [vmem:[#allocation58_spill] sm:$0xff] %v10200_v14  ;;  %v10218_v14 = vrot.slane %v9820_v50, %v9158_v11 }
 0x224   : > { %4669 = vrot.lane.b32.xlu1 %v4612_v6, %s8217_s26  ;;  %v1711_v18 = vrot.slane %v1697_v32, %v9158_v11  ;;  %v10211_v8 = vrot.slane %v1953_v52, %v9158_v11 }
 0x225   : > { %v10170_v3 = vcombine.low %v4142_v38, %v9823_v41  ;;  %v4282_v41 = vrot.slane %v9801_v24, %v9158_v11  ;;  %v7786_v38 = vpop.f32.mrb[41].mxu1  ;;  %2580 = vrot.lane.b32.xlu0 %v2414_v43, %s8217_s26  ;;  %v4324_v46 = vsel %vm2159_vm3, %v4321_v35, %v4323_v59  ;;  %11845 = vst [vmem:[#allocation50_spill] sm:$0xff] %v10196_v51 }
 0x226   : > { %v10198_v5 = vpop.f32.mrb[42].mxu1  ;;  %v10204_v24 = vcombine.high %v10185_v25, %v10185_v25  ;;  %v1970_v43 = vcombine.low %v10174_v63, %v10185_v25  ;;  %v1714_v59 = vcombine.high %v9820_v50, %v9820_v50  ;;  %v7804_v38 = vpop.f32.mrb[45].mxu0  ;;  %v10213_v4 = vcombine.high %v1711_v18, %v1711_v18 }
 0x227   : > { %11842 = vst [vmem:[#allocation55_spill] sm:$0xff] %v10170_v3  ;;  %v4316_v47 = vrot.slane %v10170_v3, 1  ;;  %11846 = vst [vmem:[#allocation57_spill] sm:$0xff] %v10198_v5  ;;  %v4318_v6 = vrot.slane %v4282_v41, 1  ;;  %v7787_v32 = vpop.f32.mrb[43].mxu1  ;;  %v4320_v3 = vrot.slane %v10196_v51, 1 }
 0x228   : > { %v6931_v5 = vpop.f32.mrb[46].mxu0  ;;  %v10222_v41 = vrot.slane %v1970_v43, %v9158_v11  ;;  %v10227_v52 = vrot.slane %v1714_v59, %v9158_v11  ;;  %4809 = vrot.lane.b32.xlu1 %v10084_v9, %s8218_s8  ;;  %v1986_v50 = vcombine.low %v1711_v18, %v10213_v4  ;;  %v11848_v9 = vcombine.low %v9867_v34, %v9863_v2  ;;  %v10261_v51 = vpop.f32.mrb[44].mxu1 }
 0x229   : > { %v4317_v61 = vsel %vm2159_vm3, %v4315_v23, %v4316_v47  ;;  %v7805_v38 = vpop.f32.mrb[47].mxu0  ;;  %4807 = vrot.lane.b32.xlu0 %v10093_v55, %s8218_s8  ;;  %v4319_v23 = vsel %vm2159_vm3, %v4316_v47, %v4318_v6  ;;  %v10237_v5 = vcombine.high %v10218_v14, %v10218_v14  ;;  %v11849_v47 = vcombine.low %v9921_v54, %v9895_v15 }
 0x22a   : > { %v10241_v43 = vcombine.high %v10227_v52, %v10227_v52  ;;  %v1899_v55 = vrot.slane %v11848_v9, %v9158_v11  ;;  %v10254_v6 = vrot.slane %v1986_v50, %v9158_v11  ;;  %v4322_v38 = vsel %vm2159_vm3, %v4320_v3, %v4321_v35  ;;  %v7790_v3 = vpop.f32.mrb[45].mxu1 }
 0x22b   : > { %v1916_v18 = vrot.slane %v11849_v47, %v9158_v11  ;;  %v1987_v32 = vcombine.low %v10218_v14, %v10237_v5  ;;  %v2416_v59 = vcombine.low %v9895_v15, %v9933_v26  ;;  %v11850_v2 = vrot.slane %v9870_v36, %v9158_v11 }
 0x22c   : > { %v11851_v50 = vcombine.low %v9877_v62, %v9921_v54  ;;  %v1731_v35 = vcombine.high %v9843_v27, %v9843_v27  ;;  %4351 = vrot.lane.b32.xlu1 %v4324_v46, %s8218_s8  ;;  %v2003_v15 = vcombine.low %v10227_v52, %v10241_v43  ;;  %v2180_v62 = vrot.slane %v10075_v10, 1  ;;  %v10283_v54 = vpop.f32.mrb[46].mxu1 }
 0x22d   : > { %v1900_v34 = vcombine.low %v11850_v2, %v1899_v55  ;;  %v1917_v9 = vcombine.low %v9990_v7, %v1916_v18  ;;  %4345 = vrot.lane.b32.xlu0 %v4317_v61, %s8218_s8  ;;  %v2430_v36 = vrot.slane %v2416_v59, %v9158_v11  ;;  %v10280_v7 = vrot.slane %v9843_v27, %v9158_v11  ;;  %v7791_v18 = vpop.f32.mrb[47].mxu1 }
 0x22e   : > { %v2423_v47 = vrot.slane %v11851_v50, %v9158_v11  ;;  %v10286_v55 = vrot.slane %v1987_v32, %v9158_v11  ;;  %v2130_v59 = vrot.slane %v9933_v26, %v9158_v11  ;;  %v10293_v27 = vrot.slane %v1731_v35, %v9158_v11 }
 0x22f   : > { %2077 = vst.msk [vmem:[#allocation2 + $0x30] sm:$0xff] %vm2070_vm2, %v1900_v34  ;;  %v2175_v46 = vrot.slane %v1900_v34, 1  ;;  %v2176_v61 = vrot.slane %v1917_v9, 1  ;;  %2078 = vst.msk [vmem:[#allocation2 + $0x38] sm:$0xff] %vm2070_vm2, %v1917_v9  ;;  %v10297_v10 = vcombine.high %v10280_v7, %v10280_v7  ;;  %v11852_v2 = vcombine.low %v10007_v16, %v10002_v57 }
 0x230   : > { %v2178_v50 = vrot.slane %v2130_v59, 1  ;;  %v11853_v26 = vcombine.low %v10021_v30, %v10039_v22  ;;  %v11854_v3 = vcombine.low %v10044_v45, %v10063_v17  ;;  %4347 = vrot.lane.b32.xlu1 %v4319_v23, %s8218_s8  ;;  %v2431_v32 = vcombine.low %v2423_v47, %v2430_v36 }
 0x231   : > { %v2440_v34 = vrot.slane %v11852_v2, %v9158_v11  ;;  %v2177_v9 = vsel %vm2159_vm3, %v2175_v46, %v2176_v61  ;;  %4349 = vrot.lane.b32.xlu0 %v4322_v38, %s8218_s8  ;;  %v2449_v57 = vcombine.low %v10053_v37, %v10044_v45  ;;  %v11855_v16 = vcombine.low %v10063_v17, %v10103_v49 }
 0x232   : > { %v2447_v35 = vrot.slane %v11853_v26, %v9158_v11  ;;  %v1950_v18 = vrot.slane %v11854_v3, %v9158_v11  ;;  %v11856_v22 = vrot.slane %v10103_v49, %v9158_v11  ;;  %v2179_v59 = vsel %vm2159_vm3, %v2176_v61, %v2178_v50 }
 0x233   : > { %v2464_v46 = vrot.slane %v11855_v16, %v9158_v11  ;;  %v1747_v38 = vcombine.high %v10293_v27, %v10293_v27  ;;  %v2004_v45 = vcombine.low %v10280_v7, %v10297_v10  ;;  %v2457_v37 = vrot.slane %v2449_v57, %v9158_v11 }
 0x234   : > { %v2183_v30 = vrot.slane %v11856_v22, 1  ;;  %v2448_v2 = vcombine.low %v2440_v34, %v2447_v35  ;;  %v1951_v23 = vcombine.low %v10112_v21, %v1950_v18  ;;  %v1748_v17 = vcombine.high %v9902_v33, %v9902_v33  ;;  %2582 = vrot.lane.b32.xlu1 %v2431_v32, %s8217_s26 }
 0x235   : > { %v10336_v49 = vrot.slane %v9902_v33, %v9158_v11  ;;  %v1765_v21 = vcombine.high %v9927_v39, %v9927_v39  ;;  %v10343_v36 = vrot.slane %v9927_v39, %v9158_v11  ;;  %v2466_v61 = vcombine.low %v10123_v19, %v10149_v12  ;;  %2212 = vrot.lane.b32.xlu0 %v2177_v9, %s8218_s8 }
 0x236   : > { %v2181_v47 = vrot.slane %v1951_v23, 1  ;;  %2080 = vst.msk [vmem:[#allocation2 + $0x48] sm:$0xff] %vm2070_vm2, %v1951_v23  ;;  %v2465_v34 = vcombine.low %v2457_v37, %v2464_v46  ;;  %v10350_v33 = vrot.slane %v1748_v17, %v9158_v11  ;;  %v10368_v12 = vrot.slane %v2004_v45, %v9158_v11 }
 0x237   : > { %v10354_v50 = vcombine.high %v10336_v49, %v10336_v49  ;;  %v10358_v39 = vcombine.low %v1747_v38, %v10336_v49  ;;  %v10361_v35 = vrot.slane %v1765_v21, %v9158_v11  ;;  %v10365_v19 = vcombine.high %v10343_v36, %v10343_v36  ;;  %v11860_v21 = vld [vmem:[#allocation51_spill] sm:$0xff] }
 0x238   : > { %v2182_v26 = vsel %vm2159_vm3, %v2180_v62, %v2181_v47  ;;  %v10374_v9 = vcombine.high %v10350_v33, %v10350_v33  ;;  %v2184_v62 = vsel %vm2159_vm3, %v2181_v47, %v2183_v30  ;;  %2214 = vrot.lane.b32.xlu1 %v2179_v59, %s8218_s8  ;;  %v2474_v22 = vrot.slane %v2466_v61, %v9158_v11 }
 0x239   : > { %v2021_v32 = vcombine.low %v10354_v50, %v10350_v33  ;;  %v2028_v3 = vrot.slane %v10358_v39, %v9158_v11  ;;  %v2534_v18 = vcombine.low %v10336_v49, %v10354_v50  ;;  %v10383_v57 = vcombine.high %v10361_v35, %v10361_v35  ;;  %2584 = vrot.lane.b32.xlu0 %v2448_v2, %s8217_s26 }
 0x23a   : > { %v2038_v16 = vcombine.low %v10365_v19, %v10361_v35  ;;  %v2037_v46 = vcombine.low %v10374_v9, %v10343_v36  ;;  %v11857_v30 = vcombine.low %v10116_v60, %v10136_v48  ;;  %v1960_v38 = vrot.slane %v10159_v31, %v9158_v11 }
 0x23b   : > { %v11858_v45 = vcombine.low %v10136_v48, %v10132_v20  ;;  %v2483_v2 = vcombine.low %v10132_v20, %v10174_v63  ;;  %v11859_v37 = vcombine.low %v10185_v25, %v10204_v24  ;;  %v2551_v60 = vcombine.low %v10343_v36, %v10365_v19  ;;  %v11861_v63 = vld [vmem:[#allocation52_spill] sm:$0xff] }
 0x23c   : > { %v2481_v23 = vrot.slane %v11857_v30, %v9158_v11  ;;  %v5711_v31 = vcombine.high %v11860_v21, %v11860_v21  ;;  %v5718_v61 = vrot.slane %v11860_v21, %v9158_v11  ;;  %v1968_v48 = vcombine.low %v1960_v38, %v10211_v8  ;;  %2586 = vrot.lane.b32.xlu1 %v2465_v34, %s8217_s26 }
 0x23d   : > { %v1977_v59 = vrot.slane %v11858_v45, %v9158_v11  ;;  %v2498_v17 = vrot.slane %v11859_v37, %v9158_v11  ;;  %v2491_v20 = vrot.slane %v2483_v2, %v9158_v11  ;;  %v5728_v25 = vcombine.high %v11861_v63, %v11861_v63  ;;  %2216 = vrot.lane.b32.xlu0 %v2182_v26, %s8218_s8 }
 0x23e   : > { %v2482_v47 = vcombine.low %v2474_v22, %v2481_v23  ;;  %v10423_v22 = vrot.slane %v5711_v31, %v9158_v11  ;;  %v10425_v23 = vcombine.high %v5718_v61, %v5718_v61  ;;  %v10429_v8 = vrot.slane %v11861_v63, %v9158_v11  ;;  %2081 = vst.msk [vmem:[#allocation2 + $0x50] sm:$0xff] %vm2070_vm2, %v1968_v48 }
 0x23f   : > { %v1985_v30 = vcombine.low %v1977_v59, %v10222_v41  ;;  %v2185_v41 = vrot.slane %v1968_v48, 1  ;;  %v2499_v59 = vcombine.low %v2491_v20, %v2498_v17  ;;  %v10434_v26 = vrot.slane %v5728_v25, %v9158_v11 }
 0x240   : > { %v10437_v34 = vrot.slane %v2037_v46, %v9158_v11  ;;  %v10441_v2 = vcombine.high %v10423_v22, %v10423_v22  ;;  %v5952_v37 = vcombine.low %v5718_v61, %v10425_v23  ;;  %v10446_v21 = vcombine.high %v10429_v8, %v10429_v8  ;;  %2218 = vrot.lane.b32.xlu1 %v2184_v62, %s8218_s8 }
 0x241   : > { %v2186_v38 = vrot.slane %v1985_v30, 1  ;;  %2082 = vst.msk [vmem:[#allocation2 + $0x58] sm:$0xff] %vm2070_vm2, %v1985_v30  ;;  %v10451_v17 = vcombine.high %v10434_v26, %v10434_v26  ;;  %v2144_v46 = vrot.slane %v10204_v24, %v9158_v11  ;;  %v2501_v48 = vcombine.low %v10237_v5, %v10227_v52  ;;  %2588 = vrot.lane.b32.xlu0 %v2482_v47, %s8217_s26  ;;  %v2087_v5 = vld [vmem:[#allocation2] sm:$0xff] }
 0x242   : > { %v5953_v61 = vcombine.low %v10423_v22, %v10441_v2  ;;  %v5969_v63 = vcombine.low %v10429_v8, %v10446_v21  ;;  %v5960_v24 = vrot.slane %v5952_v37, %v9158_v11  ;;  %v11862_v62 = vcombine.low %v10213_v4, %v10218_v14 }
 0x243   : > { %v2187_v31 = vsel %vm2159_vm3, %v2185_v41, %v2186_v38  ;;  %v2188_v25 = vrot.slane %v2144_v46, 1  ;;  %v5970_v45 = vcombine.low %v10434_v26, %v10451_v17  ;;  %v2515_v20 = vrot.slane %v2501_v48, %v9158_v11 }
 0x244   : > { %v2508_v47 = vrot.slane %v11862_v62, %v9158_v11  ;;  %v5967_v41 = vrot.slane %v5953_v61, %v9158_v11  ;;  %v2002_v30 = vcombine.low %v10254_v6, %v10286_v55  ;;  %v2011_v46 = vrot.slane %v2003_v15, %v9158_v11  ;;  %2590 = vrot.lane.b32.xlu1 %v2499_v59, %s8217_s26  ;;  %v11864_v59 = vld [vmem:[#allocation29_spill] sm:$0xff] }
 0x245   : > { %v2189_v37 = vsel %vm2159_vm3, %v2186_v38, %v2188_v25  ;;  %v2518_v14 = vcombine.low %v10297_v10, %v10293_v27  ;;  %v11863_v4 = vcombine.low %v10241_v43, %v10280_v7  ;;  %2220 = vrot.lane.b32.xlu0 %v2187_v31, %s8218_s8  ;;  %v10493_v6 = vrot.slane %v5969_v63, %v9158_v11  ;;  %v10498_v10 = vpop.permute.xlu0 %2568 }
 0x246   : > { %v2516_v55 = vcombine.low %v2508_v47, %v2515_v20  ;;  %2083 = vst.msk [vmem:[#allocation2 + $0x60] sm:$0xff] %vm2070_vm2, %v2002_v30  ;;  %v2190_v52 = vrot.slane %v2002_v30, 1  ;;  %v5745_v15 = vcombine.high %v9845_v29, %v9845_v29  ;;  %v2019_v38 = vcombine.low %v2011_v46, %v10368_v12 }
 0x247   : > { %v2525_v61 = vrot.slane %v11863_v4, %v9158_v11  ;;  %v2532_v43 = vrot.slane %v2518_v14, %v9158_v11  ;;  %v10504_v7 = vrot.slane %v9845_v29, %v9158_v11  ;;  %v5762_v31 = vcombine.high %v11864_v59, %v11864_v59 }
 0x248   : > { %v10509_v48 = vrot.slane %v5745_v15, %v9158_v11  ;;  %v10513_v30 = vrot.slane %v11864_v59, %v9158_v11  ;;  %v2151_v20 = vrot.slane %v10293_v27, %v9158_v11  ;;  %v2535_v12 = vcombine.low %v10350_v33, %v10374_v9  ;;  %2084 = vst.msk [vmem:[#allocation2 + $0x68] sm:$0xff] %vm2070_vm2, %v2019_v38 }
 0x249   : > { %v10519_v63 = vcombine.low %v5960_v24, %v5967_v41  ;;  %v2191_v29 = vrot.slane %v2019_v38, 1  ;;  %v2533_v25 = vcombine.low %v2525_v61, %v2532_v43  ;;  %v5760_v62 = vcombine.high %v10504_v7, %v10504_v7  ;;  %2222 = vrot.lane.b32.xlu1 %v2189_v37, %s8218_s8  ;;  %2592 = vrot.lane.b32.xlu0 %v2516_v55, %s8217_s26  ;;  %v10554_v15 = vpop.permute.xlu0 %4651 }
 0x24a   : > { %v10530_v27 = vcombine.high %v10509_v48, %v10509_v48  ;;  %v10533_v9 = vrot.slane %v5762_v31, %v9158_v11  ;;  %v2193_v24 = vrot.slane %v2151_v20, 1  ;;  %v10540_v37 = vcombine.high %v10513_v30, %v10513_v30 }
 0x24b   : > { %v2192_v41 = vsel %vm2159_vm3, %v2190_v52, %v2191_v29  ;;  %v2542_v14 = vrot.slane %v2534_v18, %v9158_v11  ;;  %v2549_v55 = vrot.slane %v2535_v12, %v9158_v11  ;;  %v10557_v38 = vcombine.low %v5760_v62, %v10509_v48  ;;  %v11865_v18 = vld [vmem:[#allocation31_spill] sm:$0xff] }
 0x24c   : > { %v5987_v4 = vcombine.low %v10530_v27, %v10513_v30  ;;  %v2194_v61 = vsel %vm2159_vm3, %v2191_v29, %v2193_v24  ;;  %v10552_v52 = vcombine.high %v10533_v9, %v10533_v9  ;;  %v6003_v49 = vcombine.low %v10540_v37, %v10533_v9 }
 0x24d   : > { %v5779_v43 = vcombine.high %v11865_v18, %v11865_v18  ;;  %v10565_v59 = vrot.slane %v11865_v18, %v9158_v11  ;;  %2224 = vrot.lane.b32.xlu0 %v2192_v41, %s8218_s8  ;;  %2594 = vrot.lane.b32.xlu1 %v2533_v25, %s8217_s26  ;;  %v2035_v12 = vrot.slane %v2021_v32, %v9158_v11  ;;  %v10585_v41 = vpop.permute.xlu1 %2570 }
 0x24e   : > { %v10570_v31 = vrot.slane %v5987_v4, %v9158_v11  ;;  %v2550_v29 = vcombine.low %v2542_v14, %v2549_v55  ;;  %v2052_v25 = vrot.slane %v2038_v16, %v9158_v11  ;;  %v2552_v33 = vcombine.low %v10361_v35, %v10383_v57  ;;  %v10598_v14 = vpop.permute.xlu0 %4647 }
 0x24f   : > { %v5793_v62 = vrot.slane %v5779_v43, %v9158_v11  ;;  %v6004_v24 = vcombine.low %v10552_v52, %v10565_v59  ;;  %v2036_v4 = vcombine.low %v2028_v3, %v2035_v12  ;;  %v2559_v50 = vrot.slane %v2551_v60, %v9158_v11  ;;  %v11867_v12 = vld [vmem:[#allocation53_spill] sm:$0xff] }
 0x250   : > { %v5796_v32 = vcombine.high %v9955_v53, %v9955_v53  ;;  %v10602_v16 = vcombine.high %v10565_v59, %v10565_v59  ;;  %v2053_v35 = vcombine.low %v10437_v34, %v2052_v25  ;;  %v2566_v19 = vrot.slane %v2552_v33, %v9158_v11  ;;  %v11866_v34 = vld [vmem:[#allocation43_spill] sm:$0xff] }
 0x251   : > { %v10604_v55 = vcombine.high %v5793_v62, %v5793_v62  ;;  %v10607_v39 = vrot.slane %v6004_v24, %v9158_v11  ;;  %2226 = vrot.lane.b32.xlu1 %v2194_v61, %s8218_s8  ;;  %2596 = vrot.lane.b32.xlu0 %v2550_v29, %s8217_s26  ;;  %2085 = vst.msk [vmem:[#allocation2 + $0x70] sm:$0xff] %vm2070_vm2, %v2036_v4  ;;  %v2195_v36 = vrot.slane %v2036_v4, 1  ;;  %v11868_v29 = vld [vmem:[#allocation41_spill] sm:$0xff]  ;;  %v10629_v4 = vpop.permute.xlu1 %4649 }
 0x252   : > { %v10616_v3 = vrot.slane %v9955_v53, %v9158_v11  ;;  %v10619_v60 = vrot.slane %v5796_v32, %v9158_v11  ;;  %v2196_v43 = vrot.slane %v2053_v35, 1  ;;  %2086 = vst.msk [vmem:[#allocation2 + $0x78] sm:$0xff] %vm2070_vm2, %v2053_v35  ;;  %v4614_v61 = vcombine.low %v11866_v34, %v9640_v40  ;;  %11870 = vst [vmem:[#allocation51_spill] sm:$0xff] %v10629_v4  ;;  %v2201_v40 = vpop.permute.xlu0 %2200 }
 0x253   : > { %v6020_v18 = vcombine.low %v5793_v62, %v10604_v55  ;;  %v11869_v24 = vcombine.low %v11867_v12, %v11868_v29  ;;  %v2567_v53 = vcombine.low %v2559_v50, %v2566_v19  ;;  %v2158_v50 = vrot.slane %v10383_v57, %v9158_v11 }
 0x254   : > { %v10633_v33 = vcombine.high %v10616_v3, %v10616_v3  ;;  %v10637_v62 = vcombine.high %v10619_v60, %v10619_v60  ;;  %v2197_v34 = vsel %vm2159_vm3, %v2195_v36, %v2196_v43  ;;  %v4628_v12 = vrot.slane %v4614_v61, %v9158_v11 }
 0x255   : > { %v4621_v25 = vrot.slane %v11869_v24, %v9158_v11  ;;  %v4823_v19 = vrot.slane %v11823_v28, 2  ;;  %v10649_v29 = vrot.slane %v6020_v18, %v9158_v11  ;;  %2228 = vrot.lane.b32.xlu0 %v2197_v34, %s8218_s8  ;;  %2598 = vrot.lane.b32.xlu1 %v2567_v53, %s8217_s26  ;;  %v5813_v36 = vcombine.high %v10004_v44, %v10004_v44 }
 0x256   : > { %v6021_v24 = vcombine.low %v10616_v3, %v10633_v33  ;;  %v2198_v61 = vrot.slane %v2158_v50, 1  ;;  %v10659_v57 = vrot.slane %v10004_v44, %v9158_v11  ;;  %v11871_v28 = vrot.slane %v11829_v1, 2  ;;  %v11875_v44 = vld [vmem:[#allocation48_spill] sm:$0xff] }
 0x257   : > { %v4629_v35 = vcombine.low %v4621_v25, %v4628_v12  ;;  %v11872_v18 = vrot.slane %v11825_v58, 2  ;;  %v10669_v32 = vrot.slane %v5813_v36, %v9158_v11  ;;  %v11873_v25 = vld [vmem:[#allocation47_spill] sm:$0xff]  ;;  %v11876_v47 = vcombine.low %v11875_v44, %v9724_v0  ;;  %v10686_v53 = vpop.permute.xlu1 %4327 }
 0x258   : > { %v11874_v12 = vcombine.low %v9671_v42, %v11873_v25  ;;  %v2199_v46 = vsel %vm2159_vm3, %v2196_v43, %v2198_v61  ;;  %v2203_v42 = vpop.permute.xlu0 %2202  ;;  %v6246_v43 = vrot.slane %v10519_v63, 1  ;;  %v11877_v61 = vrot.slane %v11829_v1, 2 }
 0x259   : > { %v4822_v34 = vsel %vm4819_vm4, %v11872_v18, %v11871_v28  ;;  %v4645_v20 = vrot.slane %v11876_v47, %v9158_v11  ;;  %v10682_v28 = vcombine.high %v10659_v57, %v10659_v57  ;;  %v2248_v18 = vadd.f32 %v2201_v40, %v2087_v5  ;;  %4671 = vrot.lane.b32.xlu0 %v4629_v35, %s8217_s26  ;;  %v2088_v5 = vld [vmem:[#allocation2 + $0x8] sm:$0xff] }
 0x25a   : > { %v4638_v50 = vrot.slane %v11874_v12, %v9158_v11  ;;  %2230 = vrot.lane.b32.xlu1 %v2199_v46, %s8218_s8  ;;  %v5984_v47 = vrot.slane %v5970_v45, %v9158_v11  ;;  %v4824_v25 = vsel %vm4819_vm4, %v11877_v61, %v4823_v19  ;;  %v2249_v35 = vadd.f32 %v2203_v42, %v2088_v5 }
 0x25b   : > { %v6038_v40 = vcombine.low %v10659_v57, %v10682_v28  ;;  %2264 = vst.msk [vmem:[#allocation2] sm:$0xff] %vm2070_vm2, %v2248_v18  ;;  %v5829_v46 = vcombine.high %v10669_v32, %v10669_v32  ;;  %v10710_v12 = vrot.slane %v10028_v56, %v9158_v11  ;;  %v5994_v19 = vrot.slane %v10557_v38, %v9158_v11  ;;  %v10718_v44 = vpop.permute.xlu1 %4653 }
 0x25c   : > { %v4646_v0 = vcombine.low %v4638_v50, %v4645_v20  ;;  %v5830_v20 = vcombine.high %v10028_v56, %v10028_v56  ;;  %v10706_v45 = vcombine.low %v10493_v6, %v5984_v47  ;;  %v6011_v50 = vrot.slane %v6003_v49, %v9158_v11  ;;  %11879 = vst [vmem:[#allocation29_spill] sm:$0xff] %v10718_v44 }
 0x25d   : > { %2265 = vst.msk [vmem:[#allocation2 + $0x8] sm:$0xff] %vm2070_vm2, %v2249_v35  ;;  %v11880_v6 = vrot.slane %v10504_v7, %v9158_v11  ;;  %v5847_v42 = vcombine.high %v10086_v13, %v10086_v13  ;;  %v10731_v38 = vrot.slane %v10086_v13, %v9158_v11  ;;  %4825 = vrot.lane.b32.xlu0 %v4822_v34, %s8217_s26 }
 0x25e   : > { %11878 = vst [vmem:[#allocation52_spill] sm:$0xff] %v10706_v45  ;;  %v10722_v18 = vrot.slane %v5830_v20, %v9158_v11  ;;  %4673 = vrot.lane.b32.xlu1 %v4646_v0, %s8217_s26  ;;  %v6247_v49 = vrot.slane %v10706_v45, 1  ;;  %v10738_v47 = vcombine.high %v10710_v12, %v10710_v12  ;;  %v10741_v61 = vcombine.low %v5829_v46, %v10710_v12 }
 0x25f   : > { %v6249_v56 = vrot.slane %v11880_v6, 1  ;;  %v10744_v5 = vcombine.low %v5994_v19, %v10570_v31  ;;  %v10747_v35 = vcombine.low %v6011_v50, %v10607_v39  ;;  %v10754_v34 = vrot.slane %v5847_v42, %v9158_v11  ;;  %v10769_v19 = vpop.permute.xlu0 %2572  ;;  %v10786_v20 = vpop.permute.xlu1 %4331 }
 0x260   : > { %v10751_v13 = vcombine.high %v10722_v18, %v10722_v18  ;;  %v10758_v0 = vcombine.high %v10731_v38, %v10731_v38  ;;  %v10761_v46 = vrot.slane %v6021_v24, %v9158_v11  ;;  %v10764_v31 = vrot.slane %v6038_v40, %v9158_v11 }
 0x261   : > { %11881 = vst [vmem:[#allocation31_spill] sm:$0xff] %v10744_v5  ;;  %11882 = vst [vmem:[#allocation43_spill] sm:$0xff] %v10747_v35  ;;  %v6248_v39 = vsel %vm2159_vm3, %v6246_v43, %v6247_v49  ;;  %v6251_v42 = vrot.slane %v10744_v5, 1  ;;  %v6252_v24 = vrot.slane %v10747_v35, 1  ;;  %v6250_v43 = vsel %vm2159_vm3, %v6247_v49, %v6249_v56 }
 0x262   : > { %v2280_v36 = vld [vmem:[#allocation2] sm:$0xff]  ;;  %6276 = vrot.lane.b32.xlu0 %v6248_v39, %s8218_s8  ;;  %4827 = vrot.lane.b32.xlu1 %v4824_v25, %s8217_s26  ;;  %v10782_v40 = vcombine.high %v10754_v34, %v10754_v34  ;;  %v6071_v50 = vcombine.low %v10751_v13, %v10731_v38  ;;  %v11883_v25 = vcombine.low %v10425_v23, %v10423_v22 }
 0x263   : > { %v2616_v6 = vadd.f32 %v10498_v10, %v2280_v36  ;;  %v11884_v56 = vcombine.low %v10441_v2, %v10429_v8  ;;  %v6253_v35 = vsel %vm2159_vm3, %v6251_v42, %v6252_v24  ;;  %v6217_v45 = vrot.slane %v10602_v16, %v9158_v11  ;;  %v11885_v10 = vld [vmem:[#allocation37_spill] sm:$0xff]  ;;  %v10806_v5 = vpop.permute.xlu0 %4325  ;;  %v11886_v8 = vld [vmem:[#allocation56_spill] sm:$0xff] }
 0x264   : > { %v6356_v39 = vrot.slane %v11883_v25, %v9158_v11  ;;  %v2281_v58 = vld [vmem:[#allocation2 + $0x8] sm:$0xff]  ;;  %v5864_v36 = vcombine.high %v11885_v10, %v11885_v10  ;;  %v5871_v1 = vrot.slane %v11885_v10, %v9158_v11  ;;  %v5881_v2 = vcombine.high %v11886_v8, %v11886_v8 }
 0x265   : > { %v6363_v49 = vrot.slane %v11884_v56, %v9158_v11  ;;  %2632 = vst.msk [vmem:[#allocation2] sm:$0xff] %vm2070_vm2, %v2616_v6  ;;  %v2617_v22 = vadd.f32 %v10585_v41, %v2281_v58  ;;  %v10814_v42 = vrot.slane %v11886_v8, %v9158_v11  ;;  %v6254_v25 = vrot.slane %v6217_v45, 1 }
 0x266   : > { %6280 = vrot.lane.b32.xlu0 %v6253_v35, %s8218_s8  ;;  %6278 = vrot.lane.b32.xlu1 %v6250_v43, %s8218_s8  ;;  %v10819_v56 = vrot.slane %v5864_v36, %v9158_v11  ;;  %v10821_v10 = vcombine.high %v5871_v1, %v5871_v1  ;;  %v6382_v58 = vcombine.low %v10509_v48, %v10530_v27  ;;  %v10849_v36 = vpop.permute.xlu1 %4657  ;;  %v11891_v48 = vld [vmem:[#allocation38_spill] sm:$0xff] }
 0x267   : > { %v6364_v23 = vcombine.low %v6356_v39, %v6363_v49  ;;  %2633 = vst.msk [vmem:[#allocation2 + $0x8] sm:$0xff] %vm2070_vm2, %v2617_v22  ;;  %v10827_v41 = vrot.slane %v5881_v2, %v9158_v11  ;;  %v10831_v6 = vcombine.high %v10814_v42, %v10814_v42  ;;  %v11887_v45 = vcombine.low %v10513_v30, %v10540_v37  ;;  %v10866_v22 = vpop.permute.xlu0 %4329 }
 0x268   : > { %v6365_v43 = vcombine.low %v10446_v21, %v10434_v26  ;;  %v10840_v39 = vrot.slane %v6071_v50, %v9158_v11  ;;  %v10846_v27 = vcombine.high %v10819_v56, %v10819_v56  ;;  %v6088_v49 = vcombine.low %v5871_v1, %v10821_v10  ;;  %11888 = vst [vmem:[#allocation53_spill] sm:$0xff] %v10849_v36  ;;  %v11892_v36 = vld [vmem:[#allocation26_spill] sm:$0xff] }
 0x269   : > { %v6397_v35 = vrot.slane %v11887_v45, %v9158_v11  ;;  %v6255_v30 = vsel %vm2159_vm3, %v6252_v24, %v6254_v25  ;;  %v6390_v26 = vrot.slane %v6382_v58, %v9158_v11  ;;  %v10862_v1 = vcombine.high %v10827_v41, %v10827_v41 }
 0x26a   : > { %v6373_v21 = vrot.slane %v6365_v43, %v9158_v11  ;;  %6552 = vrot.lane.b32.xlu0 %v6364_v23, %s8217_s26  ;;  %6282 = vrot.lane.b32.xlu1 %v6255_v30, %s8218_s8  ;;  %v6089_v50 = vcombine.low %v10819_v56, %v10846_v27  ;;  %v6096_v8 = vrot.slane %v6088_v49, %v9158_v11  ;;  %v11890_v30 = vld [vmem:[#allocation35_spill] sm:$0xff] }
 0x26b   : > { %v6105_v2 = vcombine.low %v10814_v42, %v10831_v6  ;;  %v6398_v23 = vcombine.low %v6390_v26, %v6397_v35  ;;  %v11889_v25 = vcombine.low %v10451_v17, %v10504_v7  ;;  %v6939_v37 = vcombine.high %v11890_v30, %v11890_v30 }
 0x26c   : > { %v6103_v45 = vrot.slane %v6089_v50, %v9158_v11  ;;  %v3933_v43 = vld [vmem:[#allocation2] sm:$0xff]  ;;  %v6946_v24 = vrot.slane %v11890_v30, %v9158_v11  ;;  %v6956_v49 = vcombine.high %v11891_v48, %v11891_v48  ;;  %v10885_v26 = vrot.slane %v11891_v48, %v9158_v11  ;;  %v11893_v48 = vld [vmem:[#allocation34_spill] sm:$0xff] }
 0x26d   : > { %v6380_v58 = vrot.slane %v11889_v25, %v9158_v11  ;;  %v4199_v44 = vadd.f32 %v11892_v36, %v3933_v43  ;;  %v6417_v17 = vcombine.low %v10633_v33, %v10619_v60  ;;  %v10893_v25 = vrot.slane %v6939_v37, %v9158_v11  ;;  %v10897_v36 = vpop.permute.xlu1 %2574 }
 0x26e   : > { %v3934_v7 = vld [vmem:[#allocation2 + $0x8] sm:$0xff]  ;;  %6556 = vrot.lane.b32.xlu0 %v6398_v23, %s8217_s26  ;;  %v10895_v30 = vcombine.high %v6946_v24, %v6946_v24  ;;  %v10907_v33 = vcombine.high %v10885_v26, %v10885_v26  ;;  %v11894_v37 = vcombine.low %v10604_v55, %v10616_v3  ;;  %v10914_v50 = vcombine.low %v6096_v8, %v6103_v45 }
 0x26f   : > { %v6381_v35 = vcombine.low %v6373_v21, %v6380_v58  ;;  %v10900_v21 = vrot.slane %v6956_v49, %v9158_v11  ;;  %v4200_v58 = vadd.f32 %v11893_v48, %v3934_v7  ;;  %4213 = vst.msk [vmem:[#allocation2] sm:$0xff] %vm2070_vm2, %v4199_v44  ;;  %v6431_v43 = vrot.slane %v6417_v17, %v9158_v11  ;;  %v10924_v7 = vpop.permute.xlu0 %4655 }
 0x270   : > { %v6424_v23 = vrot.slane %v11894_v37, %v9158_v11  ;;  %v10917_v49 = vrot.slane %v6105_v2, %v9158_v11  ;;  %v10921_v44 = vcombine.high %v10893_v25, %v10893_v25  ;;  %11895 = vst [vmem:[#allocation41_spill] sm:$0xff] %v10924_v7  ;;  %v6399_v8 = vcombine.low %v10533_v9, %v10552_v52 }
 0x271   : > { %6554 = vrot.lane.b32.xlu1 %v6381_v35, %s8217_s26  ;;  %v7020_v35 = vcombine.low %v6946_v24, %v10895_v30  ;;  %4214 = vst.msk [vmem:[#allocation2 + $0x8] sm:$0xff] %vm2070_vm2, %v4200_v58  ;;  %v11896_v2 = vcombine.low %v10565_v59, %v10602_v16  ;;  %v10939_v24 = vcombine.high %v10900_v21, %v10900_v21  ;;  %v11900_v58 = vld [vmem:[#allocation39_spill] sm:$0xff] }
 0x272   : > { %v6432_v3 = vcombine.low %v6424_v23, %v6431_v43  ;;  %v7021_v17 = vcombine.low %v10893_v25, %v10921_v44  ;;  %v7037_v48 = vcombine.low %v10885_v26, %v10907_v33  ;;  %v6407_v52 = vrot.slane %v6399_v8, %v9158_v11  ;;  %v2089_v43 = vld [vmem:[#allocation2 + $0x10] sm:$0xff] }
 0x273   : > { %v6414_v45 = vrot.slane %v11896_v2, %v9158_v11  ;;  %v7028_v9 = vrot.slane %v7020_v35, %v9158_v11  ;;  %v10950_v59 = vcombine.low %v10649_v29, %v10761_v46  ;;  %v11898_v16 = vcombine.low %v10619_v60, %v10637_v62  ;;  %v2205_v2 = vpop.permute.xlu1 %2204  ;;  %v10965_v46 = vpop.permute.xlu0 %4659 }
 0x274   : > { %6560 = vrot.lane.b32.xlu0 %v6432_v3, %s8217_s26  ;;  %v7035_v23 = vrot.slane %v7021_v17, %v9158_v11  ;;  %v6434_v35 = vcombine.low %v10682_v28, %v10669_v32  ;;  %v11899_v3 = vcombine.low %v10637_v62, %v10659_v57  ;;  %v6973_v29 = vcombine.high %v11900_v58, %v11900_v58 }
 0x275   : > { %11897 = vst [vmem:[#allocation47_spill] sm:$0xff] %v10950_v59  ;;  %v6045_v37 = vrot.slane %v11898_v16, %v9158_v11  ;;  %11901 = vst [vmem:[#allocation48_spill] sm:$0xff] %v10965_v46  ;;  %v6415_v55 = vcombine.low %v6407_v52, %v6414_v45  ;;  %v2250_v60 = vadd.f32 %v2205_v2, %v2089_v43  ;;  %v6256_v17 = vrot.slane %v10950_v59, 1  ;;  %v11903_v52 = vld [vmem:[#allocation57_spill] sm:$0xff] }
 0x276   : > { %v6441_v8 = vrot.slane %v11899_v3, %v9158_v11  ;;  %v4227_v7 = vld [vmem:[#allocation2] sm:$0xff]  ;;  %v6448_v4 = vrot.slane %v6434_v35, %v9158_v11  ;;  %v10976_v62 = vrot.slane %v11900_v58, %v9158_v11  ;;  %v10979_v57 = vrot.slane %v6973_v29, %v9158_v11 }
 0x277   : > { %v10968_v16 = vcombine.low %v6045_v37, %v10764_v31  ;;  %v4367_v45 = vadd.f32 %v10806_v5, %v4227_v7  ;;  %6558 = vrot.lane.b32.xlu1 %v6415_v55, %s8217_s26  ;;  %2266 = vst.msk [vmem:[#allocation2 + $0x10] sm:$0xff] %vm2070_vm2, %v2250_v60  ;;  %v5898_v37 = vcombine.high %v11903_v52, %v11903_v52  ;;  %v2090_v55 = vld [vmem:[#allocation2 + $0x18] sm:$0xff]  ;;  %v2207_v35 = vpop.permute.xlu1 %2206 }
 0x278   : > { %v10989_v43 = vrot.slane %v11903_v52, %v9158_v11  ;;  %v10992_v58 = vrot.slane %v7037_v48, %v9158_v11  ;;  %v6449_v2 = vcombine.low %v6441_v8, %v6448_v4  ;;  %v6988_v5 = vcombine.high %v10976_v62, %v10976_v62 }
 0x279   : > { %11902 = vst [vmem:[#allocation37_spill] sm:$0xff] %v10968_v16  ;;  %v6257_v31 = vrot.slane %v10968_v16, 1  ;;  %4381 = vst.msk [vmem:[#allocation2] sm:$0xff] %vm2070_vm2, %v4367_v45  ;;  %v10999_v3 = vcombine.low %v7028_v9, %v7035_v23  ;;  %v2251_v60 = vadd.f32 %v2207_v35, %v2090_v55  ;;  %v11003_v52 = vrot.slane %v5898_v37, %v9158_v11  ;;  %v11014_v23 = vpop.permute.xlu0 %2576  ;;  %v11906_v35 = vld [vmem:[#allocation45_spill] sm:$0xff] }
 0x27a   : > { %v5913_v48 = vcombine.high %v10989_v43, %v10989_v43  ;;  %v6451_v9 = vcombine.low %v10722_v18, %v10751_v13  ;;  %v11905_v45 = vcombine.low %v10710_v12, %v10738_v47  ;;  %v6224_v55 = vrot.slane %v10669_v32, %v9158_v11 }
 0x27b   : > { %11904 = vst [vmem:[#allocation56_spill] sm:$0xff] %v10999_v3  ;;  %v6258_v29 = vsel %vm2159_vm3, %v6256_v17, %v6257_v31  ;;  %6562 = vrot.lane.b32.xlu1 %v6449_v2, %s8217_s26  ;;  %v11018_v17 = vcombine.low %v6988_v5, %v10979_v57  ;;  %2267 = vst.msk [vmem:[#allocation2 + $0x18] sm:$0xff] %vm2070_vm2, %v2251_v60  ;;  %v11029_v13 = vcombine.high %v10979_v57, %v10979_v57  ;;  %v11040_v12 = vpop.permute.xlu1 %4335 }
 0x27c   : > { %6284 = vrot.lane.b32.xlu0 %v6258_v29, %s8218_s8  ;;  %v6458_v37 = vrot.slane %v11905_v45, %v9158_v11  ;;  %v6465_v5 = vrot.slane %v6451_v9, %v9158_v11  ;;  %v6990_v29 = vcombine.high %v11906_v35, %v11906_v35  ;;  %v11038_v60 = vrot.slane %v11906_v35, %v9158_v11 }
 0x27d   : > { %11907 = vst [vmem:[#allocation35_spill] sm:$0xff] %v11040_v12  ;;  %v6259_v45 = vrot.slane %v6224_v55, 1  ;;  %v11044_v32 = vcombine.high %v11003_v52, %v11003_v52  ;;  %v5915_v7 = vcombine.high %v10261_v51, %v10261_v51  ;;  %v11050_v9 = vrot.slane %v10261_v51, %v9158_v11  ;;  %v11062_v46 = vpop.permute.xlu0 %4333 }
 0x27e   : > { %v2282_v2 = vld [vmem:[#allocation2 + $0x10] sm:$0xff]  ;;  %v6466_v8 = vcombine.low %v6458_v37, %v6465_v5  ;;  %v11054_v35 = vcombine.high %v11038_v60, %v11038_v60  ;;  %v7055_v55 = vcombine.low %v11029_v13, %v11038_v60  ;;  %v11908_v4 = vcombine.low %v10738_v47, %v10722_v18 }
 0x27f   : > { %v2618_v16 = vadd.f32 %v10769_v19, %v2282_v2  ;;  %v6260_v51 = vsel %vm2159_vm3, %v6257_v31, %v6259_v45  ;;  %v11067_v37 = vrot.slane %v6990_v29, %v9158_v11  ;;  %v11071_v5 = vcombine.high %v11050_v9, %v11050_v9  ;;  %v11084_v19 = vpop.permute.xlu1 %4665 }
 0x280   : > { %v6069_v28 = vrot.slane %v11908_v4, %v9158_v11  ;;  %v4395_v59 = vld [vmem:[#allocation2] sm:$0xff]  ;;  %v11074_v12 = vcombine.low %v5913_v48, %v11003_v52  ;;  %6564 = vrot.lane.b32.xlu0 %v6466_v8, %s8217_s26  ;;  %6286 = vrot.lane.b32.xlu1 %v6260_v51, %s8218_s8  ;;  %v11079_v18 = vrot.slane %v7055_v55, %v9158_v11  ;;  %v7118_v8 = vrot.slane %v10999_v3, 1 }
 0x281   : > { %v11082_v47 = vrot.slane %v5915_v7, %v9158_v11  ;;  %11909 = vst [vmem:[#allocation38_spill] sm:$0xff] %v11084_v19  ;;  %v4689_v31 = vadd.f32 %v10598_v14, %v4395_v59  ;;  %2634 = vst.msk [vmem:[#allocation2 + $0x10] sm:$0xff] %vm2070_vm2, %v2618_v16  ;;  %v6123_v48 = vcombine.low %v11044_v32, %v11050_v9 }
 0x282   : > { %v2283_v2 = vld [vmem:[#allocation2 + $0x18] sm:$0xff]  ;;  %v11910_v29 = vrot.slane %v10741_v61, %v9158_v11  ;;  %v11912_v14 = vcombine.low %v10758_v0, %v10754_v34  ;;  %v6468_v16 = vcombine.low %v10754_v34, %v10782_v40  ;;  %v11913_v45 = vcombine.low %v10731_v38, %v10758_v0 }
 0x283   : > { %4703 = vst.msk [vmem:[#allocation2] sm:$0xff] %vm2070_vm2, %v4689_v31  ;;  %v2619_v51 = vadd.f32 %v10897_v36, %v2283_v2  ;;  %v6139_v61 = vcombine.low %v11071_v5, %v11082_v47  ;;  %v11127_v36 = vcombine.high %v11082_v47, %v11082_v47  ;;  %v11129_v31 = vpop.permute.xlu1 %4661  ;;  %v11131_v2 = vpop.permute.xlu0 %4337 }
 0x284   : > { %v11096_v7 = vcombine.low %v11910_v29, %v6069_v28  ;;  %v6086_v59 = vrot.slane %v11912_v14, %v9158_v11  ;;  %v6475_v55 = vrot.slane %v11913_v45, %v9158_v11  ;;  %v11114_v28 = vcombine.high %v11067_v37, %v11067_v37  ;;  %v11914_v29 = vld [vmem:[#allocation58_spill] sm:$0xff]  ;;  %11916 = vst [vmem:[#allocation39_spill] sm:$0xff] %v11129_v31  ;;  %v11921_v31 = vld [vmem:[#allocation44_spill] sm:$0xff] }
 0x285   : > { %v11118_v14 = vrot.slane %v11914_v29, %v9158_v11  ;;  %v6482_v0 = vrot.slane %v6468_v16, %v9158_v11  ;;  %11917 = vst [vmem:[#allocation57_spill] sm:$0xff] %v11131_v2  ;;  %2635 = vst.msk [vmem:[#allocation2 + $0x18] sm:$0xff] %vm2070_vm2, %v2619_v51  ;;  %v6231_v16 = vrot.slane %v10782_v40, %v9158_v11 }
 0x286   : > { %11911 = vst [vmem:[#allocation26_spill] sm:$0xff] %v11096_v7  ;;  %v11121_v34 = vcombine.low %v10840_v39, %v6086_v59  ;;  %v6261_v38 = vrot.slane %v11096_v7, 1  ;;  %v11140_v59 = vrot.slane %v10283_v54, %v9158_v11  ;;  %v11918_v51 = vcombine.low %v10900_v21, %v10939_v24 }
 0x287   : > { %v7072_v39 = vcombine.low %v11114_v28, %v11118_v14  ;;  %v6483_v4 = vcombine.low %v6475_v55, %v6482_v0  ;;  %v11919_v45 = vcombine.low %v10821_v10, %v10819_v56  ;;  %v6137_v7 = vrot.slane %v6123_v48, %v9158_v11 }
 0x288   : > { %11915 = vst [vmem:[#allocation34_spill] sm:$0xff] %v11121_v34  ;;  %v6262_v29 = vrot.slane %v11121_v34, 1  ;;  %v7052_v3 = vrot.slane %v11918_v51, %v9158_v11  ;;  %v11156_v54 = vcombine.high %v11118_v14, %v11118_v14  ;;  %v6140_v55 = vcombine.low %v11127_v36, %v11140_v59  ;;  %v3935_v0 = vld [vmem:[#allocation2 + $0x10] sm:$0xff] }
 0x289   : > { %v6492_v19 = vrot.slane %v11919_v45, %v9158_v11  ;;  %v7086_v40 = vrot.slane %v7072_v39, %v9158_v11  ;;  %6566 = vrot.lane.b32.xlu1 %v6483_v4, %s8217_s26  ;;  %v6264_v51 = vrot.slane %v6231_v16, 1  ;;  %v11920_v10 = vcombine.low %v10846_v27, %v10814_v42  ;;  %v11170_v45 = vpop.permute.xlu1 %4339  ;;  %v11172_v39 = vpop.permute.xlu0 %4663 }
 0x28a   : > { %v6263_v34 = vsel %vm2159_vm3, %v6261_v38, %v6262_v29  ;;  %v11164_v56 = vcombine.low %v10992_v58, %v7052_v3  ;;  %v4201_v2 = vadd.f32 %v11921_v31, %v3935_v0  ;;  %v11178_v4 = vcombine.high %v11140_v59, %v11140_v59 }
 0x28b   : > { %v6499_v48 = vrot.slane %v11920_v10, %v9158_v11  ;;  %6288 = vrot.lane.b32.xlu0 %v6263_v34, %s8218_s8  ;;  %v6154_v58 = vrot.slane %v6140_v55, %v9158_v11  ;;  %v11922_v3 = vrot.slane %v10976_v62, %v9158_v11  ;;  %v6265_v42 = vsel %vm2159_vm3, %v6262_v29, %v6264_v51 }
 0x28c   : > { %v7119_v27 = vrot.slane %v11164_v56, 1  ;;  %v11923_v31 = vcombine.low %v10827_v41, %v10862_v1  ;;  %4215 = vst.msk [vmem:[#allocation2 + $0x10] sm:$0xff] %vm2070_vm2, %v4201_v2  ;;  %v6266_v0 = vrot.slane %v10914_v50, 1  ;;  %v6501_v55 = vcombine.low %v10831_v6, %v10827_v41 }
 0x28d   : > { %v7121_v38 = vrot.slane %v11922_v3, 1  ;;  %v6500_v16 = vcombine.low %v6492_v19, %v6499_v48  ;;  %v11924_v10 = vcombine.low %v10862_v1, %v10989_v43  ;;  %v11925_v19 = vrot.slane %v10989_v43, %v9158_v11  ;;  %v3936_v48 = vld [vmem:[#allocation2 + $0x18] sm:$0xff]  ;;  %6290 = vrot.lane.b32.xlu1 %v6265_v42, %s8218_s8  ;;  %v11207_v41 = vpop.permute.xlu1 %4343  ;;  %v11209_v6 = vpop.permute.xlu0 %4341 }
 0x28e   : > { %v6120_v34 = vrot.slane %v11923_v31, %v9158_v11  ;;  %v7120_v3 = vsel %vm2159_vm3, %v7118_v8, %v7119_v27  ;;  %v7062_v1 = vrot.slane %v11018_v17, %v9158_v11  ;;  %v6509_v42 = vrot.slane %v6501_v55, %v9158_v11 }
 0x28f   : > { %v6516_v29 = vrot.slane %v11924_v10, %v9158_v11  ;;  %v6269_v51 = vrot.slane %v11925_v19, 1  ;;  %v7122_v2 = vsel %vm2159_vm3, %v7119_v27, %v7121_v38  ;;  %v11926_v10 = vld [vmem:[#allocation36_spill] sm:$0xff]  ;;  %7128 = vrot.lane.b32.xlu0 %v7120_v3, %s8218_s8  ;;  %v11927_v8 = vcombine.low %v11054_v35, %v11067_v37 }
 0x290   : > { %v11205_v31 = vcombine.low %v10917_v49, %v6120_v34  ;;  %v4202_v43 = vadd.f32 %v11926_v10, %v3936_v48  ;;  %v6130_v49 = vrot.slane %v11074_v12, %v9158_v11  ;;  %v11224_v34 = vcombine.low %v7062_v1, %v11079_v18 }
 0x291   : > { %v7079_v38 = vrot.slane %v11927_v8, %v9158_v11  ;;  %v6147_v17 = vrot.slane %v6139_v61, %v9158_v11  ;;  %v7117_v19 = vrot.slane %v11156_v54, %v9158_v11  ;;  %v6517_v55 = vcombine.low %v6509_v42, %v6516_v29  ;;  %7130 = vrot.lane.b32.xlu1 %v7122_v2, %s8218_s8  ;;  %v2091_v61 = vld [vmem:[#allocation2 + $0x20] sm:$0xff]  ;;  %v2209_v1 = vpop.permute.xlu0 %2208  ;;  %v11241_v8 = vpop.permute.xlu1 %2578  ;;  %v2092_v42 = vld [vmem:[#allocation2 + $0x28] sm:$0xff] }
 0x292   : > { %v6267_v27 = vrot.slane %v11205_v31, 1  ;;  %4216 = vst.msk [vmem:[#allocation2 + $0x18] sm:$0xff] %vm2070_vm2, %v4202_v43  ;;  %v11232_v3 = vcombine.low %v6130_v49, %v6137_v7  ;;  %v6518_v12 = vcombine.low %v11003_v52, %v11044_v32  ;;  %v7187_v10 = vcombine.low %v11038_v60, %v11054_v35 }
 0x293   : > { %v11230_v48 = vcombine.low %v7079_v38, %v7086_v40  ;;  %v7204_v18 = vcombine.low %v11118_v14, %v11156_v54  ;;  %v11243_v29 = vcombine.low %v6147_v17, %v6154_v58  ;;  %v6536_v7 = vcombine.low %v11140_v59, %v11178_v4  ;;  %6568 = vrot.lane.b32.xlu0 %v6500_v16, %s8217_s26 }
 0x294   : > { %v6268_v52 = vsel %vm2159_vm3, %v6266_v0, %v6267_v27  ;;  %v6270_v60 = vsel %vm2159_vm3, %v6267_v27, %v6269_v51  ;;  %v2252_v32 = vadd.f32 %v2209_v1, %v2091_v61  ;;  %v7123_v35 = vrot.slane %v11224_v34, 1 }
 0x295   : > { %v7124_v14 = vrot.slane %v11230_v48, 1  ;;  %v11253_v54 = vrot.slane %v6518_v12, %v9158_v11  ;;  %v11928_v40 = vcombine.low %v11050_v9, %v11071_v5  ;;  %v6271_v59 = vrot.slane %v11232_v3, 1  ;;  %6570 = vrot.lane.b32.xlu1 %v6517_v55, %s8217_s26  ;;  %v11277_v5 = vpop.permute.xlu0 %4667  ;;  %v2211_v38 = vpop.permute.xlu1 %2210  ;;  %v4229_v55 = vld [vmem:[#allocation2 + $0x10] sm:$0xff] }
 0x296   : > { %2268 = vst.msk [vmem:[#allocation2 + $0x20] sm:$0xff] %vm2070_vm2, %v2252_v32  ;;  %v7126_v16 = vrot.slane %v7117_v19, 1  ;;  %v11929_v0 = vcombine.low %v10895_v30, %v10893_v25  ;;  %v11930_v2 = vcombine.low %v10921_v44, %v10885_v26  ;;  %v6272_v9 = vrot.slane %v11243_v29, 1  ;;  %v5940_v19 = vld [vmem:[#allocation2] sm:$0xff] }
 0x297   : > { %v11259_v58 = vrot.slane %v11928_v40, %v9158_v11  ;;  %v6245_v25 = vrot.slane %v11178_v4, %v9158_v11  ;;  %v6535_v30 = vcombine.low %v11082_v47, %v11127_v36  ;;  %6292 = vrot.lane.b32.xlu0 %v6268_v52, %s8218_s8  ;;  %v2253_v26 = vadd.f32 %v2211_v38, %v2092_v42  ;;  %v4228_v36 = vld [vmem:[#allocation2 + $0x8] sm:$0xff] }
 0x298   : > { %v11267_v51 = vrot.slane %v11929_v0, %v9158_v11  ;;  %v11273_v43 = vrot.slane %v11930_v2, %v9158_v11  ;;  %v6550_v27 = vrot.slane %v6536_v7, %v9158_v11  ;;  %v7186_v17 = vcombine.low %v10979_v57, %v11029_v13 }
 0x299   : > { %v6534_v49 = vcombine.low %v11253_v54, %v11259_v58  ;;  %v7125_v12 = vsel %vm2159_vm3, %v7123_v35, %v7124_v14  ;;  %v6543_v4 = vrot.slane %v6535_v30, %v9158_v11  ;;  %v11294_v61 = vrot.slane %v7187_v10, %v9158_v11  ;;  %v4230_v1 = vld [vmem:[#allocation2 + $0x18] sm:$0xff]  ;;  %2269 = vst.msk [vmem:[#allocation2 + $0x28] sm:$0xff] %vm2070_vm2, %v2253_v26 }
 0x29a   : > { %v7168_v44 = vcombine.low %v11267_v51, %v11273_v43  ;;  %v7169_v47 = vcombine.low %v10907_v33, %v10900_v21  ;;  %v7194_v7 = vrot.slane %v7186_v17, %v9158_v11  ;;  %v11931_v57 = vcombine.low %v10939_v24, %v10976_v62  ;;  %6294 = vrot.lane.b32.xlu1 %v6270_v60, %s8218_s8  ;;  %v11310_v21 = vpop.permute.xlu1 %4669  ;;  %v11312_v33 = vpop.permute.xlu0 %2580  ;;  %v11932_v26 = vld [vmem:[#allocation51_spill] sm:$0xff] }
 0x29b   : > { %v7203_v52 = vcombine.low %v11067_v37, %v11114_v28  ;;  %v11307_v10 = vrot.slane %v7204_v18, %v9158_v11  ;;  %v6551_v32 = vcombine.low %v6543_v4, %v6550_v27  ;;  %v6168_v54 = vadd.f32 %v10519_v63, %v5940_v19  ;;  %7132 = vrot.lane.b32.xlu0 %v7125_v12, %s8218_s8  ;;  %v11934_v12 = vld [vmem:[#allocation30_spill] sm:$0xff]  ;;  %v2094_v43 = vld [vmem:[#allocation2 + $0x38] sm:$0xff] }
 0x29c   : > { %v7184_v13 = vrot.slane %v11931_v57, %v9158_v11  ;;  %v7177_v35 = vrot.slane %v7169_v47, %v9158_v11  ;;  %v4369_v24 = vadd.f32 %v10866_v22, %v4229_v55  ;;  %v7202_v62 = vcombine.low %v7194_v7, %v11294_v61  ;;  %v2093_v4 = vld [vmem:[#allocation2 + $0x30] sm:$0xff] }
 0x29d   : > { %v7211_v37 = vrot.slane %v7203_v52, %v9158_v11  ;;  %v4368_v28 = vadd.f32 %v10686_v53, %v4228_v36  ;;  %v4370_v18 = vadd.f32 %v10786_v20, %v4230_v1  ;;  %v2284_v60 = vld [vmem:[#allocation2 + $0x20] sm:$0xff]  ;;  %6180 = vst.msk [vmem:[#allocation2] sm:$0xff] %vm2070_vm2, %v6168_v54  ;;  %v7127_v22 = vsel %vm2159_vm3, %v7124_v14, %v7126_v16 }
 0x29e   : > { %v7185_v40 = vcombine.low %v7177_v35, %v7184_v13  ;;  %4383 = vst.msk [vmem:[#allocation2 + $0x10] sm:$0xff] %vm2070_vm2, %v4369_v24  ;;  %v2620_v63 = vadd.f32 %v11014_v23, %v2284_v60  ;;  %v6274_v58 = vrot.slane %v6245_v25, 1  ;;  %v6273_v11 = vsel %vm2159_vm3, %v6271_v59, %v6272_v9  ;;  %7134 = vrot.lane.b32.xlu1 %v7127_v22, %s8218_s8  ;;  %v11331_v53 = vpop.permute.xlu1 %4809  ;;  %v11333_v20 = vpop.permute.xlu0 %4807  ;;  %v11935_v36 = vld [vmem:[#allocation28_spill] sm:$0xff]  ;;  %v11936_v13 = vld [vmem:[#allocation31_spill] sm:$0xff] }
 0x29f   : > { %v7219_v0 = vcombine.low %v7211_v37, %v11307_v10  ;;  %4382 = vst.msk [vmem:[#allocation2 + $0x8] sm:$0xff] %vm2070_vm2, %v4368_v28  ;;  %4384 = vst.msk [vmem:[#allocation2 + $0x18] sm:$0xff] %vm2070_vm2, %v4370_v18  ;;  %6296 = vrot.lane.b32.xlu0 %v6273_v11, %s8218_s8  ;;  %v11937_v54 = vld [vmem:[#allocation52_spill] sm:$0xff]  ;;  %v11938_v37 = vld [vmem:[#allocation43_spill] sm:$0xff] }
 0x2a0   : > { %2636 = vst.msk [vmem:[#allocation2 + $0x20] sm:$0xff] %vm2070_vm2, %v2620_v63  ;;  %v2285_v23 = vld [vmem:[#allocation2 + $0x28] sm:$0xff]  ;;  %v6275_v16 = vsel %vm2159_vm3, %v6272_v9, %v6274_v58  ;;  %v2095_v60 = vld [vmem:[#allocation2 + $0x40] sm:$0xff] }
 0x2a1   : > { %v2621_v14 = vadd.f32 %v11241_v8, %v2285_v23  ;;  %v11933_v8 = vld [vmem:[#allocation29_spill] sm:$0xff]  ;;  %v11939_v23 = vld [vmem:[#allocation35_spill] sm:$0xff] }
 0x2a2   : > { %6298 = vrot.lane.b32.xlu1 %v6275_v16, %s8218_s8  ;;  %v11340_v2 = vpop.permute.xlu1 %4351  ;;  %v11342_v59 = vpop.permute.xlu0 %4345  ;;  %v2096_v16 = vld [vmem:[#allocation2 + $0x48] sm:$0xff] }
 0x2a3   : > { %2637 = vst.msk [vmem:[#allocation2 + $0x28] sm:$0xff] %vm2070_vm2, %v2621_v14  ;;  %6572 = vrot.lane.b32.xlu0 %v6534_v49, %s8217_s26 }
 0x2a5   : > { %v4397_v42 = vld [vmem:[#allocation2 + $0x10] sm:$0xff] }
 0x2a6   : > { %v4691_v38 = vadd.f32 %v10554_v15, %v4397_v42  ;;  %v4396_v25 = vld [vmem:[#allocation2 + $0x8] sm:$0xff]  ;;  %v4398_v30 = vld [vmem:[#allocation2 + $0x18] sm:$0xff]  ;;  %6574 = vrot.lane.b32.xlu1 %v6551_v32, %s8217_s26  ;;  %v11350_v19 = vpop.permute.xlu1 %4347  ;;  %v11352_v55 = vpop.permute.xlu0 %4349 }
 0x2a7   : > { %v4690_v27 = vadd.f32 %v11932_v26, %v4396_v25  ;;  %v4692_v17 = vadd.f32 %v11933_v8, %v4398_v30  ;;  %v3937_v9 = vld [vmem:[#allocation2 + $0x20] sm:$0xff]  ;;  %7220 = vrot.lane.b32.xlu0 %v7168_v44, %s8217_s26  ;;  %v2097_v26 = vld [vmem:[#allocation2 + $0x50] sm:$0xff] }
 0x2a8   : > { %4705 = vst.msk [vmem:[#allocation2 + $0x10] sm:$0xff] %vm2070_vm2, %v4691_v38  ;;  %v4203_v49 = vadd.f32 %v11934_v12, %v3937_v9  ;;  %v11940_v9 = vld [vmem:[#allocation41_spill] sm:$0xff] }
 0x2a9   : > { %4704 = vst.msk [vmem:[#allocation2 + $0x8] sm:$0xff] %vm2070_vm2, %v4690_v27  ;;  %4706 = vst.msk [vmem:[#allocation2 + $0x18] sm:$0xff] %vm2070_vm2, %v4692_v17 }
 0x2aa   : > { %4217 = vst.msk [vmem:[#allocation2 + $0x20] sm:$0xff] %vm2070_vm2, %v4203_v49  ;;  %v3938_v15 = vld [vmem:[#allocation2 + $0x28] sm:$0xff]  ;;  %7222 = vrot.lane.b32.xlu1 %v7185_v40, %s8217_s26  ;;  %v2213_v61 = vpop.permute.xlu0 %2212  ;;  %v2583_v47 = vpop.permute.xlu1 %2582 }
 0x2ab   : > { %v4204_v1 = vadd.f32 %v11935_v36, %v3938_v15  ;;  %7224 = vrot.lane.b32.xlu0 %v7202_v62, %s8217_s26  ;;  %v2254_v7 = vadd.f32 %v2213_v61, %v2093_v4  ;;  %v2098_v61 = vld [vmem:[#allocation2 + $0x58] sm:$0xff] }
 0x2ad   : > { %4218 = vst.msk [vmem:[#allocation2 + $0x28] sm:$0xff] %vm2070_vm2, %v4204_v1  ;;  %2270 = vst.msk [vmem:[#allocation2 + $0x30] sm:$0xff] %vm2070_vm2, %v2254_v7  ;;  %v11941_v7 = vld [vmem:[#allocation27_spill] sm:$0xff] }
 0x2ae   : > { %7226 = vrot.lane.b32.xlu1 %v7219_v0, %s8217_s26  ;;  %v2215_v44 = vpop.permute.xlu1 %2214  ;;  %v2585_v57 = vpop.permute.xlu0 %2584 }
 0x2af   : > { %v5942_v51 = vld [vmem:[#allocation2 + $0x10] sm:$0xff]  ;;  %v2255_v35 = vadd.f32 %v2215_v44, %v2094_v43  ;;  %v11942_v44 = vld [vmem:[#allocation53_spill] sm:$0xff] }
 0x2b0   : > { %v6170_v52 = vadd.f32 %v11936_v13, %v5942_v51  ;;  %v5941_v10 = vld [vmem:[#allocation2 + $0x8] sm:$0xff]  ;;  %v5943_v32 = vld [vmem:[#allocation2 + $0x18] sm:$0xff] }
 0x2b1   : > { %v6169_v24 = vadd.f32 %v11937_v54, %v5941_v10  ;;  %v6171_v62 = vadd.f32 %v11938_v37, %v5943_v32  ;;  %v4231_v28 = vld [vmem:[#allocation2 + $0x20] sm:$0xff]  ;;  %2271 = vst.msk [vmem:[#allocation2 + $0x38] sm:$0xff] %vm2070_vm2, %v2255_v35 }
 0x2b2   : > { %6182 = vst.msk [vmem:[#allocation2 + $0x10] sm:$0xff] %vm2070_vm2, %v6170_v52  ;;  %v4371_v18 = vadd.f32 %v11062_v46, %v4231_v28  ;;  %v2217_v40 = vpop.permute.xlu0 %2216  ;;  %v2587_v63 = vpop.permute.xlu1 %2586  ;;  %v2099_v32 = vld [vmem:[#allocation2 + $0x60] sm:$0xff] }
 0x2b3   : > { %6181 = vst.msk [vmem:[#allocation2 + $0x8] sm:$0xff] %vm2070_vm2, %v6169_v24  ;;  %6183 = vst.msk [vmem:[#allocation2 + $0x18] sm:$0xff] %vm2070_vm2, %v6171_v62  ;;  %v2256_v22 = vadd.f32 %v2217_v40, %v2095_v60  ;;  %v11943_v24 = vld [vmem:[#allocation33_spill] sm:$0xff]  ;;  %v11944_v40 = vld [vmem:[#allocation47_spill] sm:$0xff] }
 0x2b4   : > { %4385 = vst.msk [vmem:[#allocation2 + $0x20] sm:$0xff] %vm2070_vm2, %v4371_v18  ;;  %v2286_v58 = vld [vmem:[#allocation2 + $0x30] sm:$0xff]  ;;  %v4232_v0 = vld [vmem:[#allocation2 + $0x28] sm:$0xff] }
 0x2b5   : > { %v2622_v11 = vadd.f32 %v11312_v33, %v2286_v58  ;;  %2272 = vst.msk [vmem:[#allocation2 + $0x40] sm:$0xff] %vm2070_vm2, %v2256_v22  ;;  %v4372_v14 = vadd.f32 %v11939_v23, %v4232_v0  ;;  %v2100_v58 = vld [vmem:[#allocation2 + $0x68] sm:$0xff] }
 0x2b6   : > { %v2219_v42 = vpop.permute.xlu1 %2218  ;;  %v2589_v38 = vpop.permute.xlu0 %2588  ;;  %v11945_v23 = vld [vmem:[#allocation49_spill] sm:$0xff] }
 0x2b7   : > { %2638 = vst.msk [vmem:[#allocation2 + $0x30] sm:$0xff] %vm2070_vm2, %v2622_v11  ;;  %v2257_v46 = vadd.f32 %v2219_v42, %v2096_v16  ;;  %4386 = vst.msk [vmem:[#allocation2 + $0x28] sm:$0xff] %vm2070_vm2, %v4372_v14 }
 0x2b8   : > { %v2287_v25 = vld [vmem:[#allocation2 + $0x38] sm:$0xff] }
 0x2b9   : > { %v2623_v30 = vadd.f32 %v2583_v47, %v2287_v25  ;;  %2273 = vst.msk [vmem:[#allocation2 + $0x48] sm:$0xff] %vm2070_vm2, %v2257_v46 }
 0x2ba   : > { %v2221_v27 = vpop.permute.xlu0 %2220  ;;  %v2591_v8 = vpop.permute.xlu1 %2590 }
 0x2bb   : > { %v4399_v33 = vld [vmem:[#allocation2 + $0x20] sm:$0xff]  ;;  %2639 = vst.msk [vmem:[#allocation2 + $0x38] sm:$0xff] %vm2070_vm2, %v2623_v30  ;;  %v2258_v17 = vadd.f32 %v2221_v27, %v2097_v26 }
 0x2bc   : > { %v4693_v12 = vadd.f32 %v11940_v9, %v4399_v33  ;;  %v2288_v49 = vld [vmem:[#allocation2 + $0x40] sm:$0xff]  ;;  %v2101_v9 = vld [vmem:[#allocation2 + $0x70] sm:$0xff] }
 0x2bd   : > { %v2624_v15 = vadd.f32 %v2585_v57, %v2288_v49  ;;  %2274 = vst.msk [vmem:[#allocation2 + $0x50] sm:$0xff] %vm2070_vm2, %v2258_v17  ;;  %v11946_v30 = vld [vmem:[#allocation37_spill] sm:$0xff] }
 0x2be   : > { %4707 = vst.msk [vmem:[#allocation2 + $0x20] sm:$0xff] %vm2070_vm2, %v4693_v12  ;;  %v3939_v4 = vld [vmem:[#allocation2 + $0x30] sm:$0xff]  ;;  %v2223_v47 = vpop.permute.xlu1 %2222  ;;  %v2593_v36 = vpop.permute.xlu0 %2592  ;;  %v4400_v1 = vld [vmem:[#allocation2 + $0x28] sm:$0xff] }
 0x2bf   : > { %v4205_v51 = vadd.f32 %v11941_v7, %v3939_v4  ;;  %2640 = vst.msk [vmem:[#allocation2 + $0x40] sm:$0xff] %vm2070_vm2, %v2624_v15  ;;  %v2259_v43 = vadd.f32 %v2223_v47, %v2098_v61  ;;  %v4694_v13 = vadd.f32 %v11942_v44, %v4400_v1  ;;  %v11947_v27 = vld [vmem:[#allocation57_spill] sm:$0xff]  ;;  %v11948_v15 = vld [vmem:[#allocation32_spill] sm:$0xff] }
 0x2c0   : > { %v2289_v52 = vld [vmem:[#allocation2 + $0x48] sm:$0xff]  ;;  %v2102_v44 = vld [vmem:[#allocation2 + $0x78] sm:$0xff] }
 0x2c1   : > { %4219 = vst.msk [vmem:[#allocation2 + $0x30] sm:$0xff] %vm2070_vm2, %v4205_v51  ;;  %v2625_v57 = vadd.f32 %v2587_v63, %v2289_v52  ;;  %2275 = vst.msk [vmem:[#allocation2 + $0x58] sm:$0xff] %vm2070_vm2, %v2259_v43  ;;  %v11949_v52 = vld [vmem:[#allocation46_spill] sm:$0xff] }
 0x2c2   : > { %4708 = vst.msk [vmem:[#allocation2 + $0x28] sm:$0xff] %vm2070_vm2, %v4694_v13  ;;  %v3940_v10 = vld [vmem:[#allocation2 + $0x38] sm:$0xff]  ;;  %v2225_v35 = vpop.permute.xlu0 %2224  ;;  %v2595_v54 = vpop.permute.xlu1 %2594 }
 0x2c3   : > { %v4206_v37 = vadd.f32 %v11943_v24, %v3940_v10  ;;  %2641 = vst.msk [vmem:[#allocation2 + $0x48] sm:$0xff] %vm2070_vm2, %v2625_v57  ;;  %v2260_v62 = vadd.f32 %v2225_v35, %v2099_v32 }
 0x2c4   : > { %v2290_v28 = vld [vmem:[#allocation2 + $0x50] sm:$0xff] }
 0x2c5   : > { %v5944_v18 = vld [vmem:[#allocation2 + $0x20] sm:$0xff]  ;;  %4220 = vst.msk [vmem:[#allocation2 + $0x38] sm:$0xff] %vm2070_vm2, %v4206_v37  ;;  %v2626_v60 = vadd.f32 %v2589_v38, %v2290_v28  ;;  %2276 = vst.msk [vmem:[#allocation2 + $0x60] sm:$0xff] %vm2070_vm2, %v2260_v62 }
 0x2c6   : > { %v6172_v63 = vadd.f32 %v11944_v40, %v5944_v18  ;;  %v3941_v22 = vld [vmem:[#allocation2 + $0x40] sm:$0xff]  ;;  %v2227_v0 = vpop.permute.xlu1 %2226  ;;  %v2597_v11 = vpop.permute.xlu0 %2596  ;;  %v11950_v18 = vld [vmem:[#allocation55_spill] sm:$0xff] }
 0x2c7   : > { %v4207_v14 = vadd.f32 %v11945_v23, %v3941_v22  ;;  %2642 = vst.msk [vmem:[#allocation2 + $0x50] sm:$0xff] %vm2070_vm2, %v2626_v60  ;;  %v2261_v16 = vadd.f32 %v2227_v0, %v2100_v58  ;;  %v11951_v40 = vld [vmem:[#allocation48_spill] sm:$0xff] }
 0x2c8   : > { %6184 = vst.msk [vmem:[#allocation2 + $0x20] sm:$0xff] %vm2070_vm2, %v6172_v63  ;;  %v2291_v42 = vld [vmem:[#allocation2 + $0x58] sm:$0xff]  ;;  %v4233_v25 = vld [vmem:[#allocation2 + $0x30] sm:$0xff]  ;;  %v6192_v23 = vld [vmem:[#allocation2] sm:$0xff] }
 0x2c9   : > { %v5945_v46 = vld [vmem:[#allocation2 + $0x28] sm:$0xff]  ;;  %4221 = vst.msk [vmem:[#allocation2 + $0x40] sm:$0xff] %vm2070_vm2, %v4207_v14  ;;  %v2627_v38 = vadd.f32 %v2591_v8, %v2291_v42  ;;  %2277 = vst.msk [vmem:[#allocation2 + $0x68] sm:$0xff] %vm2070_vm2, %v2261_v16  ;;  %v4373_v33 = vadd.f32 %v11947_v27, %v4233_v25 }
 0x2ca   : > { %v6173_v26 = vadd.f32 %v11946_v30, %v5945_v46  ;;  %v3942_v17 = vld [vmem:[#allocation2 + $0x48] sm:$0xff]  ;;  %v2229_v12 = vpop.permute.xlu0 %2228  ;;  %v2599_v49 = vpop.permute.xlu1 %2598  ;;  %v11953_v30 = vld [vmem:[#allocation39_spill] sm:$0xff] }
 0x2cb   : > { %v4208_v4 = vadd.f32 %v11948_v15, %v3942_v17  ;;  %2643 = vst.msk [vmem:[#allocation2 + $0x58] sm:$0xff] %vm2070_vm2, %v2627_v38  ;;  %v2262_v61 = vadd.f32 %v2229_v12, %v2101_v9  ;;  %4387 = vst.msk [vmem:[#allocation2 + $0x30] sm:$0xff] %vm2070_vm2, %v4373_v33  ;;  %v11952_v46 = vld [vmem:[#allocation50_spill] sm:$0xff] }
 0x2cc   : > { %6185 = vst.msk [vmem:[#allocation2 + $0x28] sm:$0xff] %vm2070_vm2, %v6173_v26  ;;  %v2292_v8 = vld [vmem:[#allocation2 + $0x60] sm:$0xff]  ;;  %v4234_v47 = vld [vmem:[#allocation2 + $0x38] sm:$0xff]  ;;  %v6194_v33 = vld [vmem:[#allocation2 + $0x10] sm:$0xff] }
 0x2cd   : > { %4222 = vst.msk [vmem:[#allocation2 + $0x48] sm:$0xff] %vm2070_vm2, %v4208_v4  ;;  %v2628_v1 = vadd.f32 %v2593_v36, %v2292_v8  ;;  %2278 = vst.msk [vmem:[#allocation2 + $0x70] sm:$0xff] %vm2070_vm2, %v2262_v61  ;;  %v4374_v7 = vadd.f32 %v11170_v45, %v4234_v47  ;;  %v6193_v15 = vld [vmem:[#allocation2 + $0x8] sm:$0xff] }
 0x2ce   : > { %v3943_v51 = vld [vmem:[#allocation2 + $0x50] sm:$0xff]  ;;  %v11413_v43 = vpop.permute.xlu0 %4671  ;;  %v2231_v13 = vpop.permute.xlu1 %2230 }
 0x2cf   : > { %v4209_v57 = vadd.f32 %v11949_v52, %v3943_v51  ;;  %2644 = vst.msk [vmem:[#allocation2 + $0x60] sm:$0xff] %vm2070_vm2, %v2628_v1  ;;  %v2263_v10 = vadd.f32 %v2231_v13, %v2102_v44  ;;  %4388 = vst.msk [vmem:[#allocation2 + $0x38] sm:$0xff] %vm2070_vm2, %v4374_v7  ;;  %v11954_v8 = vld [vmem:[#allocation54_spill] sm:$0xff] }
 0x2d0   : > { %v2293_v32 = vld [vmem:[#allocation2 + $0x68] sm:$0xff]  ;;  %v4235_v35 = vld [vmem:[#allocation2 + $0x40] sm:$0xff] }
 0x2d1   : > { %4223 = vst.msk [vmem:[#allocation2 + $0x50] sm:$0xff] %vm2070_vm2, %v4209_v57  ;;  %v2629_v36 = vadd.f32 %v2595_v54, %v2293_v32  ;;  %2279 = vst.msk [vmem:[#allocation2 + $0x78] sm:$0xff] %vm2070_vm2, %v2263_v10  ;;  %v4375_v45 = vadd.f32 %v11209_v6, %v4235_v35  ;;  %v6195_v32 = vld [vmem:[#allocation2 + $0x18] sm:$0xff] }
 0x2d2   : > { %v3944_v24 = vld [vmem:[#allocation2 + $0x58] sm:$0xff]  ;;  %v11421_v37 = vpop.permute.xlu0 %4825  ;;  %v11423_v62 = vpop.permute.xlu1 %4673  ;;  %v4401_v28 = vld [vmem:[#allocation2 + $0x30] sm:$0xff] }
 0x2d3   : > { %v4210_v60 = vadd.f32 %v11950_v18, %v3944_v24  ;;  %2645 = vst.msk [vmem:[#allocation2 + $0x68] sm:$0xff] %vm2070_vm2, %v2629_v36  ;;  %v4695_v63 = vadd.f32 %v11951_v40, %v4401_v28  ;;  %4389 = vst.msk [vmem:[#allocation2 + $0x40] sm:$0xff] %vm2070_vm2, %v4375_v45  ;;  %v11956_v36 = vld [vmem:[#allocation40_spill] sm:$0xff]  ;;  %v11957_v28 = vld [vmem:[#allocation38_spill] sm:$0xff] }
 0x2d4   : > { %v2294_v22 = vld [vmem:[#allocation2 + $0x70] sm:$0xff]  ;;  %v4236_v54 = vld [vmem:[#allocation2 + $0x48] sm:$0xff] }
 0x2d5   : > { %4224 = vst.msk [vmem:[#allocation2 + $0x58] sm:$0xff] %vm2070_vm2, %v4210_v60  ;;  %v2630_v58 = vadd.f32 %v2597_v11, %v2294_v22  ;;  %4709 = vst.msk [vmem:[#allocation2 + $0x30] sm:$0xff] %vm2070_vm2, %v4695_v63  ;;  %v4376_v6 = vadd.f32 %v11207_v41, %v4236_v54  ;;  %v11958_v54 = vld [vmem:[#allocation34_spill] sm:$0xff] }
 0x2d6   : > { %v3945_v0 = vld [vmem:[#allocation2 + $0x60] sm:$0xff]  ;;  %v6277_v14 = vpop.permute.xlu0 %6276  ;;  %v11432_v16 = vpop.permute.xlu1 %4827  ;;  %v4402_v42 = vld [vmem:[#allocation2 + $0x38] sm:$0xff] }
 0x2d7   : > { %2646 = vst.msk [vmem:[#allocation2 + $0x70] sm:$0xff] %vm2070_vm2, %v2630_v58  ;;  %v4211_v25 = vadd.f32 %v11952_v46, %v3945_v0  ;;  %v6312_v38 = vadd.f32 %v6277_v14, %v6192_v23  ;;  %v4696_v26 = vadd.f32 %v11953_v30, %v4402_v42  ;;  %4390 = vst.msk [vmem:[#allocation2 + $0x48] sm:$0xff] %vm2070_vm2, %v4376_v6  ;;  %v11959_v14 = vld [vmem:[#allocation42_spill] sm:$0xff] }
 0x2d8   : > { %v2295_v11 = vld [vmem:[#allocation2 + $0x78] sm:$0xff]  ;;  %v4237_v27 = vld [vmem:[#allocation2 + $0x50] sm:$0xff] }
 0x2d9   : > { %4225 = vst.msk [vmem:[#allocation2 + $0x60] sm:$0xff] %vm2070_vm2, %v4211_v25  ;;  %v2631_v41 = vadd.f32 %v2599_v49, %v2295_v11  ;;  %6324 = vst.msk [vmem:[#allocation2] sm:$0xff] %vm2070_vm2, %v6312_v38  ;;  %v4377_v17 = vadd.f32 %v11342_v59, %v4237_v27  ;;  %v11955_v59 = vld [vmem:[#allocation26_spill] sm:$0xff] }
 0x2da   : > { %4710 = vst.msk [vmem:[#allocation2 + $0x38] sm:$0xff] %vm2070_vm2, %v4696_v26  ;;  %v3946_v9 = vld [vmem:[#allocation2 + $0x68] sm:$0xff]  ;;  %v6281_v12 = vpop.permute.xlu0 %6280  ;;  %v6279_v4 = vpop.permute.xlu1 %6278  ;;  %v4403_v61 = vld [vmem:[#allocation2 + $0x40] sm:$0xff] }
 0x2db   : > { %2647 = vst.msk [vmem:[#allocation2 + $0x78] sm:$0xff] %vm2070_vm2, %v2631_v41  ;;  %v4212_v47 = vadd.f32 %v11954_v8, %v3946_v9  ;;  %v6314_v1 = vadd.f32 %v6281_v12, %v6194_v33  ;;  %v6313_v7 = vadd.f32 %v6279_v4, %v6193_v15  ;;  %v4697_v49 = vadd.f32 %v11172_v39, %v4403_v61  ;;  %v11474_v9 = vld [vmem:[#allocation9] ss:$0 sm:$0xff] }
 0x2dc   : > { %4391 = vst.msk [vmem:[#allocation2 + $0x50] sm:$0xff] %vm2070_vm2, %v4377_v17  ;;  %v5946_v51 = vld [vmem:[#allocation2 + $0x30] sm:$0xff]  ;;  %v4238_v44 = vld [vmem:[#allocation2 + $0x58] sm:$0xff] }
 0x2dd   : > { %4226 = vst.msk [vmem:[#allocation2 + $0x68] sm:$0xff] %vm2070_vm2, %v4212_v47  ;;  %6326 = vst.msk [vmem:[#allocation2 + $0x10] sm:$0xff] %vm2070_vm2, %v6314_v1  ;;  %v6174_v13 = vadd.f32 %v11955_v59, %v5946_v51  ;;  %v4378_v52 = vadd.f32 %v11350_v19, %v4238_v44  ;;  %v6196_v59 = vld [vmem:[#allocation2 + $0x20] sm:$0xff] }
 0x2de   : > { %6325 = vst.msk [vmem:[#allocation2 + $0x8] sm:$0xff] %vm2070_vm2, %v6313_v7  ;;  %4711 = vst.msk [vmem:[#allocation2 + $0x40] sm:$0xff] %vm2070_vm2, %v4697_v49  ;;  %v4791_v57 = vld [vmem:[#allocation2 + $0x70] sm:$0xff]  ;;  %v6553_v10 = vpop.permute.xlu0 %6552  ;;  %v6283_v39 = vpop.permute.xlu1 %6282  ;;  %v4404_v35 = vld [vmem:[#allocation2 + $0x48] sm:$0xff] }
 0x2df   : > { %v4793_v45 = vadd.f32 %v4791_v57, %v11956_v36  ;;  %v6315_v24 = vadd.f32 %v6283_v39, %v6195_v32  ;;  %6186 = vst.msk [vmem:[#allocation2 + $0x30] sm:$0xff] %vm2070_vm2, %v6174_v13  ;;  %v4698_v18 = vadd.f32 %v11957_v28, %v4404_v35  ;;  %4392 = vst.msk [vmem:[#allocation2 + $0x58] sm:$0xff] %vm2070_vm2, %v4378_v52 }
 0x2e0   : > { %v4239_v60 = vld [vmem:[#allocation2 + $0x60] sm:$0xff] }
 0x2e1   : > { %v6336_v40 = vld [vmem:[#allocation2] sm:$0xff]  ;;  %v5947_v63 = vld [vmem:[#allocation2 + $0x38] sm:$0xff]  ;;  %v4379_v22 = vadd.f32 %v11352_v55, %v4239_v60  ;;  %4795 = vst.msk [vmem:[#allocation2 + $0x70] sm:$0xff] %vm2070_vm2, %v4793_v45  ;;  %6327 = vst.msk [vmem:[#allocation2 + $0x18] sm:$0xff] %vm2070_vm2, %v6315_v24 }
 0x2e2   : > { %v6588_v19 = vadd.f32 %v6553_v10, %v6336_v40  ;;  %v6175_v58 = vadd.f32 %v11958_v54, %v5947_v63  ;;  %4712 = vst.msk [vmem:[#allocation2 + $0x48] sm:$0xff] %vm2070_vm2, %v4698_v18  ;;  %v4792_v6 = vld [vmem:[#allocation2 + $0x78] sm:$0xff]  ;;  %v6557_v0 = vpop.permute.xlu0 %6556  ;;  %v6197_v60 = vld [vmem:[#allocation2 + $0x28] sm:$0xff] }
 0x2e3   : > { %v4405_v23 = vld [vmem:[#allocation2 + $0x50] sm:$0xff]  ;;  %4393 = vst.msk [vmem:[#allocation2 + $0x60] sm:$0xff] %vm2070_vm2, %v4379_v22  ;;  %v4794_v42 = vadd.f32 %v4792_v6, %v11959_v14  ;;  %v6555_v30 = vpop.permute.xlu1 %6554  ;;  %v11960_v54 = vld [vmem:[#allocation56_spill] sm:$0xff] }
 0x2e4   : > { %6600 = vst.msk [vmem:[#allocation2] sm:$0xff] %vm2070_vm2, %v6588_v19  ;;  %6187 = vst.msk [vmem:[#allocation2 + $0x38] sm:$0xff] %vm2070_vm2, %v6175_v58  ;;  %v4699_v55 = vadd.f32 %v11277_v5, %v4405_v23  ;;  %v4240_v46 = vld [vmem:[#allocation2 + $0x68] sm:$0xff]  ;;  %v6338_v25 = vld [vmem:[#allocation2 + $0x10] sm:$0xff] }
 0x2e5   : > { %v6337_v38 = vld [vmem:[#allocation2 + $0x8] sm:$0xff]  ;;  %v4380_v26 = vadd.f32 %v11340_v2, %v4240_v46  ;;  %4796 = vst.msk [vmem:[#allocation2 + $0x78] sm:$0xff] %vm2070_vm2, %v4794_v42  ;;  %v6590_v11 = vadd.f32 %v6557_v0, %v6338_v25  ;;  %v5948_v41 = vld [vmem:[#allocation2 + $0x40] sm:$0xff] }
 0x2e6   : > { %v6589_v27 = vadd.f32 %v6555_v30, %v6337_v38  ;;  %4713 = vst.msk [vmem:[#allocation2 + $0x50] sm:$0xff] %vm2070_vm2, %v4699_v55  ;;  %v6176_v33 = vadd.f32 %v10914_v50, %v5948_v41  ;;  %v4406_v17 = vld [vmem:[#allocation2 + $0x58] sm:$0xff]  ;;  %v11476_v12 = vpop.permute.xlu0 %6560  ;;  %v6198_v38 = vld [vmem:[#allocation2 + $0x30] sm:$0xff] }
 0x2e7   : > { %4394 = vst.msk [vmem:[#allocation2 + $0x68] sm:$0xff] %vm2070_vm2, %v4380_v26  ;;  %6602 = vst.msk [vmem:[#allocation2 + $0x10] sm:$0xff] %vm2070_vm2, %v6590_v11  ;;  %v4700_v5 = vadd.f32 %v11310_v21, %v4406_v17 }
 0x2e8   : > { %6601 = vst.msk [vmem:[#allocation2 + $0x8] sm:$0xff] %vm2070_vm2, %v6589_v27  ;;  %v4797_v2 = vld [vmem:[#allocation2 + $0x70] sm:$0xff]  ;;  %6188 = vst.msk [vmem:[#allocation2 + $0x40] sm:$0xff] %vm2070_vm2, %v6176_v33  ;;  %v6339_v50 = vld [vmem:[#allocation2 + $0x18] sm:$0xff] }
 0x2e9   : > { %v5949_v15 = vld [vmem:[#allocation2 + $0x48] sm:$0xff]  ;;  %v4813_v4 = vadd.f32 %v11333_v20, %v4797_v2  ;;  %4714 = vst.msk [vmem:[#allocation2 + $0x58] sm:$0xff] %vm2070_vm2, %v4700_v5  ;;  %v6559_v7 = vpop.permute.xlu1 %6558 }
 0x2ea   : > { %v6177_v61 = vadd.f32 %v11205_v31, %v5949_v15  ;;  %v4407_v8 = vld [vmem:[#allocation2 + $0x60] sm:$0xff]  ;;  %v6591_v51 = vadd.f32 %v6559_v7, %v6339_v50 }
 0x2eb   : > { %v7240_v47 = vld [vmem:[#allocation2] sm:$0xff]  ;;  %v4701_v21 = vadd.f32 %v11413_v43, %v4407_v8  ;;  %4815 = vst.msk [vmem:[#allocation2 + $0x70] sm:$0xff] %vm2070_vm2, %v4813_v4 }
 0x2ec   : > { %v7263_v1 = vadd.f32 %v11474_v9, %v7240_v47  ;;  %6189 = vst.msk [vmem:[#allocation2 + $0x48] sm:$0xff] %vm2070_vm2, %v6177_v61  ;;  %v4798_v49 = vld [vmem:[#allocation2 + $0x78] sm:$0xff]  ;;  %6603 = vst.msk [vmem:[#allocation2 + $0x18] sm:$0xff] %vm2070_vm2, %v6591_v51 }
 0x2ed   : > { %v5950_v20 = vld [vmem:[#allocation2 + $0x50] sm:$0xff]  ;;  %4715 = vst.msk [vmem:[#allocation2 + $0x60] sm:$0xff] %vm2070_vm2, %v4701_v21  ;;  %v4814_v31 = vadd.f32 %v11331_v53, %v4798_v49  ;;  %v6563_v35 = vpop.permute.xlu1 %6562 }
 0x2ee   : > { %v7279_v44 = vmax.f32 %v7263_v1, 0.0  ;;  %v6178_v13 = vadd.f32 %v11232_v3, %v5950_v20  ;;  %v4408_v52 = vld [vmem:[#allocation2 + $0x68] sm:$0xff]  ;;  %v7242_v43 = vld [vmem:[#allocation2 + $0x10] sm:$0xff]  ;;  %v6285_v10 = vpop.permute.xlu0 %6284 }
 0x2ef   : > { %v7241_v57 = vld [vmem:[#allocation2 + $0x8] sm:$0xff]  ;;  %v4702_v32 = vadd.f32 %v11423_v62, %v4408_v52  ;;  %4816 = vst.msk [vmem:[#allocation2 + $0x78] sm:$0xff] %vm2070_vm2, %v4814_v31  ;;  %v7265_v53 = vadd.f32 %v11474_v9, %v7242_v43  ;;  %v6316_v39 = vadd.f32 %v6285_v10, %v6196_v59  ;;  %v6200_v31 = vld [vmem:[#allocation2 + $0x40] sm:$0xff] }
 0x2f0   : > { %7295 = vst.msk [vmem:[%s11493_s3] sm:$0xff] %vm2070_vm2, %v7279_v44  ;;  %v7264_v3 = vadd.f32 %v11474_v9, %v7241_v57  ;;  %6190 = vst.msk [vmem:[#allocation2 + $0x50] sm:$0xff] %vm2070_vm2, %v6178_v13  ;;  %v5951_v36 = vld [vmem:[#allocation2 + $0x58] sm:$0xff] }
 0x2f1   : > { %4716 = vst.msk [vmem:[#allocation2 + $0x68] sm:$0xff] %vm2070_vm2, %v4702_v32  ;;  %v7281_v62 = vmax.f32 %v7265_v53, 0.0  ;;  %6328 = vst.msk [vmem:[#allocation2 + $0x20] sm:$0xff] %vm2070_vm2, %v6316_v39  ;;  %v6179_v24 = vadd.f32 %v11243_v29, %v5951_v36 }
 0x2f2   : > { %v7280_v45 = vmax.f32 %v7264_v3, 0.0  ;;  %v4817_v28 = vld [vmem:[#allocation2 + $0x70] sm:$0xff]  ;;  %v6287_v40 = vpop.permute.xlu1 %6286  ;;  %v6565_v0 = vpop.permute.xlu0 %6564 }
 0x2f3   : > { %v4831_v18 = vadd.f32 %v11421_v37, %v4817_v28  ;;  %7297 = vst.msk [vmem:[%s11493_s3 + $0x10] sm:$0xff] %vm2070_vm2, %v7281_v62  ;;  %6191 = vst.msk [vmem:[#allocation2 + $0x58] sm:$0xff] %vm2070_vm2, %v6179_v24  ;;  %v7243_v22 = vld [vmem:[#allocation2 + $0x18] sm:$0xff]  ;;  %v6317_v19 = vadd.f32 %v6287_v40, %v6197_v60  ;;  %v6201_v10 = vld [vmem:[#allocation2 + $0x48] sm:$0xff] }
 0x2f4   : > { %7296 = vst.msk [vmem:[%s11493_s3 + $0x8] sm:$0xff] %vm2070_vm2, %v7280_v45  ;;  %v7016_v63 = vld [vmem:[#allocation2 + $0x60] sm:$0xff]  ;;  %v7266_v6 = vadd.f32 %v11474_v9, %v7243_v22 }
 0x2f5   : > { %4833 = vst.msk [vmem:[#allocation2 + $0x70] sm:$0xff] %vm2070_vm2, %v4831_v18  ;;  %v7092_v58 = vadd.f32 %v11960_v54, %v7016_v63  ;;  %6329 = vst.msk [vmem:[#allocation2 + $0x28] sm:$0xff] %vm2070_vm2, %v6317_v19 }
 0x2f6   : > { %v4818_v29 = vld [vmem:[#allocation2 + $0x78] sm:$0xff]  ;;  %v7282_v23 = vmax.f32 %v7266_v6, 0.0 }
 0x2f7   : > { %v4832_v37 = vadd.f32 %v11432_v16, %v4818_v29  ;;  %7096 = vst.msk [vmem:[#allocation2 + $0x60] sm:$0xff] %vm2070_vm2, %v7092_v58  ;;  %v6202_v45 = vld [vmem:[#allocation2 + $0x50] sm:$0xff] }
 0x2f8   : > { %v6340_v14 = vld [vmem:[#allocation2 + $0x20] sm:$0xff]  ;;  %v7017_v42 = vld [vmem:[#allocation2 + $0x68] sm:$0xff]  ;;  %7298 = vst.msk [vmem:[%s11493_s3 + $0x18] sm:$0xff] %vm2070_vm2, %v7282_v23 }
 0x2f9   : > { %4834 = vst.msk [vmem:[#allocation2 + $0x78] sm:$0xff] %vm2070_vm2, %v4832_v37  ;;  %v6592_v55 = vadd.f32 %v11476_v12, %v6340_v14  ;;  %v7093_v46 = vadd.f32 %v11164_v56, %v7017_v42  ;;  %v6199_v56 = vld [vmem:[#allocation2 + $0x38] sm:$0xff] }
 0x2fa   : > { %v6203_v54 = vld [vmem:[#allocation2 + $0x58] sm:$0xff] }
 0x2fb   : > { %6604 = vst.msk [vmem:[#allocation2 + $0x20] sm:$0xff] %vm2070_vm2, %v6592_v55  ;;  %7097 = vst.msk [vmem:[#allocation2 + $0x68] sm:$0xff] %vm2070_vm2, %v7093_v46  ;;  %v6567_v16 = vpop.permute.xlu1 %6566 }
 0x2fc   : > { %v7018_v25 = vld [vmem:[#allocation2 + $0x70] sm:$0xff]  ;;  %v6341_v11 = vld [vmem:[#allocation2 + $0x28] sm:$0xff] }
 0x2fd   : > { %v6289_v30 = vpop.permute.xlu0 %6288  ;;  %v7094_v26 = vadd.f32 %v11224_v34, %v7018_v25  ;;  %v6593_v41 = vadd.f32 %v6563_v35, %v6341_v11 }
 0x2fe   : > { %v6318_v27 = vadd.f32 %v6289_v30, %v6198_v38  ;;  %v7100_v33 = vld [vmem:[#allocation2 + $0x60] sm:$0xff] }
 0x2ff   : > { %7098 = vst.msk [vmem:[#allocation2 + $0x70] sm:$0xff] %vm2070_vm2, %v7094_v26  ;;  %v6291_v17 = vpop.permute.xlu1 %6290  ;;  %6605 = vst.msk [vmem:[#allocation2 + $0x28] sm:$0xff] %vm2070_vm2, %v6593_v41 }
 0x300   : > { %6330 = vst.msk [vmem:[#allocation2 + $0x30] sm:$0xff] %vm2070_vm2, %v6318_v27  ;;  %v7019_v5 = vld [vmem:[#allocation2 + $0x78] sm:$0xff]  ;;  %v6319_v2 = vadd.f32 %v6291_v17, %v6199_v56 }
 0x301   : > { %v7129_v12 = vpop.permute.xlu0 %7128  ;;  %v7095_v15 = vadd.f32 %v11230_v48, %v7019_v5 }
 0x302   : > { %v7244_v4 = vld [vmem:[#allocation2 + $0x20] sm:$0xff]  ;;  %v7140_v34 = vadd.f32 %v7129_v12, %v7100_v33  ;;  %v7101_v50 = vld [vmem:[#allocation2 + $0x68] sm:$0xff]  ;;  %6331 = vst.msk [vmem:[#allocation2 + $0x38] sm:$0xff] %vm2070_vm2, %v6319_v2 }
 0x303   : > { %v7267_v61 = vadd.f32 %v11474_v9, %v7244_v4  ;;  %7099 = vst.msk [vmem:[#allocation2 + $0x78] sm:$0xff] %vm2070_vm2, %v7095_v15  ;;  %v7131_v8 = vpop.permute.xlu1 %7130 }
 0x304   : > { %7144 = vst.msk [vmem:[#allocation2 + $0x60] sm:$0xff] %vm2070_vm2, %v7140_v34  ;;  %v7141_v1 = vadd.f32 %v7131_v8, %v7101_v50 }
 0x305   : > { %v7283_v47 = vmax.f32 %v7267_v61, 0.0  ;;  %v6569_v21 = vpop.permute.xlu0 %6568 }
 0x306   : > { %7145 = vst.msk [vmem:[#allocation2 + $0x68] sm:$0xff] %vm2070_vm2, %v7141_v1  ;;  %v7245_v48 = vld [vmem:[#allocation2 + $0x28] sm:$0xff]  ;;  %v7102_v57 = vld [vmem:[#allocation2 + $0x70] sm:$0xff] }
 0x307   : > { %7299 = vst.msk [vmem:[%s11493_s3 + $0x20] sm:$0xff] %vm2070_vm2, %v7283_v47  ;;  %v6342_v7 = vld [vmem:[#allocation2 + $0x30] sm:$0xff]  ;;  %v6571_v51 = vpop.permute.xlu1 %6570  ;;  %v7268_v20 = vadd.f32 %v11474_v9, %v7245_v48 }
 0x308   : > { %v6594_v49 = vadd.f32 %v6565_v0, %v6342_v7 }
 0x309   : > { %v6293_v44 = vpop.permute.xlu0 %6292  ;;  %v6343_v59 = vld [vmem:[#allocation2 + $0x38] sm:$0xff]  ;;  %v7284_v52 = vmax.f32 %v7268_v20, 0.0 }
 0x30a   : > { %6606 = vst.msk [vmem:[#allocation2 + $0x30] sm:$0xff] %vm2070_vm2, %v6594_v49  ;;  %v6320_v13 = vadd.f32 %v6293_v44, %v6200_v31  ;;  %v6595_v43 = vadd.f32 %v6567_v16, %v6343_v59  ;;  %v7103_v35 = vld [vmem:[#allocation2 + $0x78] sm:$0xff] }
 0x30b   : > { %7300 = vst.msk [vmem:[%s11493_s3 + $0x28] sm:$0xff] %vm2070_vm2, %v7284_v52  ;;  %v7148_v55 = vld [vmem:[#allocation2 + $0x60] sm:$0xff] }
 0x30c   : > { %6332 = vst.msk [vmem:[#allocation2 + $0x40] sm:$0xff] %vm2070_vm2, %v6320_v13  ;;  %v6295_v32 = vpop.permute.xlu1 %6294  ;;  %6607 = vst.msk [vmem:[#allocation2 + $0x38] sm:$0xff] %vm2070_vm2, %v6595_v43 }
 0x30d   : > { %v6321_v53 = vadd.f32 %v6295_v32, %v6201_v10  ;;  %v7133_v3 = vpop.permute.xlu0 %7132  ;;  %v7149_v30 = vld [vmem:[#allocation2 + $0x68] sm:$0xff] }
 0x30e   : > { %v7142_v39 = vadd.f32 %v7133_v3, %v7102_v57 }
 0x30f   : > { %6333 = vst.msk [vmem:[#allocation2 + $0x48] sm:$0xff] %vm2070_vm2, %v6321_v53 }
 0x310   : > { %7146 = vst.msk [vmem:[#allocation2 + $0x70] sm:$0xff] %vm2070_vm2, %v7142_v39  ;;  %v7135_v36 = vpop.permute.xlu1 %7134 }
 0x311   : > { %v7246_v62 = vld [vmem:[#allocation2 + $0x30] sm:$0xff]  ;;  %v6297_v24 = vpop.permute.xlu0 %6296  ;;  %v7143_v28 = vadd.f32 %v7135_v36, %v7103_v35 }
 0x312   : > { %v7269_v18 = vadd.f32 %v11474_v9, %v7246_v62  ;;  %v6322_v60 = vadd.f32 %v6297_v24, %v6202_v45 }
 0x313   : > { %v6344_v40 = vld [vmem:[#allocation2 + $0x40] sm:$0xff]  ;;  %7147 = vst.msk [vmem:[#allocation2 + $0x78] sm:$0xff] %vm2070_vm2, %v7143_v28  ;;  %v7247_v22 = vld [vmem:[#allocation2 + $0x38] sm:$0xff] }
 0x314   : > { %v7285_v63 = vmax.f32 %v7269_v18, 0.0  ;;  %v6596_v19 = vadd.f32 %v6569_v21, %v6344_v40  ;;  %6334 = vst.msk [vmem:[#allocation2 + $0x50] sm:$0xff] %vm2070_vm2, %v6322_v60  ;;  %v6299_v58 = vpop.permute.xlu1 %6298  ;;  %v7270_v29 = vadd.f32 %v11474_v9, %v7247_v22 }
 0x315   : > { %v6573_v6 = vpop.permute.xlu0 %6572  ;;  %v6323_v37 = vadd.f32 %v6299_v58, %v6203_v54 }
 0x316   : > { %7301 = vst.msk [vmem:[%s11493_s3 + $0x30] sm:$0xff] %vm2070_vm2, %v7285_v63  ;;  %6608 = vst.msk [vmem:[#allocation2 + $0x40] sm:$0xff] %vm2070_vm2, %v6596_v19  ;;  %v6345_v0 = vld [vmem:[#allocation2 + $0x48] sm:$0xff]  ;;  %v7286_v23 = vmax.f32 %v7270_v29, 0.0 }
 0x317   : > { %v6597_v14 = vadd.f32 %v6571_v51, %v6345_v0  ;;  %6335 = vst.msk [vmem:[#allocation2 + $0x58] sm:$0xff] %vm2070_vm2, %v6323_v37  ;;  %v7150_v27 = vld [vmem:[#allocation2 + $0x70] sm:$0xff] }
 0x318   : > { %v6575_v42 = vpop.permute.xlu1 %6574  ;;  %7302 = vst.msk [vmem:[%s11493_s3 + $0x38] sm:$0xff] %vm2070_vm2, %v7286_v23 }
 0x319   : > { %6609 = vst.msk [vmem:[#allocation2 + $0x48] sm:$0xff] %vm2070_vm2, %v6597_v14  ;;  %v7221_v46 = vpop.permute.xlu0 %7220 }
 0x31a   : > { %v7232_v16 = vadd.f32 %v7221_v46, %v7148_v55  ;;  %v7151_v4 = vld [vmem:[#allocation2 + $0x78] sm:$0xff] }
 0x31b   : > { %v6346_v25 = vld [vmem:[#allocation2 + $0x50] sm:$0xff] }
 0x31c   : > { %v6598_v38 = vadd.f32 %v6573_v6, %v6346_v25  ;;  %7236 = vst.msk [vmem:[#allocation2 + $0x60] sm:$0xff] %vm2070_vm2, %v7232_v16  ;;  %v7223_v26 = vpop.permute.xlu1 %7222 }
 0x31d   : > { %v7248_v11 = vld [vmem:[#allocation2 + $0x40] sm:$0xff]  ;;  %v7225_v41 = vpop.permute.xlu0 %7224  ;;  %v7233_v33 = vadd.f32 %v7223_v26, %v7149_v30 }
 0x31e   : > { %v7271_v56 = vadd.f32 %v11474_v9, %v7248_v11  ;;  %6610 = vst.msk [vmem:[#allocation2 + $0x50] sm:$0xff] %vm2070_vm2, %v6598_v38  ;;  %v6347_v17 = vld [vmem:[#allocation2 + $0x58] sm:$0xff]  ;;  %v7234_v5 = vadd.f32 %v7225_v41, %v7150_v27 }
 0x31f   : > { %v6599_v2 = vadd.f32 %v6575_v42, %v6347_v17  ;;  %7237 = vst.msk [vmem:[#allocation2 + $0x68] sm:$0xff] %vm2070_vm2, %v7233_v33 }
 0x320   : > { %v7287_v12 = vmax.f32 %v7271_v56, 0.0  ;;  %v7249_v15 = vld [vmem:[#allocation2 + $0x48] sm:$0xff]  ;;  %7238 = vst.msk [vmem:[#allocation2 + $0x70] sm:$0xff] %vm2070_vm2, %v7234_v5  ;;  %v7227_v34 = vpop.permute.xlu1 %7226 }
 0x321   : > { %v7272_v50 = vadd.f32 %v11474_v9, %v7249_v15  ;;  %6611 = vst.msk [vmem:[#allocation2 + $0x58] sm:$0xff] %vm2070_vm2, %v6599_v2  ;;  %v7235_v61 = vadd.f32 %v7227_v34, %v7151_v4 }
 0x322   : > { %7303 = vst.msk [vmem:[%s11493_s3 + $0x40] sm:$0xff] %vm2070_vm2, %v7287_v12 }
 0x323   : > { %v7288_v8 = vmax.f32 %v7272_v50, 0.0  ;;  %v7252_v47 = vld [vmem:[#allocation2 + $0x60] sm:$0xff]  ;;  %7239 = vst.msk [vmem:[#allocation2 + $0x78] sm:$0xff] %vm2070_vm2, %v7235_v61 }
 0x324   : > { %v7275_v21 = vadd.f32 %v11474_v9, %v7252_v47 }
 0x325   : > { %7304 = vst.msk [vmem:[%s11493_s3 + $0x48] sm:$0xff] %vm2070_vm2, %v7288_v8  ;;  %v7250_v1 = vld [vmem:[#allocation2 + $0x50] sm:$0xff] }
 0x326   : > { %v7273_v7 = vadd.f32 %v11474_v9, %v7250_v1  ;;  %v7291_v48 = vmax.f32 %v7275_v21, 0.0  ;;  %v7253_v49 = vld [vmem:[#allocation2 + $0x68] sm:$0xff] }
 0x327   : > { %v7254_v51 = vld [vmem:[#allocation2 + $0x70] sm:$0xff]  ;;  %v7276_v20 = vadd.f32 %v11474_v9, %v7253_v49 }
 0x328   : > { %v7289_v31 = vmax.f32 %v7273_v7, 0.0  ;;  %7307 = vst.msk [vmem:[%s11493_s3 + $0x60] sm:$0xff] %vm2070_vm2, %v7291_v48  ;;  %v7251_v44 = vld [vmem:[#allocation2 + $0x58] sm:$0xff]  ;;  %v7277_v59 = vadd.f32 %v11474_v9, %v7254_v51 }
 0x329   : > { %v7274_v13 = vadd.f32 %v11474_v9, %v7251_v44  ;;  %v7292_v52 = vmax.f32 %v7276_v20, 0.0 }
 0x32a   : > { %7305 = vst.msk [vmem:[%s11493_s3 + $0x50] sm:$0xff] %vm2070_vm2, %v7289_v31  ;;  %v7293_v43 = vmax.f32 %v7277_v59, 0.0  ;;  %v7255_v57 = vld [vmem:[#allocation2 + $0x78] sm:$0xff] }
 0x32b   : > { %v7290_v10 = vmax.f32 %v7274_v13, 0.0  ;;  %7308 = vst.msk [vmem:[%s11493_s3 + $0x68] sm:$0xff] %vm2070_vm2, %v7292_v52  ;;  %v7278_v32 = vadd.f32 %v11474_v9, %v7255_v57 }
 0x32c   : > { %7309 = vst.msk [vmem:[%s11493_s3 + $0x70] sm:$0xff] %vm2070_vm2, %v7293_v43 }
 0x32d   : > { %7306 = vst.msk [vmem:[%s11493_s3 + $0x58] sm:$0xff] %vm2070_vm2, %v7290_v10  ;;  %v7294_v53 = vmax.f32 %v7278_v32, 0.0 }
 0x32f   : > { %7310 = vst.msk [vmem:[%s11493_s3 + $0x78] sm:$0xff] %vm2070_vm2, %v7294_v53 }
 0x330   : > { %8078 = shalt.err (!%p8075_p3)
}
 0x331   : > { %s8079_s26 = scalar_lea.hbm %s11589_s2, 2048  ;;  %s8083_s3 = scalar_lea.hbm %s11964_s4, 8192 }
 0x332   : > { %p8080_p0 = scmp.ne.s32.totalorder %s11589_s2, %s8079_s26  ;;  %p8084_p2 = scmp.lt.u32.totalorder %s11589_s2, %s11964_s4 }
 0x333   : > { %p8085_p5 = scmp.lt.u32.totalorder %s8083_s3, %s8079_s26  ;;  %p8087_p12 = scmp.lt.u32.totalorder %s8079_s26, %s11589_s2 }
 0x334   : > { %p8081_p7 = pnand %p8080_p0, %p11965_p8 }
 0x335   : > { %p8086_p11 = por %p8085_p5, %p8084_p2 }
 0x336   : > { %p8082_p4 = pneg %p8081_p7 }
 0x337   : > { %p8088_p9 = por %p8087_p12, %p8086_p11 }
 0x339   : > { %p8089_p1 = pnand %p8088_p9, %p8082_p4 }
 0x33b   : > { %8092 = shalt.err (!%p8089_p1)
}
 0x33c   : > { %s8220_s10 = smov 128   ;;  %s8221_s14 = smov 8  }
 0x33d   : > { %7823 = dma.vmem_to_hbm [thread:$0]  (%p11965_p8), %s11582_s21, 2048, %s11589_s2, %s7312_s5, %s8220_s10, %s8220_s10, %s8221_s14  }
 0x33e PF: > { %s11966_s18 = sld [smem:[#allocation17_spill]]  ;;  %s11967_s29 = sld [smem:[#allocation25_spill]] }
 0x33f   : > { %p7840_p6 = scmp.ge.s32.totalorder %s8201_s25, 2 }
 0x344   : > { %s7343_s7 = sand.u32 1, %s11966_s18   ;;  %p11968_p10 = scmp.ne.s32.totalorder %s11967_s29, 0 }
 0x345   : > { %s7344_s28 = scalar_lea.sflag [#allocation5], %s7343_s7 }
 0x346   : > { %p7833_p13 = pnand %p7840_p6, %p11968_p10 }
 0x348   : > { %8154 = dma.done.wait (!%p7833_p13), %s7344_s28, 2048  }
 0x349   : > { %8156 = vsyncadd (!%p7833_p13), %s7344_s28, 4294965248  ;;  %s24_s25 = sadd.s32 1, %s8201_s25   ;;  %s11969_s30 = sld [smem:[#allocation23_spill]] }
 0x34a   : > { %p21_p3 = scmp.ge.s32.totalorder %s24_s25, 6   ;;  %s11970_s12 = sld [smem:[#allocation22_spill]] }
 0x34b   : > { %s11971_s2 = sld [smem:[#allocation20_spill]]  ;;  %s11972_s5 = sld [smem:[#allocation21_spill]] }
 0x34c   : > { %s11973_s15 = smov %s8165_s16  ;;  %s11974_s16 = smov %s8169_s17 }
 0x34d   : > { %s11976_s18 = smov %s8177_s19  ;;  %s11977_s19 = smov %s8181_s20 }
 0x34e   : > { %s11979_s21 = smov %s8193_s23  ;;  %s11980_s22 = smov %s8197_s24 }
 0x34f   : > { %s11975_s17 = smov %s11969_s30  ;;  %23 = sbr.rel (!%p21_p3) target bundleno = 16 (0x10), region = 108 }
 0x350   : > { %s11978_s20 = smov %s11970_s12 }
 0x351   : > { %s11981_s23 = smov %s11971_s2  ;;  %s11982_s24 = smov %s11972_s5 }
 0x356   :  { %7349 = vsyncpa [#allocation4], 1 }
 0x357   :  { %7351 = vsyncpa [#allocation4 + $0x1], 1 }
 0x358   :  { %7352 = vsyncpa [#allocation7], 1 }
 0x359   :  { %7354 = vsyncpa [#allocation7 + $0x1], 1 }
 0x35a   :  { %7355 = vsyncpa [#allocation10], 1 }
 0x35b   :  { %7356 = vsyncpa [#allocation5], 1 }
 0x35c   :  { %7358 = vsyncpa [#allocation5 + $0x1], 1 }

</bundles_post_ra>
